<compile_context>
chip_gen: v7x
topology: tpu7x:2x2x1
jax: 0.10.0
libtpu: 0.0.40
codegen_flags: <defaults>
</compile_context>

<pallas_src>
import functools

import jax
import jax.numpy as jnp
from jax.experimental import pallas as pl
from jax.experimental.pallas import tpu as pltpu


def _round_up(x, m):
    return (x + m - 1) // m * m


# ----------------------------------------------------------------------------
# Pallas kernel 1: tiled matmul + bias (+ optional ReLU).
#   bf16 operands -> MXU, f32 accumulation in VMEM scratch, bias/ReLU applied
#   exactly once in the k==last finalize branch.
# ----------------------------------------------------------------------------
def _mm_bias_kernel(a_ref, w_ref, b_ref, o_ref, acc_ref, *, relu):
    k = pl.program_id(2)

    @pl.when(k == 0)
    def _():
        acc_ref[...] = jnp.zeros_like(acc_ref)

    acc_ref[...] += jnp.dot(a_ref[...], w_ref[...],
                            preferred_element_type=jnp.float32)

    @pl.when(k == pl.num_programs(2) - 1)
    def _():
        out = acc_ref[...] + b_ref[...]
        if relu:
            out = jnp.maximum(out, 0.0)
        o_ref[...] = out.astype(o_ref.dtype)


def pallas_matmul_bias(a, w, b, relu=False, tm=256, tn=256, tk=512):
    """out[M, N] = (relu?)(a[M, K] @ w[K, N] + b[N]); bf16 MXU, f32 accum."""
    M, K = a.shape
    K2, N = w.shape
    assert K == K2, (a.shape, w.shape)

    # Tile sizes: (8, 128)-aligned, clipped to the (padded) problem size.
    tm = min(tm, _round_up(M, 8))
    tn = min(tn, _round_up(N, 128))
    tk = min(tk, _round_up(K, 128))
    Mp, Kp, Np = _round_up(M, tm), _round_up(K, tk), _round_up(N, tn)

    a_p = jnp.pad(a.astype(jnp.bfloat16), ((0, Mp - M), (0, Kp - K)))
    w_p = jnp.pad(w.astype(jnp.bfloat16), ((0, Kp - K), (0, Np - N)))
    b_p = jnp.pad(b.astype(jnp.float32), (0, Np - N)).reshape(1, Np)

    out = pl.pallas_call(
        functools.partial(_mm_bias_kernel, relu=relu),
        out_shape=jax.ShapeDtypeStruct((Mp, Np), jnp.float32),
        grid=(Mp // tm, Np // tn, Kp // tk),
        in_specs=[
            pl.BlockSpec((tm, tk), lambda i, j, k: (i, k)),
            pl.BlockSpec((tk, tn), lambda i, j, k: (k, j)),
            pl.BlockSpec((1, tn), lambda i, j, k: (0, j)),
        ],
        out_specs=pl.BlockSpec((tm, tn), lambda i, j, k: (i, j)),
        scratch_shapes=[pltpu.VMEM((tm, tn), jnp.float32)],
        compiler_params=pltpu.CompilerParams(
            dimension_semantics=("parallel", "parallel", "arbitrary")),
    )(a_p, w_p, b_p)
    return out[:M, :N]


# ----------------------------------------------------------------------------
# Pallas kernel 2: fused bidirectional LSTM recurrence for one layer.
#   grid = (num_time_chunks,), sequential ("arbitrary"); inside each chunk an
#   unrolled fori_loop walks TC timesteps.  Forward direction walks time
#   forward, backward direction walks time backward (reversed chunk index_map
#   + reversed in-chunk index).  h/c state ((B2, 2*Hp): [fwd | bwd]) lives in
#   VMEM scratch and persists across chunks.  pack_padded semantics via a
#   per-row lengths mask (state frozen + zero output at padded steps).
# ----------------------------------------------------------------------------
def _bilstm_chunk_kernel(gxf_ref, gxb_ref, whh_ref, len_ref,
                         outf_ref, outb_ref, h_scr, c_scr, *, TC, Hp, T):
    chunk = pl.program_id(0)

    @pl.when(chunk == 0)
    def _():
        h_scr[...] = jnp.zeros_like(h_scr)
        c_scr[...] = jnp.zeros_like(c_scr)

    lens = len_ref[...]                      # (B2, 1) int32
    whh = whh_ref[...]                       # (2Hp, 8Hp) bf16, block-diagonal

    def step(s, carry):
        tf = chunk * TC + s                  # forward global timestep
        tb = T - 1 - tf                      # backward global timestep

        h_prev = h_scr[...]                  # (B2, 2Hp) f32  [h_fwd | h_bwd]
        gates_h = jnp.dot(h_prev.astype(jnp.bfloat16), whh,
                          preferred_element_type=jnp.float32)    # (B2, 8Hp)
        gates_f = gxf_ref[s] + gates_h[:, :4 * Hp]
        gates_b = gxb_ref[TC - 1 - s] + gates_h[:, 4 * Hp:]

        def cell(gates, c_prev):
            i_g = jax.nn.sigmoid(gates[:, 0 * Hp:1 * Hp])
            f_g = jax.nn.sigmoid(gates[:, 1 * Hp:2 * Hp])
            g_g = jnp.tanh(gates[:, 2 * Hp:3 * Hp])
            o_g = jax.nn.sigmoid(gates[:, 3 * Hp:4 * Hp])
            c_new = f_g * c_prev + i_g * g_g
            return o_g * jnp.tanh(c_new), c_new

        h_f, c_f = cell(gates_f, c_scr[:, :Hp])
        h_b, c_b = cell(gates_b, c_scr[:, Hp:])

        valid_f = lens > tf                  # (B2, 1) bool
        valid_b = lens > tb

        h_scr[:, :Hp] = jnp.where(valid_f, h_f, h_prev[:, :Hp])
        h_scr[:, Hp:] = jnp.where(valid_b, h_b, h_prev[:, Hp:])
        c_scr[:, :Hp] = jnp.where(valid_f, c_f, c_scr[:, :Hp])
        c_scr[:, Hp:] = jnp.where(valid_b, c_b, c_scr[:, Hp:])

        outf_ref[s] = jnp.where(valid_f, h_f, 0.0)
        outb_ref[TC - 1 - s] = jnp.where(valid_b, h_b, 0.0)
        return carry

    jax.lax.fori_loop(0, TC, step, 0, unroll=True)


def pallas_bilstm_layer(gx, whh_cat, lens, Hp, t_chunk=8):
    """gx: (T, B2, 8*Hp) f32 input gates [fwd 4Hp | bwd 4Hp];
    whh_cat: (2*Hp, 8*Hp) bf16 block-diag recurrent weights; lens: (B2, 1) i32.
    Returns (T, B2, 2*Hp) hidden states [h_fwd | h_bwd]."""
    T, B2, _ = gx.shape
    TC = min(t_chunk, T)
    Tp = _round_up(T, TC)
    if Tp != T:
        gx = jnp.pad(gx, ((0, Tp - T), (0, 0), (0, 0)))
    NC = Tp // TC

    out_f, out_b = pl.pallas_call(
        functools.partial(_bilstm_chunk_kernel, TC=TC, Hp=Hp, T=Tp),
        out_shape=(jax.ShapeDtypeStruct((Tp, B2, Hp), jnp.float32),
                   jax.ShapeDtypeStruct((Tp, B2, Hp), jnp.float32)),
        grid=(NC,),
        in_specs=[
            # forward gate half, natural chunk order
            pl.BlockSpec((TC, B2, 4 * Hp), lambda c: (c, 0, 0)),
            # backward gate half, chunks visited in reverse time order
            pl.BlockSpec((TC, B2, 4 * Hp), lambda c: (NC - 1 - c, 0, 1)),
            pl.BlockSpec((2 * Hp, 8 * Hp), lambda c: (0, 0)),
            pl.BlockSpec((B2, 1), lambda c: (0, 0)),
        ],
        out_specs=(
            pl.BlockSpec((TC, B2, Hp), lambda c: (c, 0, 0)),
            pl.BlockSpec((TC, B2, Hp), lambda c: (NC - 1 - c, 0, 0)),
        ),
        scratch_shapes=[
            pltpu.VMEM((B2, 2 * Hp), jnp.float32),   # h state [fwd | bwd]
            pltpu.VMEM((B2, 2 * Hp), jnp.float32),   # c state [fwd | bwd]
        ],
        compiler_params=pltpu.CompilerParams(
            dimension_semantics=("arbitrary",)),
    )(gx, gx, whh_cat, lens)

    return jnp.concatenate([out_f[:T], out_b[:T]], axis=-1)


# ----------------------------------------------------------------------------
# Glue: im2col for Conv1d(kernel=3, stride=2, padding=1)
# ----------------------------------------------------------------------------
def im2col_1d(x_ncl, kernel=3, stride=2, pad=1):
    B, C, L = x_ncl.shape
    Lo = (L + 2 * pad - kernel) // stride + 1
    xp = jnp.pad(x_ncl, ((0, 0), (0, 0), (pad, pad)))
    idx = stride * jnp.arange(Lo)[:, None] + jnp.arange(kernel)[None, :]
    cols = xp[:, :, idx]                                  # (B, C, Lo, K)
    cols = jnp.transpose(cols, (0, 2, 1, 3)).reshape(B * Lo, C * kernel)
    return cols, Lo


# ----------------------------------------------------------------------------
# Parameters (deterministic init; synthetic — not a checkpoint load)
# ----------------------------------------------------------------------------
def init_params(key, n_mels, hid, layers, vocab_size):
    def nrm(k, shape, scale=0.1):
        return scale * jax.random.normal(k, shape, dtype=jnp.float32)

    keys = jax.random.split(key, 8 + 8 * layers)
    ki = iter(keys)
    p = {}
    p["conv1_w"] = nrm(next(ki), (128, n_mels, 3))
    p["conv1_b"] = nrm(next(ki), (128,))
    p["conv2_w"] = nrm(next(ki), (128, 128, 3))
    p["conv2_b"] = nrm(next(ki), (128,))
    p["lstm"] = []
    for _l in range(layers):
        in_dim = 128 if _l == 0 else 2 * hid
        layer = []
        for _d in range(2):  # forward, backward
            layer.append({
                "w_ih": nrm(next(ki), (4 * hid, in_dim)),
                "w_hh": nrm(next(ki), (4 * hid, hid)),
                "b_ih": nrm(next(ki), (4 * hid,)),
                "b_hh": nrm(next(ki), (4 * hid,)),
            })
        p["lstm"].append(layer)
    p["fc_w"] = nrm(next(ki), (vocab_size, 2 * hid))
    p["fc_b"] = nrm(next(ki), (vocab_size,))
    return p


# ----------------------------------------------------------------------------
# One-time weight prep: transpose, pad hidden dim to Hp = ceil(H/128)*128,
# fuse fwd/bwd directions, build block-diagonal W_hh.  Padded gate columns
# are zero, which keeps padded hidden units exactly zero through the
# recurrence (sigmoid(0)*0 + sigmoid(0)*tanh(0) == 0).
# ----------------------------------------------------------------------------
def _pad_gate_cols(w, H, Hp):
    """(R, 4H) -> (R, 4Hp): gate g's H real columns land at [g*Hp, g*Hp+H)."""
    R = w.shape[0]
    out = jnp.zeros((R, 4 * Hp), w.dtype)
    for g in range(4):
        out = out.at[:, g * Hp:g * Hp + H].set(w[:, g * H:(g + 1) * H])
    return out


def _expand_bidir_rows(w, H, Hp):
    """(2H, C) -> (2Hp, C): fwd rows -> [0:H), bwd rows -> [Hp:Hp+H)."""
    C = w.shape[1]
    out = jnp.zeros((2 * Hp, C), w.dtype)
    out = out.at[:H].set(w[:H])
    out = out.at[Hp:Hp + H].set(w[H:])
    return out


def prepare_params(raw, n_mels, hid, layers, vocab_size):
    H = hid
    Hp = _round_up(H, 128)
    p = {
        "conv1_w": raw["conv1_w"].reshape(128, n_mels * 3).T.astype(jnp.bfloat16),
        "conv1_b": raw["conv1_b"].astype(jnp.float32),
        "conv2_w": raw["conv2_w"].reshape(128, 128 * 3).T.astype(jnp.bfloat16),
        "conv2_b": raw["conv2_b"].astype(jnp.float32),
        "lstm": [],
    }
    for l in range(layers):
        wih_d, whh_d, b_d = [], [], []
        for d in range(2):                               # 0 = fwd, 1 = bwd
            wp = raw["lstm"][l][d]
            wih = _pad_gate_cols(wp["w_ih"].T, H, Hp)    # (in, 4Hp)
            if l > 0:                                    # input is padded [h_f | h_b]
                wih = _expand_bidir_rows(wih, H, Hp)     # (2Hp, 4Hp)
            whh = jnp.pad(_pad_gate_cols(wp["w_hh"].T, H, Hp),
                          ((0, Hp - H), (0, 0)))         # (Hp, 4Hp)
            bias = _pad_gate_cols((wp["b_ih"] + wp["b_hh"])[None, :], H, Hp)[0]
            wih_d.append(wih)
            whh_d.append(whh)
            b_d.append(bias)
        w_hh_cat = jnp.zeros((2 * Hp, 8 * Hp), jnp.float32)
        w_hh_cat = w_hh_cat.at[:Hp, :4 * Hp].set(whh_d[0])
        w_hh_cat = w_hh_cat.at[Hp:, 4 * Hp:].set(whh_d[1])
        p["lstm"].append({
            "w_ih_cat": jnp.concatenate(wih_d, axis=1).astype(jnp.bfloat16),
            "b_cat": jnp.concatenate(b_d).astype(jnp.float32),
            "w_hh_cat": w_hh_cat.astype(jnp.bfloat16),
        })
    p["fc_w"] = _expand_bidir_rows(raw["fc_w"].T, H, Hp).astype(jnp.float32)
    p["fc_b"] = raw["fc_b"].astype(jnp.float32)
    return p


# ----------------------------------------------------------------------------
# Forward pass (mirrors ASRModel.forward)
# ----------------------------------------------------------------------------
def asr_forward(prepped, x, lengths):
    # x: (B, T, n_mels) f32, lengths: (B,) int32
    B, T, _ = x.shape
    Hp = prepped["lstm"][0]["w_hh_cat"].shape[0] // 2
    B2 = _round_up(B, 8)                          # pad batch to full sublanes

    # x.transpose(1, 2) -> (B, n_mels, T); conv1 + ReLU (im2col + Pallas matmul)
    x_ncl = jnp.transpose(x, (0, 2, 1))
    cols1, T1 = im2col_1d(x_ncl)
    c1 = pallas_matmul_bias(cols1, prepped["conv1_w"], prepped["conv1_b"],
                            relu=True).reshape(B, T1, 128)

    # conv2 + ReLU
    cols2, T2 = im2col_1d(jnp.transpose(c1, (0, 2, 1)))
    c2 = pallas_matmul_bias(cols2, prepped["conv2_w"], prepped["conv2_b"],
                            relu=True).reshape(B, T2, 128)

    out_lengths = (lengths // 4).astype(jnp.int32)

    # Bidirectional multi-layer LSTM, time-major (T2, B2, feat)
    h = jnp.transpose(c2, (1, 0, 2))                       # (T2, B, 128)
    h = jnp.pad(h, ((0, 0), (0, B2 - B), (0, 0)))          # (T2, B2, 128)
    lens_p = jnp.pad(out_lengths, (0, B2 - B)).reshape(B2, 1)

    for layer in prepped["lstm"]:
        # Fused fwd+bwd input-gate projection: one matmul, lane-dense N = 8*Hp.
        gx = pallas_matmul_bias(h.reshape(T2 * B2, h.shape[-1]),
                                layer["w_ih_cat"], layer["b_cat"])
        gx = gx.reshape(T2, B2, 8 * Hp)
        h = pallas_bilstm_layer(gx, layer["w_hh_cat"], lens_p, Hp)  # (T2,B2,2Hp)

    # Final Linear (applied to zero-padded positions too, matching
    # pad_packed_sequence followed by nn.Linear).
    # TODO(synk): pad_packed_sequence truncates time to max(out_lengths); with
    # static shapes we keep T2 (equal when max(lengths) == T and T % 4 == 0).
    feats = jnp.transpose(h, (1, 0, 2))[:B]                # (B, T2, 2Hp)
    logits = pallas_matmul_bias(feats.reshape(B * T2, 2 * Hp),
                                prepped["fc_w"], prepped["fc_b"])
    logits = logits.reshape(B, T2, -1)
    return logits, out_lengths


if __name__ == "__main__":
    n_mels, hid, layers, vocab_size = 8, 32, 2, 16
    B, T = 2, 16

    key = jax.random.PRNGKey(0)
    k_p, k_x = jax.random.split(key)
    raw = init_params(k_p, n_mels, hid, layers, vocab_size)
    prepped = prepare_params(raw, n_mels, hid, layers, vocab_size)

    x = jax.random.normal(k_x, (B, T, n_mels), dtype=jnp.float32)
    lengths = jnp.array([16, 12], dtype=jnp.int32)

    fwd = jax.jit(asr_forward)
    logits, out_lengths = fwd(prepped, x, lengths)
    jax.block_until_ready(logits)
    jax.block_until_ready(out_lengths)

    assert logits.shape == (B, 4, vocab_size), logits.shape
    assert out_lengths.shape == (B,)
    print("KERNEL_OK")
</pallas_src>

<mosaic_0001>
module attributes {stable_mosaic.version = 11 : i64} {
  func.func @_mm_bias_kernel(%arg0: i32, %arg1: i32, %arg2: i32, %arg3: memref<16x128xbf16, #tpu.memory_space<vmem>>, %arg4: memref<128x128xbf16, #tpu.memory_space<vmem>>, %arg5: memref<1x128xf32, #tpu.memory_space<vmem>>, %arg6: memref<16x128xf32, #tpu.memory_space<vmem>>, %arg7: memref<16x128xf32, #tpu.memory_space<vmem>>) attributes {dimension_semantics = [#tpu.dimension_semantics<parallel>, #tpu.dimension_semantics<parallel>, #tpu.dimension_semantics<arbitrary>], iteration_bounds = array<i64: 1, 1, 1>, scalar_prefetch = 0 : i64, scratch_operands = 1 : i64, tpu.core_type = #tpu.core_type<tc>, window_params = [{transform_indices = @transform_0, window_bounds = array<i64: 16, 128>}, {transform_indices = @transform_1, window_bounds = array<i64: 128, 128>}, {transform_indices = @transform_2, window_bounds = array<i64: 1, 128>}, {transform_indices = @transform_3, window_bounds = array<i64: 16, 128>}]} {
    %c0_i32 = arith.constant 0 : i32
    %0 = arith.cmpi eq, %arg2, %c0_i32 : i32
    %1 = arith.extui %0 : i1 to i32
    %c0_i32_0 = arith.constant 0 : i32
    %2 = arith.cmpi ne, %1, %c0_i32_0 : i32
    scf.if %2 {
      %cst_10 = arith.constant 0.000000e+00 : f32
      %12 = vector.broadcast %cst_10 : f32 to vector<16x128xf32>
      %c0_11 = arith.constant 0 : index
      %c0_12 = arith.constant 0 : index
      %13 = vector.load %arg7[%c0_11, %c0_12] : memref<16x128xf32, #tpu.memory_space<vmem>>, vector<16x128xf32>
      tpu.vector_store %arg7[%c0_11, %c0_12], %12 {strides = array<i32>} : memref<16x128xf32, #tpu.memory_space<vmem>>, vector<16x128xf32>,
    } else {
    }
    %c0 = arith.constant 0 : index
    %c0_1 = arith.constant 0 : index
    %3 = vector.load %arg7[%c0, %c0_1] : memref<16x128xf32, #tpu.memory_space<vmem>>, vector<16x128xf32>
    %c0_2 = arith.constant 0 : index
    %c0_3 = arith.constant 0 : index
    %4 = vector.load %arg3[%c0_2, %c0_3] : memref<16x128xbf16, #tpu.memory_space<vmem>>, vector<16x128xbf16>
    %c0_4 = arith.constant 0 : index
    %c0_5 = arith.constant 0 : index
    %5 = vector.load %arg4[%c0_4, %c0_5] : memref<128x128xbf16, #tpu.memory_space<vmem>>, vector<128x128xbf16>
    %cst = arith.constant dense<0.000000e+00> : vector<16x128xf32>
    %6 = tpu.matmul %4, %5, %cst {dimension_numbers = #tpu.dot_dimension_numbers<[1], [0], [0], [1], [0, 0, 1, 1], [], []>} : vector<16x128xbf16>, vector<128x128xbf16>, vector<16x128xf32> -> vector<16x128xf32>
    %7 = arith.addf %3, %6 : vector<16x128xf32>
    %c0_6 = arith.constant 0 : index
    %c0_7 = arith.constant 0 : index
    %8 = vector.load %arg7[%c0_6, %c0_7] : memref<16x128xf32, #tpu.memory_space<vmem>>, vector<16x128xf32>
    tpu.vector_store %arg7[%c0_6, %c0_7], %7 {strides = array<i32>} : memref<16x128xf32, #tpu.memory_space<vmem>>, vector<16x128xf32>,
    %c0_i32_8 = arith.constant 0 : i32
    %9 = arith.cmpi eq, %arg2, %c0_i32_8 : i32
    %10 = arith.extui %9 : i1 to i32
    %c0_i32_9 = arith.constant 0 : i32
    %11 = arith.cmpi ne, %10, %c0_i32_9 : i32
    scf.if %11 {
      %c0_10 = arith.constant 0 : index
      %c0_11 = arith.constant 0 : index
      %12 = vector.load %arg7[%c0_10, %c0_11] : memref<16x128xf32, #tpu.memory_space<vmem>>, vector<16x128xf32>
      %c0_12 = arith.constant 0 : index
      %c0_13 = arith.constant 0 : index
      %13 = vector.load %arg5[%c0_12, %c0_13] : memref<1x128xf32, #tpu.memory_space<vmem>>, vector<1x128xf32>
      %14 = vector.broadcast %13 : vector<1x128xf32> to vector<16x128xf32>
      %15 = arith.addf %12, %14 : vector<16x128xf32>
      %cst_14 = arith.constant 0.000000e+00 : f32
      %16 = vector.broadcast %cst_14 : f32 to vector<16x128xf32>
      %17 = arith.maximumf %15, %16 : vector<16x128xf32>
      %c0_15 = arith.constant 0 : index
      %c0_16 = arith.constant 0 : index
      %18 = vector.load %arg6[%c0_15, %c0_16] : memref<16x128xf32, #tpu.memory_space<vmem>>, vector<16x128xf32>
      tpu.vector_store %arg6[%c0_15, %c0_16], %17 {strides = array<i32>} : memref<16x128xf32, #tpu.memory_space<vmem>>, vector<16x128xf32>,
    } else {
    }
    return
  }
  func.func @transform_0(%arg0: i32, %arg1: i32, %arg2: i32) -> (i32, i32) {
    %c0_i32 = arith.constant 0 : i32
    return %arg0, %arg2 : i32, i32
  }
  func.func @transform_1(%arg0: i32, %arg1: i32, %arg2: i32) -> (i32, i32) {
    %c0_i32 = arith.constant 0 : i32
    return %arg2, %arg1 : i32, i32
  }
  func.func @transform_2(%arg0: i32, %arg1: i32, %arg2: i32) -> (i32, i32) {
    %c0_i32 = arith.constant 0 : i32
    %c0_i32_0 = arith.constant 0 : i32
    return %c0_i32, %arg1 : i32, i32
  }
  func.func @transform_3(%arg0: i32, %arg1: i32, %arg2: i32) -> (i32, i32) {
    %c0_i32 = arith.constant 0 : i32
    return %arg0, %arg1 : i32, i32
  }
}

module attributes {stable_mosaic.version = 11 : i64} {
  func.func @_mm_bias_kernel(%arg0: i32, %arg1: i32, %arg2: i32, %arg3: memref<8x384xbf16, #tpu.memory_space<vmem>>, %arg4: memref<384x128xbf16, #tpu.memory_space<vmem>>, %arg5: memref<1x128xf32, #tpu.memory_space<vmem>>, %arg6: memref<8x128xf32, #tpu.memory_space<vmem>>, %arg7: memref<8x128xf32, #tpu.memory_space<vmem>>) attributes {dimension_semantics = [#tpu.dimension_semantics<parallel>, #tpu.dimension_semantics<parallel>, #tpu.dimension_semantics<arbitrary>], iteration_bounds = array<i64: 1, 1, 1>, scalar_prefetch = 0 : i64, scratch_operands = 1 : i64, tpu.core_type = #tpu.core_type<tc>, window_params = [{transform_indices = @transform_0, window_bounds = array<i64: 8, 384>}, {transform_indices = @transform_1, window_bounds = array<i64: 384, 128>}, {transform_indices = @transform_2, window_bounds = array<i64: 1, 128>}, {transform_indices = @transform_3, window_bounds = array<i64: 8, 128>}]} {
    %c0_i32 = arith.constant 0 : i32
    %0 = arith.cmpi eq, %arg2, %c0_i32 : i32
    %1 = arith.extui %0 : i1 to i32
    %c0_i32_0 = arith.constant 0 : i32
    %2 = arith.cmpi ne, %1, %c0_i32_0 : i32
    scf.if %2 {
      %cst_10 = arith.constant 0.000000e+00 : f32
      %12 = vector.broadcast %cst_10 : f32 to vector<8x128xf32>
      %c0_11 = arith.constant 0 : index
      %c0_12 = arith.constant 0 : index
      %13 = vector.load %arg7[%c0_11, %c0_12] : memref<8x128xf32, #tpu.memory_space<vmem>>, vector<8x128xf32>
      tpu.vector_store %arg7[%c0_11, %c0_12], %12 {strides = array<i32>} : memref<8x128xf32, #tpu.memory_space<vmem>>, vector<8x128xf32>,
    } else {
    }
    %c0 = arith.constant 0 : index
    %c0_1 = arith.constant 0 : index
    %3 = vector.load %arg7[%c0, %c0_1] : memref<8x128xf32, #tpu.memory_space<vmem>>, vector<8x128xf32>
    %c0_2 = arith.constant 0 : index
    %c0_3 = arith.constant 0 : index
    %4 = vector.load %arg3[%c0_2, %c0_3] : memref<8x384xbf16, #tpu.memory_space<vmem>>, vector<8x384xbf16>
    %c0_4 = arith.constant 0 : index
    %c0_5 = arith.constant 0 : index
    %5 = vector.load %arg4[%c0_4, %c0_5] : memref<384x128xbf16, #tpu.memory_space<vmem>>, vector<384x128xbf16>
    %cst = arith.constant dense<0.000000e+00> : vector<8x128xf32>
    %6 = tpu.matmul %4, %5, %cst {dimension_numbers = #tpu.dot_dimension_numbers<[1], [0], [0], [1], [0, 0, 1, 1], [], []>} : vector<8x384xbf16>, vector<384x128xbf16>, vector<8x128xf32> -> vector<8x128xf32>
    %7 = arith.addf %3, %6 : vector<8x128xf32>
    %c0_6 = arith.constant 0 : index
    %c0_7 = arith.constant 0 : index
    %8 = vector.load %arg7[%c0_6, %c0_7] : memref<8x128xf32, #tpu.memory_space<vmem>>, vector<8x128xf32>
    tpu.vector_store %arg7[%c0_6, %c0_7], %7 {strides = array<i32>} : memref<8x128xf32, #tpu.memory_space<vmem>>, vector<8x128xf32>,
    %c0_i32_8 = arith.constant 0 : i32
    %9 = arith.cmpi eq, %arg2, %c0_i32_8 : i32
    %10 = arith.extui %9 : i1 to i32
    %c0_i32_9 = arith.constant 0 : i32
    %11 = arith.cmpi ne, %10, %c0_i32_9 : i32
    scf.if %11 {
      %c0_10 = arith.constant 0 : index
      %c0_11 = arith.constant 0 : index
      %12 = vector.load %arg7[%c0_10, %c0_11] : memref<8x128xf32, #tpu.memory_space<vmem>>, vector<8x128xf32>
      %c0_12 = arith.constant 0 : index
      %c0_13 = arith.constant 0 : index
      %13 = vector.load %arg5[%c0_12, %c0_13] : memref<1x128xf32, #tpu.memory_space<vmem>>, vector<1x128xf32>
      %14 = vector.broadcast %13 : vector<1x128xf32> to vector<8x128xf32>
      %15 = arith.addf %12, %14 : vector<8x128xf32>
      %cst_14 = arith.constant 0.000000e+00 : f32
      %16 = vector.broadcast %cst_14 : f32 to vector<8x128xf32>
      %17 = arith.maximumf %15, %16 : vector<8x128xf32>
      %c0_15 = arith.constant 0 : index
      %c0_16 = arith.constant 0 : index
      %18 = vector.load %arg6[%c0_15, %c0_16] : memref<8x128xf32, #tpu.memory_space<vmem>>, vector<8x128xf32>
      tpu.vector_store %arg6[%c0_15, %c0_16], %17 {strides = array<i32>} : memref<8x128xf32, #tpu.memory_space<vmem>>, vector<8x128xf32>,
    } else {
    }
    return
  }
  func.func @transform_0(%arg0: i32, %arg1: i32, %arg2: i32) -> (i32, i32) {
    %c0_i32 = arith.constant 0 : i32
    return %arg0, %arg2 : i32, i32
  }
  func.func @transform_1(%arg0: i32, %arg1: i32, %arg2: i32) -> (i32, i32) {
    %c0_i32 = arith.constant 0 : i32
    return %arg2, %arg1 : i32, i32
  }
  func.func @transform_2(%arg0: i32, %arg1: i32, %arg2: i32) -> (i32, i32) {
    %c0_i32 = arith.constant 0 : i32
    %c0_i32_0 = arith.constant 0 : i32
    return %c0_i32, %arg1 : i32, i32
  }
  func.func @transform_3(%arg0: i32, %arg1: i32, %arg2: i32) -> (i32, i32) {
    %c0_i32 = arith.constant 0 : i32
    return %arg0, %arg1 : i32, i32
  }
}

module attributes {stable_mosaic.version = 11 : i64} {
  func.func @_mm_bias_kernel(%arg0: i32, %arg1: i32, %arg2: i32, %arg3: memref<32x128xbf16, #tpu.memory_space<vmem>>, %arg4: memref<128x256xbf16, #tpu.memory_space<vmem>>, %arg5: memref<1x256xf32, #tpu.memory_space<vmem>>, %arg6: memref<32x256xf32, #tpu.memory_space<vmem>>, %arg7: memref<32x256xf32, #tpu.memory_space<vmem>>) attributes {dimension_semantics = [#tpu.dimension_semantics<parallel>, #tpu.dimension_semantics<parallel>, #tpu.dimension_semantics<arbitrary>], iteration_bounds = array<i64: 1, 4, 1>, scalar_prefetch = 0 : i64, scratch_operands = 1 : i64, tpu.core_type = #tpu.core_type<tc>, window_params = [{transform_indices = @transform_0, window_bounds = array<i64: 32, 128>}, {transform_indices = @transform_1, window_bounds = array<i64: 128, 256>}, {transform_indices = @transform_2, window_bounds = array<i64: 1, 256>}, {transform_indices = @transform_3, window_bounds = array<i64: 32, 256>}]} {
    %c0_i32 = arith.constant 0 : i32
    %0 = arith.cmpi eq, %arg2, %c0_i32 : i32
    %1 = arith.extui %0 : i1 to i32
    %c0_i32_0 = arith.constant 0 : i32
    %2 = arith.cmpi ne, %1, %c0_i32_0 : i32
    scf.if %2 {
      %cst_10 = arith.constant 0.000000e+00 : f32
      %12 = vector.broadcast %cst_10 : f32 to vector<32x256xf32>
      %c0_11 = arith.constant 0 : index
      %c0_12 = arith.constant 0 : index
      %13 = vector.load %arg7[%c0_11, %c0_12] : memref<32x256xf32, #tpu.memory_space<vmem>>, vector<32x256xf32>
      tpu.vector_store %arg7[%c0_11, %c0_12], %12 {strides = array<i32>} : memref<32x256xf32, #tpu.memory_space<vmem>>, vector<32x256xf32>,
    } else {
    }
    %c0 = arith.constant 0 : index
    %c0_1 = arith.constant 0 : index
    %3 = vector.load %arg7[%c0, %c0_1] : memref<32x256xf32, #tpu.memory_space<vmem>>, vector<32x256xf32>
    %c0_2 = arith.constant 0 : index
    %c0_3 = arith.constant 0 : index
    %4 = vector.load %arg3[%c0_2, %c0_3] : memref<32x128xbf16, #tpu.memory_space<vmem>>, vector<32x128xbf16>
    %c0_4 = arith.constant 0 : index
    %c0_5 = arith.constant 0 : index
    %5 = vector.load %arg4[%c0_4, %c0_5] : memref<128x256xbf16, #tpu.memory_space<vmem>>, vector<128x256xbf16>
    %cst = arith.constant dense<0.000000e+00> : vector<32x256xf32>
    %6 = tpu.matmul %4, %5, %cst {dimension_numbers = #tpu.dot_dimension_numbers<[1], [0], [0], [1], [0, 0, 1, 1], [], []>} : vector<32x128xbf16>, vector<128x256xbf16>, vector<32x256xf32> -> vector<32x256xf32>
    %7 = arith.addf %3, %6 : vector<32x256xf32>
    %c0_6 = arith.constant 0 : index
    %c0_7 = arith.constant 0 : index
    %8 = vector.load %arg7[%c0_6, %c0_7] : memref<32x256xf32, #tpu.memory_space<vmem>>, vector<32x256xf32>
    tpu.vector_store %arg7[%c0_6, %c0_7], %7 {strides = array<i32>} : memref<32x256xf32, #tpu.memory_space<vmem>>, vector<32x256xf32>,
    %c0_i32_8 = arith.constant 0 : i32
    %9 = arith.cmpi eq, %arg2, %c0_i32_8 : i32
    %10 = arith.extui %9 : i1 to i32
    %c0_i32_9 = arith.constant 0 : i32
    %11 = arith.cmpi ne, %10, %c0_i32_9 : i32
    scf.if %11 {
      %c0_10 = arith.constant 0 : index
      %c0_11 = arith.constant 0 : index
      %12 = vector.load %arg7[%c0_10, %c0_11] : memref<32x256xf32, #tpu.memory_space<vmem>>, vector<32x256xf32>
      %c0_12 = arith.constant 0 : index
      %c0_13 = arith.constant 0 : index
      %13 = vector.load %arg5[%c0_12, %c0_13] : memref<1x256xf32, #tpu.memory_space<vmem>>, vector<1x256xf32>
      %14 = vector.broadcast %13 : vector<1x256xf32> to vector<32x256xf32>
      %15 = arith.addf %12, %14 : vector<32x256xf32>
      %c0_14 = arith.constant 0 : index
      %c0_15 = arith.constant 0 : index
      %16 = vector.load %arg6[%c0_14, %c0_15] : memref<32x256xf32, #tpu.memory_space<vmem>>, vector<32x256xf32>
      tpu.vector_store %arg6[%c0_14, %c0_15], %15 {strides = array<i32>} : memref<32x256xf32, #tpu.memory_space<vmem>>, vector<32x256xf32>,
    } else {
    }
    return
  }
  func.func @transform_0(%arg0: i32, %arg1: i32, %arg2: i32) -> (i32, i32) {
    %c0_i32 = arith.constant 0 : i32
    return %arg0, %arg2 : i32, i32
  }
  func.func @transform_1(%arg0: i32, %arg1: i32, %arg2: i32) -> (i32, i32) {
    %c0_i32 = arith.constant 0 : i32
    return %arg2, %arg1 : i32, i32
  }
  func.func @transform_2(%arg0: i32, %arg1: i32, %arg2: i32) -> (i32, i32) {
    %c0_i32 = arith.constant 0 : i32
    %c0_i32_0 = arith.constant 0 : i32
    return %c0_i32, %arg1 : i32, i32
  }
  func.func @transform_3(%arg0: i32, %arg1: i32, %arg2: i32) -> (i32, i32) {
    %c0_i32 = arith.constant 0 : i32
    return %arg0, %arg1 : i32, i32
  }
}

module attributes {stable_mosaic.version = 11 : i64} {
  func.func @_mm_bias_kernel(%arg0: i32, %arg1: i32, %arg2: i32, %arg3: memref<32x256xbf16, #tpu.memory_space<vmem>>, %arg4: memref<256x256xbf16, #tpu.memory_space<vmem>>, %arg5: memref<1x256xf32, #tpu.memory_space<vmem>>, %arg6: memref<32x256xf32, #tpu.memory_space<vmem>>, %arg7: memref<32x256xf32, #tpu.memory_space<vmem>>) attributes {dimension_semantics = [#tpu.dimension_semantics<parallel>, #tpu.dimension_semantics<parallel>, #tpu.dimension_semantics<arbitrary>], iteration_bounds = array<i64: 1, 4, 1>, scalar_prefetch = 0 : i64, scratch_operands = 1 : i64, tpu.core_type = #tpu.core_type<tc>, window_params = [{transform_indices = @transform_0, window_bounds = array<i64: 32, 256>}, {transform_indices = @transform_1, window_bounds = array<i64: 256, 256>}, {transform_indices = @transform_2, window_bounds = array<i64: 1, 256>}, {transform_indices = @transform_3, window_bounds = array<i64: 32, 256>}]} {
    %c0_i32 = arith.constant 0 : i32
    %0 = arith.cmpi eq, %arg2, %c0_i32 : i32
    %1 = arith.extui %0 : i1 to i32
    %c0_i32_0 = arith.constant 0 : i32
    %2 = arith.cmpi ne, %1, %c0_i32_0 : i32
    scf.if %2 {
      %cst_10 = arith.constant 0.000000e+00 : f32
      %12 = vector.broadcast %cst_10 : f32 to vector<32x256xf32>
      %c0_11 = arith.constant 0 : index
      %c0_12 = arith.constant 0 : index
      %13 = vector.load %arg7[%c0_11, %c0_12] : memref<32x256xf32, #tpu.memory_space<vmem>>, vector<32x256xf32>
      tpu.vector_store %arg7[%c0_11, %c0_12], %12 {strides = array<i32>} : memref<32x256xf32, #tpu.memory_space<vmem>>, vector<32x256xf32>,
    } else {
    }
    %c0 = arith.constant 0 : index
    %c0_1 = arith.constant 0 : index
    %3 = vector.load %arg7[%c0, %c0_1] : memref<32x256xf32, #tpu.memory_space<vmem>>, vector<32x256xf32>
    %c0_2 = arith.constant 0 : index
    %c0_3 = arith.constant 0 : index
    %4 = vector.load %arg3[%c0_2, %c0_3] : memref<32x256xbf16, #tpu.memory_space<vmem>>, vector<32x256xbf16>
    %c0_4 = arith.constant 0 : index
    %c0_5 = arith.constant 0 : index
    %5 = vector.load %arg4[%c0_4, %c0_5] : memref<256x256xbf16, #tpu.memory_space<vmem>>, vector<256x256xbf16>
    %cst = arith.constant dense<0.000000e+00> : vector<32x256xf32>
    %6 = tpu.matmul %4, %5, %cst {dimension_numbers = #tpu.dot_dimension_numbers<[1], [0], [0], [1], [0, 0, 1, 1], [], []>} : vector<32x256xbf16>, vector<256x256xbf16>, vector<32x256xf32> -> vector<32x256xf32>
    %7 = arith.addf %3, %6 : vector<32x256xf32>
    %c0_6 = arith.constant 0 : index
    %c0_7 = arith.constant 0 : index
    %8 = vector.load %arg7[%c0_6, %c0_7] : memref<32x256xf32, #tpu.memory_space<vmem>>, vector<32x256xf32>
    tpu.vector_store %arg7[%c0_6, %c0_7], %7 {strides = array<i32>} : memref<32x256xf32, #tpu.memory_space<vmem>>, vector<32x256xf32>,
    %c0_i32_8 = arith.constant 0 : i32
    %9 = arith.cmpi eq, %arg2, %c0_i32_8 : i32
    %10 = arith.extui %9 : i1 to i32
    %c0_i32_9 = arith.constant 0 : i32
    %11 = arith.cmpi ne, %10, %c0_i32_9 : i32
    scf.if %11 {
      %c0_10 = arith.constant 0 : index
      %c0_11 = arith.constant 0 : index
      %12 = vector.load %arg7[%c0_10, %c0_11] : memref<32x256xf32, #tpu.memory_space<vmem>>, vector<32x256xf32>
      %c0_12 = arith.constant 0 : index
      %c0_13 = arith.constant 0 : index
      %13 = vector.load %arg5[%c0_12, %c0_13] : memref<1x256xf32, #tpu.memory_space<vmem>>, vector<1x256xf32>
      %14 = vector.broadcast %13 : vector<1x256xf32> to vector<32x256xf32>
      %15 = arith.addf %12, %14 : vector<32x256xf32>
      %c0_14 = arith.constant 0 : index
      %c0_15 = arith.constant 0 : index
      %16 = vector.load %arg6[%c0_14, %c0_15] : memref<32x256xf32, #tpu.memory_space<vmem>>, vector<32x256xf32>
      tpu.vector_store %arg6[%c0_14, %c0_15], %15 {strides = array<i32>} : memref<32x256xf32, #tpu.memory_space<vmem>>, vector<32x256xf32>,
    } else {
    }
    return
  }
  func.func @transform_0(%arg0: i32, %arg1: i32, %arg2: i32) -> (i32, i32) {
    %c0_i32 = arith.constant 0 : i32
    return %arg0, %arg2 : i32, i32
  }
  func.func @transform_1(%arg0: i32, %arg1: i32, %arg2: i32) -> (i32, i32) {
    %c0_i32 = arith.constant 0 : i32
    return %arg2, %arg1 : i32, i32
  }
  func.func @transform_2(%arg0: i32, %arg1: i32, %arg2: i32) -> (i32, i32) {
    %c0_i32 = arith.constant 0 : i32
    %c0_i32_0 = arith.constant 0 : i32
    return %c0_i32, %arg1 : i32, i32
  }
  func.func @transform_3(%arg0: i32, %arg1: i32, %arg2: i32) -> (i32, i32) {
    %c0_i32 = arith.constant 0 : i32
    return %arg0, %arg1 : i32, i32
  }
}

module attributes {stable_mosaic.version = 11 : i64} {
  func.func @_bilstm_chunk_kernel(%arg0: i32, %arg1: memref<4x8x512xf32, #tpu.memory_space<vmem>>, %arg2: memref<4x8x512xf32, #tpu.memory_space<vmem>>, %arg3: memref<256x1024xbf16, #tpu.memory_space<vmem>>, %arg4: memref<8x1xi32, #tpu.memory_space<vmem>>, %arg5: memref<4x8x128xf32, #tpu.memory_space<vmem>>, %arg6: memref<4x8x128xf32, #tpu.memory_space<vmem>>, %arg7: memref<8x256xf32, #tpu.memory_space<vmem>>, %arg8: memref<8x256xf32, #tpu.memory_space<vmem>>) attributes {dimension_semantics = [#tpu.dimension_semantics<arbitrary>], iteration_bounds = array<i64: 1>, scalar_prefetch = 0 : i64, scratch_operands = 2 : i64, tpu.core_type = #tpu.core_type<tc>, window_params = [{transform_indices = @transform_0, window_bounds = array<i64: 4, 8, 512>}, {transform_indices = @transform_1, window_bounds = array<i64: 4, 8, 512>}, {pipeline_mode = #tpu.pipeline_mode<synchronous>, transform_indices = @transform_2, window_bounds = array<i64: 256, 1024>}, {pipeline_mode = #tpu.pipeline_mode<synchronous>, transform_indices = @transform_3, window_bounds = array<i64: 8, 1>}, {transform_indices = @transform_4, window_bounds = array<i64: 4, 8, 128>}, {transform_indices = @transform_5, window_bounds = array<i64: 4, 8, 128>}]} {
    %c0_i32 = arith.constant 0 : i32
    %0 = arith.cmpi eq, %arg0, %c0_i32 : i32
    %1 = arith.extui %0 : i1 to i32
    %c0_i32_0 = arith.constant 0 : i32
    %2 = arith.cmpi ne, %1, %c0_i32_0 : i32
    scf.if %2 {
      %cst_159 = arith.constant 0.000000e+00 : f32
      %445 = vector.broadcast %cst_159 : f32 to vector<8x256xf32>
      %c0_160 = arith.constant 0 : index
      %c0_161 = arith.constant 0 : index
      %446 = vector.load %arg7[%c0_160, %c0_161] : memref<8x256xf32, #tpu.memory_space<vmem>>, vector<8x256xf32>
      tpu.vector_store %arg7[%c0_160, %c0_161], %445 {strides = array<i32>} : memref<8x256xf32, #tpu.memory_space<vmem>>, vector<8x256xf32>,
      %cst_162 = arith.constant 0.000000e+00 : f32
      %447 = vector.broadcast %cst_162 : f32 to vector<8x256xf32>
      %c0_163 = arith.constant 0 : index
      %c0_164 = arith.constant 0 : index
      %448 = vector.load %arg8[%c0_163, %c0_164] : memref<8x256xf32, #tpu.memory_space<vmem>>, vector<8x256xf32>
      tpu.vector_store %arg8[%c0_163, %c0_164], %447 {strides = array<i32>} : memref<8x256xf32, #tpu.memory_space<vmem>>, vector<8x256xf32>,
    } else {
    }
    %c0 = arith.constant 0 : index
    %c0_1 = arith.constant 0 : index
    %3 = vector.load %arg4[%c0, %c0_1] : memref<8x1xi32, #tpu.memory_space<vmem>>, vector<8x1xi32>
    %c0_2 = arith.constant 0 : index
    %c0_3 = arith.constant 0 : index
    %4 = vector.load %arg3[%c0_2, %c0_3] : memref<256x1024xbf16, #tpu.memory_space<vmem>>, vector<256x1024xbf16>
    %c0_i32_4 = arith.constant 0 : i32
    %c4_i32 = arith.constant 4 : i32
    %5 = arith.muli %arg0, %c4_i32 : i32
    %6 = arith.addi %5, %c0_i32_4 : i32
    %c3_i32 = arith.constant 3 : i32
    %7 = arith.subi %c3_i32, %6 : i32
    %c0_5 = arith.constant 0 : index
    %c0_6 = arith.constant 0 : index
    %8 = vector.load %arg7[%c0_5, %c0_6] : memref<8x256xf32, #tpu.memory_space<vmem>>, vector<8x256xf32>
    %9 = arith.truncf %8 : vector<8x256xf32> to vector<8x256xbf16>
    %cst = arith.constant dense<0.000000e+00> : vector<8x1024xf32>
    %10 = tpu.matmul %9, %4, %cst {dimension_numbers = #tpu.dot_dimension_numbers<[1], [0], [0], [1], [0, 0, 1, 1], [], []>} : vector<8x256xbf16>, vector<256x1024xbf16>, vector<8x1024xf32> -> vector<8x1024xf32>
    %11 = arith.index_cast %c0_i32_4 : i32 to index
    %c0_7 = arith.constant 0 : index
    %c0_8 = arith.constant 0 : index
    %12 = vector.load %arg1[%11, %c0_7, %c0_8] : memref<4x8x512xf32, #tpu.memory_space<vmem>>, vector<1x8x512xf32>
    %13 = vector.shape_cast %12 : vector<1x8x512xf32> to vector<8x512xf32>
    %14 = vector.extract_strided_slice %10 {offsets = [0, 0], sizes = [8, 512], strides = [1, 1]} : vector<8x1024xf32> to vector<8x512xf32>
    %15 = arith.addf %13, %14 : vector<8x512xf32>
    %c3_i32_9 = arith.constant 3 : i32
    %16 = arith.subi %c3_i32_9, %c0_i32_4 : i32
    %17 = arith.index_cast %16 : i32 to index
    %c0_10 = arith.constant 0 : index
    %c0_11 = arith.constant 0 : index
    %18 = vector.load %arg2[%17, %c0_10, %c0_11] : memref<4x8x512xf32, #tpu.memory_space<vmem>>, vector<1x8x512xf32>
    %19 = vector.shape_cast %18 : vector<1x8x512xf32> to vector<8x512xf32>
    %20 = vector.extract_strided_slice %10 {offsets = [0, 512], sizes = [8, 512], strides = [1, 1]} : vector<8x1024xf32> to vector<8x512xf32>
    %21 = arith.addf %19, %20 : vector<8x512xf32>
    %c0_12 = arith.constant 0 : index
    %c0_13 = arith.constant 0 : index
    %22 = vector.load %arg8[%c0_12, %c0_13] : memref<8x256xf32, #tpu.memory_space<vmem>>, vector<8x128xf32>
    %23 = vector.extract_strided_slice %15 {offsets = [0, 0], sizes = [8, 128], strides = [1, 1]} : vector<8x512xf32> to vector<8x128xf32>
    %24 = arith.negf %23 : vector<8x128xf32>
    %25 = math.exp %24 : vector<8x128xf32>
    %cst_14 = arith.constant 1.000000e+00 : f32
    %26 = vector.broadcast %cst_14 : f32 to vector<8x128xf32>
    %27 = arith.addf %26, %25 : vector<8x128xf32>
    %28 = arith.divf %26, %27 : vector<8x128xf32>
    %29 = vector.extract_strided_slice %15 {offsets = [0, 128], sizes = [8, 128], strides = [1, 1]} : vector<8x512xf32> to vector<8x128xf32>
    %30 = arith.negf %29 : vector<8x128xf32>
    %31 = math.exp %30 : vector<8x128xf32>
    %cst_15 = arith.constant 1.000000e+00 : f32
    %32 = vector.broadcast %cst_15 : f32 to vector<8x128xf32>
    %33 = arith.addf %32, %31 : vector<8x128xf32>
    %34 = arith.divf %32, %33 : vector<8x128xf32>
    %35 = vector.extract_strided_slice %15 {offsets = [0, 256], sizes = [8, 128], strides = [1, 1]} : vector<8x512xf32> to vector<8x128xf32>
    %36 = math.tanh %35 : vector<8x128xf32>
    %37 = vector.extract_strided_slice %15 {offsets = [0, 384], sizes = [8, 128], strides = [1, 1]} : vector<8x512xf32> to vector<8x128xf32>
    %38 = arith.negf %37 : vector<8x128xf32>
    %39 = math.exp %38 : vector<8x128xf32>
    %cst_16 = arith.constant 1.000000e+00 : f32
    %40 = vector.broadcast %cst_16 : f32 to vector<8x128xf32>
    %41 = arith.addf %40, %39 : vector<8x128xf32>
    %42 = arith.divf %40, %41 : vector<8x128xf32>
    %43 = arith.mulf %34, %22 : vector<8x128xf32>
    %44 = arith.mulf %28, %36 : vector<8x128xf32>
    %45 = arith.addf %43, %44 : vector<8x128xf32>
    %46 = math.tanh %45 : vector<8x128xf32>
    %47 = arith.mulf %42, %46 : vector<8x128xf32>
    %c0_17 = arith.constant 0 : index
    %c128 = arith.constant 128 : index
    %48 = vector.load %arg8[%c0_17, %c128] : memref<8x256xf32, #tpu.memory_space<vmem>>, vector<8x128xf32>
    %49 = vector.extract_strided_slice %21 {offsets = [0, 0], sizes = [8, 128], strides = [1, 1]} : vector<8x512xf32> to vector<8x128xf32>
    %50 = arith.negf %49 : vector<8x128xf32>
    %51 = math.exp %50 : vector<8x128xf32>
    %cst_18 = arith.constant 1.000000e+00 : f32
    %52 = vector.broadcast %cst_18 : f32 to vector<8x128xf32>
    %53 = arith.addf %52, %51 : vector<8x128xf32>
    %54 = arith.divf %52, %53 : vector<8x128xf32>
    %55 = vector.extract_strided_slice %21 {offsets = [0, 128], sizes = [8, 128], strides = [1, 1]} : vector<8x512xf32> to vector<8x128xf32>
    %56 = arith.negf %55 : vector<8x128xf32>
    %57 = math.exp %56 : vector<8x128xf32>
    %cst_19 = arith.constant 1.000000e+00 : f32
    %58 = vector.broadcast %cst_19 : f32 to vector<8x128xf32>
    %59 = arith.addf %58, %57 : vector<8x128xf32>
    %60 = arith.divf %58, %59 : vector<8x128xf32>
    %61 = vector.extract_strided_slice %21 {offsets = [0, 256], sizes = [8, 128], strides = [1, 1]} : vector<8x512xf32> to vector<8x128xf32>
    %62 = math.tanh %61 : vector<8x128xf32>
    %63 = vector.extract_strided_slice %21 {offsets = [0, 384], sizes = [8, 128], strides = [1, 1]} : vector<8x512xf32> to vector<8x128xf32>
    %64 = arith.negf %63 : vector<8x128xf32>
    %65 = math.exp %64 : vector<8x128xf32>
    %cst_20 = arith.constant 1.000000e+00 : f32
    %66 = vector.broadcast %cst_20 : f32 to vector<8x128xf32>
    %67 = arith.addf %66, %65 : vector<8x128xf32>
    %68 = arith.divf %66, %67 : vector<8x128xf32>
    %69 = arith.mulf %60, %48 : vector<8x128xf32>
    %70 = arith.mulf %54, %62 : vector<8x128xf32>
    %71 = arith.addf %69, %70 : vector<8x128xf32>
    %72 = math.tanh %71 : vector<8x128xf32>
    %73 = arith.mulf %68, %72 : vector<8x128xf32>
    %74 = vector.broadcast %6 : i32 to vector<8x1xi32>
    %75 = arith.cmpi sgt, %3, %74 : vector<8x1xi32>
    %76 = vector.broadcast %7 : i32 to vector<8x1xi32>
    %77 = arith.cmpi sgt, %3, %76 : vector<8x1xi32>
    %78 = vector.extract_strided_slice %8 {offsets = [0, 0], sizes = [8, 128], strides = [1, 1]} : vector<8x256xf32> to vector<8x128xf32>
    %79 = vector.shape_cast %75 : vector<8x1xi1> to vector<8x1xi1>
    %80 = vector.broadcast %79 : vector<8x1xi1> to vector<8x128xi1>
    %81 = arith.select %80, %47, %78 : vector<8x128xi1>, vector<8x128xf32>
    %c0_21 = arith.constant 0 : index
    %c0_22 = arith.constant 0 : index
    %82 = vector.load %arg7[%c0_21, %c0_22] : memref<8x256xf32, #tpu.memory_space<vmem>>, vector<8x128xf32>
    tpu.vector_store %arg7[%c0_21, %c0_22], %81 {strides = array<i32>} : memref<8x256xf32, #tpu.memory_space<vmem>>, vector<8x128xf32>,
    %83 = vector.extract_strided_slice %8 {offsets = [0, 128], sizes = [8, 128], strides = [1, 1]} : vector<8x256xf32> to vector<8x128xf32>
    %84 = vector.shape_cast %77 : vector<8x1xi1> to vector<8x1xi1>
    %85 = vector.broadcast %84 : vector<8x1xi1> to vector<8x128xi1>
    %86 = arith.select %85, %73, %83 : vector<8x128xi1>, vector<8x128xf32>
    %c0_23 = arith.constant 0 : index
    %c128_24 = arith.constant 128 : index
    %87 = vector.load %arg7[%c0_23, %c128_24] : memref<8x256xf32, #tpu.memory_space<vmem>>, vector<8x128xf32>
    tpu.vector_store %arg7[%c0_23, %c128_24], %86 {strides = array<i32>} : memref<8x256xf32, #tpu.memory_space<vmem>>, vector<8x128xf32>,
    %c0_25 = arith.constant 0 : index
    %c0_26 = arith.constant 0 : index
    %88 = vector.load %arg8[%c0_25, %c0_26] : memref<8x256xf32, #tpu.memory_space<vmem>>, vector<8x128xf32>
    %89 = vector.shape_cast %75 : vector<8x1xi1> to vector<8x1xi1>
    %90 = vector.broadcast %89 : vector<8x1xi1> to vector<8x128xi1>
    %91 = arith.select %90, %45, %88 : vector<8x128xi1>, vector<8x128xf32>
    %c0_27 = arith.constant 0 : index
    %c0_28 = arith.constant 0 : index
    %92 = vector.load %arg8[%c0_27, %c0_28] : memref<8x256xf32, #tpu.memory_space<vmem>>, vector<8x128xf32>
    tpu.vector_store %arg8[%c0_27, %c0_28], %91 {strides = array<i32>} : memref<8x256xf32, #tpu.memory_space<vmem>>, vector<8x128xf32>,
    %c0_29 = arith.constant 0 : index
    %c128_30 = arith.constant 128 : index
    %93 = vector.load %arg8[%c0_29, %c128_30] : memref<8x256xf32, #tpu.memory_space<vmem>>, vector<8x128xf32>
    %94 = vector.shape_cast %77 : vector<8x1xi1> to vector<8x1xi1>
    %95 = vector.broadcast %94 : vector<8x1xi1> to vector<8x128xi1>
    %96 = arith.select %95, %71, %93 : vector<8x128xi1>, vector<8x128xf32>
    %c0_31 = arith.constant 0 : index
    %c128_32 = arith.constant 128 : index
    %97 = vector.load %arg8[%c0_31, %c128_32] : memref<8x256xf32, #tpu.memory_space<vmem>>, vector<8x128xf32>
    tpu.vector_store %arg8[%c0_31, %c128_32], %96 {strides = array<i32>} : memref<8x256xf32, #tpu.memory_space<vmem>>, vector<8x128xf32>,
    %cst_33 = arith.constant 0.000000e+00 : f32
    %98 = vector.shape_cast %75 : vector<8x1xi1> to vector<8x1xi1>
    %99 = vector.broadcast %98 : vector<8x1xi1> to vector<8x128xi1>
    %100 = vector.broadcast %cst_33 : f32 to vector<8x128xf32>
    %101 = arith.select %99, %47, %100 : vector<8x128xi1>, vector<8x128xf32>
    %102 = arith.index_cast %c0_i32_4 : i32 to index
    %c0_34 = arith.constant 0 : index
    %c0_35 = arith.constant 0 : index
    %103 = vector.load %arg5[%102, %c0_34, %c0_35] : memref<4x8x128xf32, #tpu.memory_space<vmem>>, vector<1x8x128xf32>
    %104 = vector.shape_cast %103 : vector<1x8x128xf32> to vector<8x128xf32>
    %105 = vector.shape_cast %101 : vector<8x128xf32> to vector<1x8x128xf32>
    tpu.vector_store %arg5[%102, %c0_34, %c0_35], %105 {strides = array<i32>} : memref<4x8x128xf32, #tpu.memory_space<vmem>>, vector<1x8x128xf32>,
    %cst_36 = arith.constant 0.000000e+00 : f32
    %106 = vector.shape_cast %77 : vector<8x1xi1> to vector<8x1xi1>
    %107 = vector.broadcast %106 : vector<8x1xi1> to vector<8x128xi1>
    %108 = vector.broadcast %cst_36 : f32 to vector<8x128xf32>
    %109 = arith.select %107, %73, %108 : vector<8x128xi1>, vector<8x128xf32>
    %c3_i32_37 = arith.constant 3 : i32
    %110 = arith.subi %c3_i32_37, %c0_i32_4 : i32
    %111 = arith.index_cast %110 : i32 to index
    %c0_38 = arith.constant 0 : index
    %c0_39 = arith.constant 0 : index
    %112 = vector.load %arg6[%111, %c0_38, %c0_39] : memref<4x8x128xf32, #tpu.memory_space<vmem>>, vector<1x8x128xf32>
    %113 = vector.shape_cast %112 : vector<1x8x128xf32> to vector<8x128xf32>
    %114 = vector.shape_cast %109 : vector<8x128xf32> to vector<1x8x128xf32>
    tpu.vector_store %arg6[%111, %c0_38, %c0_39], %114 {strides = array<i32>} : memref<4x8x128xf32, #tpu.memory_space<vmem>>, vector<1x8x128xf32>,
    %c1_i32 = arith.constant 1 : i32
    %c4_i32_40 = arith.constant 4 : i32
    %115 = arith.muli %arg0, %c4_i32_40 : i32
    %116 = arith.addi %115, %c1_i32 : i32
    %c3_i32_41 = arith.constant 3 : i32
    %117 = arith.subi %c3_i32_41, %116 : i32
    %c0_42 = arith.constant 0 : index
    %c0_43 = arith.constant 0 : index
    %118 = vector.load %arg7[%c0_42, %c0_43] : memref<8x256xf32, #tpu.memory_space<vmem>>, vector<8x256xf32>
    %119 = arith.truncf %118 : vector<8x256xf32> to vector<8x256xbf16>
    %cst_44 = arith.constant dense<0.000000e+00> : vector<8x1024xf32>
    %120 = tpu.matmul %119, %4, %cst_44 {dimension_numbers = #tpu.dot_dimension_numbers<[1], [0], [0], [1], [0, 0, 1, 1], [], []>} : vector<8x256xbf16>, vector<256x1024xbf16>, vector<8x1024xf32> -> vector<8x1024xf32>
    %121 = arith.index_cast %c1_i32 : i32 to index
    %c0_45 = arith.constant 0 : index
    %c0_46 = arith.constant 0 : index
    %122 = vector.load %arg1[%121, %c0_45, %c0_46] : memref<4x8x512xf32, #tpu.memory_space<vmem>>, vector<1x8x512xf32>
    %123 = vector.shape_cast %122 : vector<1x8x512xf32> to vector<8x512xf32>
    %124 = vector.extract_strided_slice %120 {offsets = [0, 0], sizes = [8, 512], strides = [1, 1]} : vector<8x1024xf32> to vector<8x512xf32>
    %125 = arith.addf %123, %124 : vector<8x512xf32>
    %c3_i32_47 = arith.constant 3 : i32
    %126 = arith.subi %c3_i32_47, %c1_i32 : i32
    %127 = arith.index_cast %126 : i32 to index
    %c0_48 = arith.constant 0 : index
    %c0_49 = arith.constant 0 : index
    %128 = vector.load %arg2[%127, %c0_48, %c0_49] : memref<4x8x512xf32, #tpu.memory_space<vmem>>, vector<1x8x512xf32>
    %129 = vector.shape_cast %128 : vector<1x8x512xf32> to vector<8x512xf32>
    %130 = vector.extract_strided_slice %120 {offsets = [0, 512], sizes = [8, 512], strides = [1, 1]} : vector<8x1024xf32> to vector<8x512xf32>
    %131 = arith.addf %129, %130 : vector<8x512xf32>
    %c0_50 = arith.constant 0 : index
    %c0_51 = arith.constant 0 : index
    %132 = vector.load %arg8[%c0_50, %c0_51] : memref<8x256xf32, #tpu.memory_space<vmem>>, vector<8x128xf32>
    %133 = vector.extract_strided_slice %125 {offsets = [0, 0], sizes = [8, 128], strides = [1, 1]} : vector<8x512xf32> to vector<8x128xf32>
    %134 = arith.negf %133 : vector<8x128xf32>
    %135 = math.exp %134 : vector<8x128xf32>
    %cst_52 = arith.constant 1.000000e+00 : f32
    %136 = vector.broadcast %cst_52 : f32 to vector<8x128xf32>
    %137 = arith.addf %136, %135 : vector<8x128xf32>
    %138 = arith.divf %136, %137 : vector<8x128xf32>
    %139 = vector.extract_strided_slice %125 {offsets = [0, 128], sizes = [8, 128], strides = [1, 1]} : vector<8x512xf32> to vector<8x128xf32>
    %140 = arith.negf %139 : vector<8x128xf32>
    %141 = math.exp %140 : vector<8x128xf32>
    %cst_53 = arith.constant 1.000000e+00 : f32
    %142 = vector.broadcast %cst_53 : f32 to vector<8x128xf32>
    %143 = arith.addf %142, %141 : vector<8x128xf32>
    %144 = arith.divf %142, %143 : vector<8x128xf32>
    %145 = vector.extract_strided_slice %125 {offsets = [0, 256], sizes = [8, 128], strides = [1, 1]} : vector<8x512xf32> to vector<8x128xf32>
    %146 = math.tanh %145 : vector<8x128xf32>
    %147 = vector.extract_strided_slice %125 {offsets = [0, 384], sizes = [8, 128], strides = [1, 1]} : vector<8x512xf32> to vector<8x128xf32>
    %148 = arith.negf %147 : vector<8x128xf32>
    %149 = math.exp %148 : vector<8x128xf32>
    %cst_54 = arith.constant 1.000000e+00 : f32
    %150 = vector.broadcast %cst_54 : f32 to vector<8x128xf32>
    %151 = arith.addf %150, %149 : vector<8x128xf32>
    %152 = arith.divf %150, %151 : vector<8x128xf32>
    %153 = arith.mulf %144, %132 : vector<8x128xf32>
    %154 = arith.mulf %138, %146 : vector<8x128xf32>
    %155 = arith.addf %153, %154 : vector<8x128xf32>
    %156 = math.tanh %155 : vector<8x128xf32>
    %157 = arith.mulf %152, %156 : vector<8x128xf32>
    %c0_55 = arith.constant 0 : index
    %c128_56 = arith.constant 128 : index
    %158 = vector.load %arg8[%c0_55, %c128_56] : memref<8x256xf32, #tpu.memory_space<vmem>>, vector<8x128xf32>
    %159 = vector.extract_strided_slice %131 {offsets = [0, 0], sizes = [8, 128], strides = [1, 1]} : vector<8x512xf32> to vector<8x128xf32>
    %160 = arith.negf %159 : vector<8x128xf32>
    %161 = math.exp %160 : vector<8x128xf32>
    %cst_57 = arith.constant 1.000000e+00 : f32
    %162 = vector.broadcast %cst_57 : f32 to vector<8x128xf32>
    %163 = arith.addf %162, %161 : vector<8x128xf32>
    %164 = arith.divf %162, %163 : vector<8x128xf32>
    %165 = vector.extract_strided_slice %131 {offsets = [0, 128], sizes = [8, 128], strides = [1, 1]} : vector<8x512xf32> to vector<8x128xf32>
    %166 = arith.negf %165 : vector<8x128xf32>
    %167 = math.exp %166 : vector<8x128xf32>
    %cst_58 = arith.constant 1.000000e+00 : f32
    %168 = vector.broadcast %cst_58 : f32 to vector<8x128xf32>
    %169 = arith.addf %168, %167 : vector<8x128xf32>
    %170 = arith.divf %168, %169 : vector<8x128xf32>
    %171 = vector.extract_strided_slice %131 {offsets = [0, 256], sizes = [8, 128], strides = [1, 1]} : vector<8x512xf32> to vector<8x128xf32>
    %172 = math.tanh %171 : vector<8x128xf32>
    %173 = vector.extract_strided_slice %131 {offsets = [0, 384], sizes = [8, 128], strides = [1, 1]} : vector<8x512xf32> to vector<8x128xf32>
    %174 = arith.negf %173 : vector<8x128xf32>
    %175 = math.exp %174 : vector<8x128xf32>
    %cst_59 = arith.constant 1.000000e+00 : f32
    %176 = vector.broadcast %cst_59 : f32 to vector<8x128xf32>
    %177 = arith.addf %176, %175 : vector<8x128xf32>
    %178 = arith.divf %176, %177 : vector<8x128xf32>
    %179 = arith.mulf %170, %158 : vector<8x128xf32>
    %180 = arith.mulf %164, %172 : vector<8x128xf32>
    %181 = arith.addf %179, %180 : vector<8x128xf32>
    %182 = math.tanh %181 : vector<8x128xf32>
    %183 = arith.mulf %178, %182 : vector<8x128xf32>
    %184 = vector.broadcast %116 : i32 to vector<8x1xi32>
    %185 = arith.cmpi sgt, %3, %184 : vector<8x1xi32>
    %186 = vector.broadcast %117 : i32 to vector<8x1xi32>
    %187 = arith.cmpi sgt, %3, %186 : vector<8x1xi32>
    %188 = vector.extract_strided_slice %118 {offsets = [0, 0], sizes = [8, 128], strides = [1, 1]} : vector<8x256xf32> to vector<8x128xf32>
    %189 = vector.shape_cast %185 : vector<8x1xi1> to vector<8x1xi1>
    %190 = vector.broadcast %189 : vector<8x1xi1> to vector<8x128xi1>
    %191 = arith.select %190, %157, %188 : vector<8x128xi1>, vector<8x128xf32>
    %c0_60 = arith.constant 0 : index
    %c0_61 = arith.constant 0 : index
    %192 = vector.load %arg7[%c0_60, %c0_61] : memref<8x256xf32, #tpu.memory_space<vmem>>, vector<8x128xf32>
    tpu.vector_store %arg7[%c0_60, %c0_61], %191 {strides = array<i32>} : memref<8x256xf32, #tpu.memory_space<vmem>>, vector<8x128xf32>,
    %193 = vector.extract_strided_slice %118 {offsets = [0, 128], sizes = [8, 128], strides = [1, 1]} : vector<8x256xf32> to vector<8x128xf32>
    %194 = vector.shape_cast %187 : vector<8x1xi1> to vector<8x1xi1>
    %195 = vector.broadcast %194 : vector<8x1xi1> to vector<8x128xi1>
    %196 = arith.select %195, %183, %193 : vector<8x128xi1>, vector<8x128xf32>
    %c0_62 = arith.constant 0 : index
    %c128_63 = arith.constant 128 : index
    %197 = vector.load %arg7[%c0_62, %c128_63] : memref<8x256xf32, #tpu.memory_space<vmem>>, vector<8x128xf32>
    tpu.vector_store %arg7[%c0_62, %c128_63], %196 {strides = array<i32>} : memref<8x256xf32, #tpu.memory_space<vmem>>, vector<8x128xf32>,
    %c0_64 = arith.constant 0 : index
    %c0_65 = arith.constant 0 : index
    %198 = vector.load %arg8[%c0_64, %c0_65] : memref<8x256xf32, #tpu.memory_space<vmem>>, vector<8x128xf32>
    %199 = vector.shape_cast %185 : vector<8x1xi1> to vector<8x1xi1>
    %200 = vector.broadcast %199 : vector<8x1xi1> to vector<8x128xi1>
    %201 = arith.select %200, %155, %198 : vector<8x128xi1>, vector<8x128xf32>
    %c0_66 = arith.constant 0 : index
    %c0_67 = arith.constant 0 : index
    %202 = vector.load %arg8[%c0_66, %c0_67] : memref<8x256xf32, #tpu.memory_space<vmem>>, vector<8x128xf32>
    tpu.vector_store %arg8[%c0_66, %c0_67], %201 {strides = array<i32>} : memref<8x256xf32, #tpu.memory_space<vmem>>, vector<8x128xf32>,
    %c0_68 = arith.constant 0 : index
    %c128_69 = arith.constant 128 : index
    %203 = vector.load %arg8[%c0_68, %c128_69] : memref<8x256xf32, #tpu.memory_space<vmem>>, vector<8x128xf32>
    %204 = vector.shape_cast %187 : vector<8x1xi1> to vector<8x1xi1>
    %205 = vector.broadcast %204 : vector<8x1xi1> to vector<8x128xi1>
    %206 = arith.select %205, %181, %203 : vector<8x128xi1>, vector<8x128xf32>
    %c0_70 = arith.constant 0 : index
    %c128_71 = arith.constant 128 : index
    %207 = vector.load %arg8[%c0_70, %c128_71] : memref<8x256xf32, #tpu.memory_space<vmem>>, vector<8x128xf32>
    tpu.vector_store %arg8[%c0_70, %c128_71], %206 {strides = array<i32>} : memref<8x256xf32, #tpu.memory_space<vmem>>, vector<8x128xf32>,
    %cst_72 = arith.constant 0.000000e+00 : f32
    %208 = vector.shape_cast %185 : vector<8x1xi1> to vector<8x1xi1>
    %209 = vector.broadcast %208 : vector<8x1xi1> to vector<8x128xi1>
    %210 = vector.broadcast %cst_72 : f32 to vector<8x128xf32>
    %211 = arith.select %209, %157, %210 : vector<8x128xi1>, vector<8x128xf32>
    %212 = arith.index_cast %c1_i32 : i32 to index
    %c0_73 = arith.constant 0 : index
    %c0_74 = arith.constant 0 : index
    %213 = vector.load %arg5[%212, %c0_73, %c0_74] : memref<4x8x128xf32, #tpu.memory_space<vmem>>, vector<1x8x128xf32>
    %214 = vector.shape_cast %213 : vector<1x8x128xf32> to vector<8x128xf32>
    %215 = vector.shape_cast %211 : vector<8x128xf32> to vector<1x8x128xf32>
    tpu.vector_store %arg5[%212, %c0_73, %c0_74], %215 {strides = array<i32>} : memref<4x8x128xf32, #tpu.memory_space<vmem>>, vector<1x8x128xf32>,
    %cst_75 = arith.constant 0.000000e+00 : f32
    %216 = vector.shape_cast %187 : vector<8x1xi1> to vector<8x1xi1>
    %217 = vector.broadcast %216 : vector<8x1xi1> to vector<8x128xi1>
    %218 = vector.broadcast %cst_75 : f32 to vector<8x128xf32>
    %219 = arith.select %217, %183, %218 : vector<8x128xi1>, vector<8x128xf32>
    %c3_i32_76 = arith.constant 3 : i32
    %220 = arith.subi %c3_i32_76, %c1_i32 : i32
    %221 = arith.index_cast %220 : i32 to index
    %c0_77 = arith.constant 0 : index
    %c0_78 = arith.constant 0 : index
    %222 = vector.load %arg6[%221, %c0_77, %c0_78] : memref<4x8x128xf32, #tpu.memory_space<vmem>>, vector<1x8x128xf32>
    %223 = vector.shape_cast %222 : vector<1x8x128xf32> to vector<8x128xf32>
    %224 = vector.shape_cast %219 : vector<8x128xf32> to vector<1x8x128xf32>
    tpu.vector_store %arg6[%221, %c0_77, %c0_78], %224 {strides = array<i32>} : memref<4x8x128xf32, #tpu.memory_space<vmem>>, vector<1x8x128xf32>,
    %c2_i32 = arith.constant 2 : i32
    %c4_i32_79 = arith.constant 4 : i32
    %225 = arith.muli %arg0, %c4_i32_79 : i32
    %226 = arith.addi %225, %c2_i32 : i32
    %c3_i32_80 = arith.constant 3 : i32
    %227 = arith.subi %c3_i32_80, %226 : i32
    %c0_81 = arith.constant 0 : index
    %c0_82 = arith.constant 0 : index
    %228 = vector.load %arg7[%c0_81, %c0_82] : memref<8x256xf32, #tpu.memory_space<vmem>>, vector<8x256xf32>
    %229 = arith.truncf %228 : vector<8x256xf32> to vector<8x256xbf16>
    %cst_83 = arith.constant dense<0.000000e+00> : vector<8x1024xf32>
    %230 = tpu.matmul %229, %4, %cst_83 {dimension_numbers = #tpu.dot_dimension_numbers<[1], [0], [0], [1], [0, 0, 1, 1], [], []>} : vector<8x256xbf16>, vector<256x1024xbf16>, vector<8x1024xf32> -> vector<8x1024xf32>
    %231 = arith.index_cast %c2_i32 : i32 to index
    %c0_84 = arith.constant 0 : index
    %c0_85 = arith.constant 0 : index
    %232 = vector.load %arg1[%231, %c0_84, %c0_85] : memref<4x8x512xf32, #tpu.memory_space<vmem>>, vector<1x8x512xf32>
    %233 = vector.shape_cast %232 : vector<1x8x512xf32> to vector<8x512xf32>
    %234 = vector.extract_strided_slice %230 {offsets = [0, 0], sizes = [8, 512], strides = [1, 1]} : vector<8x1024xf32> to vector<8x512xf32>
    %235 = arith.addf %233, %234 : vector<8x512xf32>
    %c3_i32_86 = arith.constant 3 : i32
    %236 = arith.subi %c3_i32_86, %c2_i32 : i32
    %237 = arith.index_cast %236 : i32 to index
    %c0_87 = arith.constant 0 : index
    %c0_88 = arith.constant 0 : index
    %238 = vector.load %arg2[%237, %c0_87, %c0_88] : memref<4x8x512xf32, #tpu.memory_space<vmem>>, vector<1x8x512xf32>
    %239 = vector.shape_cast %238 : vector<1x8x512xf32> to vector<8x512xf32>
    %240 = vector.extract_strided_slice %230 {offsets = [0, 512], sizes = [8, 512], strides = [1, 1]} : vector<8x1024xf32> to vector<8x512xf32>
    %241 = arith.addf %239, %240 : vector<8x512xf32>
    %c0_89 = arith.constant 0 : index
    %c0_90 = arith.constant 0 : index
    %242 = vector.load %arg8[%c0_89, %c0_90] : memref<8x256xf32, #tpu.memory_space<vmem>>, vector<8x128xf32>
    %243 = vector.extract_strided_slice %235 {offsets = [0, 0], sizes = [8, 128], strides = [1, 1]} : vector<8x512xf32> to vector<8x128xf32>
    %244 = arith.negf %243 : vector<8x128xf32>
    %245 = math.exp %244 : vector<8x128xf32>
    %cst_91 = arith.constant 1.000000e+00 : f32
    %246 = vector.broadcast %cst_91 : f32 to vector<8x128xf32>
    %247 = arith.addf %246, %245 : vector<8x128xf32>
    %248 = arith.divf %246, %247 : vector<8x128xf32>
    %249 = vector.extract_strided_slice %235 {offsets = [0, 128], sizes = [8, 128], strides = [1, 1]} : vector<8x512xf32> to vector<8x128xf32>
    %250 = arith.negf %249 : vector<8x128xf32>
    %251 = math.exp %250 : vector<8x128xf32>
    %cst_92 = arith.constant 1.000000e+00 : f32
    %252 = vector.broadcast %cst_92 : f32 to vector<8x128xf32>
    %253 = arith.addf %252, %251 : vector<8x128xf32>
    %254 = arith.divf %252, %253 : vector<8x128xf32>
    %255 = vector.extract_strided_slice %235 {offsets = [0, 256], sizes = [8, 128], strides = [1, 1]} : vector<8x512xf32> to vector<8x128xf32>
    %256 = math.tanh %255 : vector<8x128xf32>
    %257 = vector.extract_strided_slice %235 {offsets = [0, 384], sizes = [8, 128], strides = [1, 1]} : vector<8x512xf32> to vector<8x128xf32>
    %258 = arith.negf %257 : vector<8x128xf32>
    %259 = math.exp %258 : vector<8x128xf32>
    %cst_93 = arith.constant 1.000000e+00 : f32
    %260 = vector.broadcast %cst_93 : f32 to vector<8x128xf32>
    %261 = arith.addf %260, %259 : vector<8x128xf32>
    %262 = arith.divf %260, %261 : vector<8x128xf32>
    %263 = arith.mulf %254, %242 : vector<8x128xf32>
    %264 = arith.mulf %248, %256 : vector<8x128xf32>
    %265 = arith.addf %263, %264 : vector<8x128xf32>
    %266 = math.tanh %265 : vector<8x128xf32>
    %267 = arith.mulf %262, %266 : vector<8x128xf32>
    %c0_94 = arith.constant 0 : index
    %c128_95 = arith.constant 128 : index
    %268 = vector.load %arg8[%c0_94, %c128_95] : memref<8x256xf32, #tpu.memory_space<vmem>>, vector<8x128xf32>
    %269 = vector.extract_strided_slice %241 {offsets = [0, 0], sizes = [8, 128], strides = [1, 1]} : vector<8x512xf32> to vector<8x128xf32>
    %270 = arith.negf %269 : vector<8x128xf32>
    %271 = math.exp %270 : vector<8x128xf32>
    %cst_96 = arith.constant 1.000000e+00 : f32
    %272 = vector.broadcast %cst_96 : f32 to vector<8x128xf32>
    %273 = arith.addf %272, %271 : vector<8x128xf32>
    %274 = arith.divf %272, %273 : vector<8x128xf32>
    %275 = vector.extract_strided_slice %241 {offsets = [0, 128], sizes = [8, 128], strides = [1, 1]} : vector<8x512xf32> to vector<8x128xf32>
    %276 = arith.negf %275 : vector<8x128xf32>
    %277 = math.exp %276 : vector<8x128xf32>
    %cst_97 = arith.constant 1.000000e+00 : f32
    %278 = vector.broadcast %cst_97 : f32 to vector<8x128xf32>
    %279 = arith.addf %278, %277 : vector<8x128xf32>
    %280 = arith.divf %278, %279 : vector<8x128xf32>
    %281 = vector.extract_strided_slice %241 {offsets = [0, 256], sizes = [8, 128], strides = [1, 1]} : vector<8x512xf32> to vector<8x128xf32>
    %282 = math.tanh %281 : vector<8x128xf32>
    %283 = vector.extract_strided_slice %241 {offsets = [0, 384], sizes = [8, 128], strides = [1, 1]} : vector<8x512xf32> to vector<8x128xf32>
    %284 = arith.negf %283 : vector<8x128xf32>
    %285 = math.exp %284 : vector<8x128xf32>
    %cst_98 = arith.constant 1.000000e+00 : f32
    %286 = vector.broadcast %cst_98 : f32 to vector<8x128xf32>
    %287 = arith.addf %286, %285 : vector<8x128xf32>
    %288 = arith.divf %286, %287 : vector<8x128xf32>
    %289 = arith.mulf %280, %268 : vector<8x128xf32>
    %290 = arith.mulf %274, %282 : vector<8x128xf32>
    %291 = arith.addf %289, %290 : vector<8x128xf32>
    %292 = math.tanh %291 : vector<8x128xf32>
    %293 = arith.mulf %288, %292 : vector<8x128xf32>
    %294 = vector.broadcast %226 : i32 to vector<8x1xi32>
    %295 = arith.cmpi sgt, %3, %294 : vector<8x1xi32>
    %296 = vector.broadcast %227 : i32 to vector<8x1xi32>
    %297 = arith.cmpi sgt, %3, %296 : vector<8x1xi32>
    %298 = vector.extract_strided_slice %228 {offsets = [0, 0], sizes = [8, 128], strides = [1, 1]} : vector<8x256xf32> to vector<8x128xf32>
    %299 = vector.shape_cast %295 : vector<8x1xi1> to vector<8x1xi1>
    %300 = vector.broadcast %299 : vector<8x1xi1> to vector<8x128xi1>
    %301 = arith.select %300, %267, %298 : vector<8x128xi1>, vector<8x128xf32>
    %c0_99 = arith.constant 0 : index
    %c0_100 = arith.constant 0 : index
    %302 = vector.load %arg7[%c0_99, %c0_100] : memref<8x256xf32, #tpu.memory_space<vmem>>, vector<8x128xf32>
    tpu.vector_store %arg7[%c0_99, %c0_100], %301 {strides = array<i32>} : memref<8x256xf32, #tpu.memory_space<vmem>>, vector<8x128xf32>,
    %303 = vector.extract_strided_slice %228 {offsets = [0, 128], sizes = [8, 128], strides = [1, 1]} : vector<8x256xf32> to vector<8x128xf32>
    %304 = vector.shape_cast %297 : vector<8x1xi1> to vector<8x1xi1>
    %305 = vector.broadcast %304 : vector<8x1xi1> to vector<8x128xi1>
    %306 = arith.select %305, %293, %303 : vector<8x128xi1>, vector<8x128xf32>
    %c0_101 = arith.constant 0 : index
    %c128_102 = arith.constant 128 : index
    %307 = vector.load %arg7[%c0_101, %c128_102] : memref<8x256xf32, #tpu.memory_space<vmem>>, vector<8x128xf32>
    tpu.vector_store %arg7[%c0_101, %c128_102], %306 {strides = array<i32>} : memref<8x256xf32, #tpu.memory_space<vmem>>, vector<8x128xf32>,
    %c0_103 = arith.constant 0 : index
    %c0_104 = arith.constant 0 : index
    %308 = vector.load %arg8[%c0_103, %c0_104] : memref<8x256xf32, #tpu.memory_space<vmem>>, vector<8x128xf32>
    %309 = vector.shape_cast %295 : vector<8x1xi1> to vector<8x1xi1>
    %310 = vector.broadcast %309 : vector<8x1xi1> to vector<8x128xi1>
    %311 = arith.select %310, %265, %308 : vector<8x128xi1>, vector<8x128xf32>
    %c0_105 = arith.constant 0 : index
    %c0_106 = arith.constant 0 : index
    %312 = vector.load %arg8[%c0_105, %c0_106] : memref<8x256xf32, #tpu.memory_space<vmem>>, vector<8x128xf32>
    tpu.vector_store %arg8[%c0_105, %c0_106], %311 {strides = array<i32>} : memref<8x256xf32, #tpu.memory_space<vmem>>, vector<8x128xf32>,
    %c0_107 = arith.constant 0 : index
    %c128_108 = arith.constant 128 : index
    %313 = vector.load %arg8[%c0_107, %c128_108] : memref<8x256xf32, #tpu.memory_space<vmem>>, vector<8x128xf32>
    %314 = vector.shape_cast %297 : vector<8x1xi1> to vector<8x1xi1>
    %315 = vector.broadcast %314 : vector<8x1xi1> to vector<8x128xi1>
    %316 = arith.select %315, %291, %313 : vector<8x128xi1>, vector<8x128xf32>
    %c0_109 = arith.constant 0 : index
    %c128_110 = arith.constant 128 : index
    %317 = vector.load %arg8[%c0_109, %c128_110] : memref<8x256xf32, #tpu.memory_space<vmem>>, vector<8x128xf32>
    tpu.vector_store %arg8[%c0_109, %c128_110], %316 {strides = array<i32>} : memref<8x256xf32, #tpu.memory_space<vmem>>, vector<8x128xf32>,
    %cst_111 = arith.constant 0.000000e+00 : f32
    %318 = vector.shape_cast %295 : vector<8x1xi1> to vector<8x1xi1>
    %319 = vector.broadcast %318 : vector<8x1xi1> to vector<8x128xi1>
    %320 = vector.broadcast %cst_111 : f32 to vector<8x128xf32>
    %321 = arith.select %319, %267, %320 : vector<8x128xi1>, vector<8x128xf32>
    %322 = arith.index_cast %c2_i32 : i32 to index
    %c0_112 = arith.constant 0 : index
    %c0_113 = arith.constant 0 : index
    %323 = vector.load %arg5[%322, %c0_112, %c0_113] : memref<4x8x128xf32, #tpu.memory_space<vmem>>, vector<1x8x128xf32>
    %324 = vector.shape_cast %323 : vector<1x8x128xf32> to vector<8x128xf32>
    %325 = vector.shape_cast %321 : vector<8x128xf32> to vector<1x8x128xf32>
    tpu.vector_store %arg5[%322, %c0_112, %c0_113], %325 {strides = array<i32>} : memref<4x8x128xf32, #tpu.memory_space<vmem>>, vector<1x8x128xf32>,
    %cst_114 = arith.constant 0.000000e+00 : f32
    %326 = vector.shape_cast %297 : vector<8x1xi1> to vector<8x1xi1>
    %327 = vector.broadcast %326 : vector<8x1xi1> to vector<8x128xi1>
    %328 = vector.broadcast %cst_114 : f32 to vector<8x128xf32>
    %329 = arith.select %327, %293, %328 : vector<8x128xi1>, vector<8x128xf32>
    %c3_i32_115 = arith.constant 3 : i32
    %330 = arith.subi %c3_i32_115, %c2_i32 : i32
    %331 = arith.index_cast %330 : i32 to index
    %c0_116 = arith.constant 0 : index
    %c0_117 = arith.constant 0 : index
    %332 = vector.load %arg6[%331, %c0_116, %c0_117] : memref<4x8x128xf32, #tpu.memory_space<vmem>>, vector<1x8x128xf32>
    %333 = vector.shape_cast %332 : vector<1x8x128xf32> to vector<8x128xf32>
    %334 = vector.shape_cast %329 : vector<8x128xf32> to vector<1x8x128xf32>
    tpu.vector_store %arg6[%331, %c0_116, %c0_117], %334 {strides = array<i32>} : memref<4x8x128xf32, #tpu.memory_space<vmem>>, vector<1x8x128xf32>,
    %c3_i32_118 = arith.constant 3 : i32
    %c4_i32_119 = arith.constant 4 : i32
    %335 = arith.muli %arg0, %c4_i32_119 : i32
    %336 = arith.addi %335, %c3_i32_118 : i32
    %c3_i32_120 = arith.constant 3 : i32
    %337 = arith.subi %c3_i32_120, %336 : i32
    %c0_121 = arith.constant 0 : index
    %c0_122 = arith.constant 0 : index
    %338 = vector.load %arg7[%c0_121, %c0_122] : memref<8x256xf32, #tpu.memory_space<vmem>>, vector<8x256xf32>
    %339 = arith.truncf %338 : vector<8x256xf32> to vector<8x256xbf16>
    %cst_123 = arith.constant dense<0.000000e+00> : vector<8x1024xf32>
    %340 = tpu.matmul %339, %4, %cst_123 {dimension_numbers = #tpu.dot_dimension_numbers<[1], [0], [0], [1], [0, 0, 1, 1], [], []>} : vector<8x256xbf16>, vector<256x1024xbf16>, vector<8x1024xf32> -> vector<8x1024xf32>
    %341 = arith.index_cast %c3_i32_118 : i32 to index
    %c0_124 = arith.constant 0 : index
    %c0_125 = arith.constant 0 : index
    %342 = vector.load %arg1[%341, %c0_124, %c0_125] : memref<4x8x512xf32, #tpu.memory_space<vmem>>, vector<1x8x512xf32>
    %343 = vector.shape_cast %342 : vector<1x8x512xf32> to vector<8x512xf32>
    %344 = vector.extract_strided_slice %340 {offsets = [0, 0], sizes = [8, 512], strides = [1, 1]} : vector<8x1024xf32> to vector<8x512xf32>
    %345 = arith.addf %343, %344 : vector<8x512xf32>
    %c3_i32_126 = arith.constant 3 : i32
    %346 = arith.subi %c3_i32_126, %c3_i32_118 : i32
    %347 = arith.index_cast %346 : i32 to index
    %c0_127 = arith.constant 0 : index
    %c0_128 = arith.constant 0 : index
    %348 = vector.load %arg2[%347, %c0_127, %c0_128] : memref<4x8x512xf32, #tpu.memory_space<vmem>>, vector<1x8x512xf32>
    %349 = vector.shape_cast %348 : vector<1x8x512xf32> to vector<8x512xf32>
    %350 = vector.extract_strided_slice %340 {offsets = [0, 512], sizes = [8, 512], strides = [1, 1]} : vector<8x1024xf32> to vector<8x512xf32>
    %351 = arith.addf %349, %350 : vector<8x512xf32>
    %c0_129 = arith.constant 0 : index
    %c0_130 = arith.constant 0 : index
    %352 = vector.load %arg8[%c0_129, %c0_130] : memref<8x256xf32, #tpu.memory_space<vmem>>, vector<8x128xf32>
    %353 = vector.extract_strided_slice %345 {offsets = [0, 0], sizes = [8, 128], strides = [1, 1]} : vector<8x512xf32> to vector<8x128xf32>
    %354 = arith.negf %353 : vector<8x128xf32>
    %355 = math.exp %354 : vector<8x128xf32>
    %cst_131 = arith.constant 1.000000e+00 : f32
    %356 = vector.broadcast %cst_131 : f32 to vector<8x128xf32>
    %357 = arith.addf %356, %355 : vector<8x128xf32>
    %358 = arith.divf %356, %357 : vector<8x128xf32>
    %359 = vector.extract_strided_slice %345 {offsets = [0, 128], sizes = [8, 128], strides = [1, 1]} : vector<8x512xf32> to vector<8x128xf32>
    %360 = arith.negf %359 : vector<8x128xf32>
    %361 = math.exp %360 : vector<8x128xf32>
    %cst_132 = arith.constant 1.000000e+00 : f32
    %362 = vector.broadcast %cst_132 : f32 to vector<8x128xf32>
    %363 = arith.addf %362, %361 : vector<8x128xf32>
    %364 = arith.divf %362, %363 : vector<8x128xf32>
    %365 = vector.extract_strided_slice %345 {offsets = [0, 256], sizes = [8, 128], strides = [1, 1]} : vector<8x512xf32> to vector<8x128xf32>
    %366 = math.tanh %365 : vector<8x128xf32>
    %367 = vector.extract_strided_slice %345 {offsets = [0, 384], sizes = [8, 128], strides = [1, 1]} : vector<8x512xf32> to vector<8x128xf32>
    %368 = arith.negf %367 : vector<8x128xf32>
    %369 = math.exp %368 : vector<8x128xf32>
    %cst_133 = arith.constant 1.000000e+00 : f32
    %370 = vector.broadcast %cst_133 : f32 to vector<8x128xf32>
    %371 = arith.addf %370, %369 : vector<8x128xf32>
    %372 = arith.divf %370, %371 : vector<8x128xf32>
    %373 = arith.mulf %364, %352 : vector<8x128xf32>
    %374 = arith.mulf %358, %366 : vector<8x128xf32>
    %375 = arith.addf %373, %374 : vector<8x128xf32>
    %376 = math.tanh %375 : vector<8x128xf32>
    %377 = arith.mulf %372, %376 : vector<8x128xf32>
    %c0_134 = arith.constant 0 : index
    %c128_135 = arith.constant 128 : index
    %378 = vector.load %arg8[%c0_134, %c128_135] : memref<8x256xf32, #tpu.memory_space<vmem>>, vector<8x128xf32>
    %379 = vector.extract_strided_slice %351 {offsets = [0, 0], sizes = [8, 128], strides = [1, 1]} : vector<8x512xf32> to vector<8x128xf32>
    %380 = arith.negf %379 : vector<8x128xf32>
    %381 = math.exp %380 : vector<8x128xf32>
    %cst_136 = arith.constant 1.000000e+00 : f32
    %382 = vector.broadcast %cst_136 : f32 to vector<8x128xf32>
    %383 = arith.addf %382, %381 : vector<8x128xf32>
    %384 = arith.divf %382, %383 : vector<8x128xf32>
    %385 = vector.extract_strided_slice %351 {offsets = [0, 128], sizes = [8, 128], strides = [1, 1]} : vector<8x512xf32> to vector<8x128xf32>
    %386 = arith.negf %385 : vector<8x128xf32>
    %387 = math.exp %386 : vector<8x128xf32>
    %cst_137 = arith.constant 1.000000e+00 : f32
    %388 = vector.broadcast %cst_137 : f32 to vector<8x128xf32>
    %389 = arith.addf %388, %387 : vector<8x128xf32>
    %390 = arith.divf %388, %389 : vector<8x128xf32>
    %391 = vector.extract_strided_slice %351 {offsets = [0, 256], sizes = [8, 128], strides = [1, 1]} : vector<8x512xf32> to vector<8x128xf32>
    %392 = math.tanh %391 : vector<8x128xf32>
    %393 = vector.extract_strided_slice %351 {offsets = [0, 384], sizes = [8, 128], strides = [1, 1]} : vector<8x512xf32> to vector<8x128xf32>
    %394 = arith.negf %393 : vector<8x128xf32>
    %395 = math.exp %394 : vector<8x128xf32>
    %cst_138 = arith.constant 1.000000e+00 : f32
    %396 = vector.broadcast %cst_138 : f32 to vector<8x128xf32>
    %397 = arith.addf %396, %395 : vector<8x128xf32>
    %398 = arith.divf %396, %397 : vector<8x128xf32>
    %399 = arith.mulf %390, %378 : vector<8x128xf32>
    %400 = arith.mulf %384, %392 : vector<8x128xf32>
    %401 = arith.addf %399, %400 : vector<8x128xf32>
    %402 = math.tanh %401 : vector<8x128xf32>
    %403 = arith.mulf %398, %402 : vector<8x128xf32>
    %404 = vector.broadcast %336 : i32 to vector<8x1xi32>
    %405 = arith.cmpi sgt, %3, %404 : vector<8x1xi32>
    %406 = vector.broadcast %337 : i32 to vector<8x1xi32>
    %407 = arith.cmpi sgt, %3, %406 : vector<8x1xi32>
    %408 = vector.extract_strided_slice %338 {offsets = [0, 0], sizes = [8, 128], strides = [1, 1]} : vector<8x256xf32> to vector<8x128xf32>
    %409 = vector.shape_cast %405 : vector<8x1xi1> to vector<8x1xi1>
    %410 = vector.broadcast %409 : vector<8x1xi1> to vector<8x128xi1>
    %411 = arith.select %410, %377, %408 : vector<8x128xi1>, vector<8x128xf32>
    %c0_139 = arith.constant 0 : index
    %c0_140 = arith.constant 0 : index
    %412 = vector.load %arg7[%c0_139, %c0_140] : memref<8x256xf32, #tpu.memory_space<vmem>>, vector<8x128xf32>
    tpu.vector_store %arg7[%c0_139, %c0_140], %411 {strides = array<i32>} : memref<8x256xf32, #tpu.memory_space<vmem>>, vector<8x128xf32>,
    %413 = vector.extract_strided_slice %338 {offsets = [0, 128], sizes = [8, 128], strides = [1, 1]} : vector<8x256xf32> to vector<8x128xf32>
    %414 = vector.shape_cast %407 : vector<8x1xi1> to vector<8x1xi1>
    %415 = vector.broadcast %414 : vector<8x1xi1> to vector<8x128xi1>
    %416 = arith.select %415, %403, %413 : vector<8x128xi1>, vector<8x128xf32>
    %c0_141 = arith.constant 0 : index
    %c128_142 = arith.constant 128 : index
    %417 = vector.load %arg7[%c0_141, %c128_142] : memref<8x256xf32, #tpu.memory_space<vmem>>, vector<8x128xf32>
    tpu.vector_store %arg7[%c0_141, %c128_142], %416 {strides = array<i32>} : memref<8x256xf32, #tpu.memory_space<vmem>>, vector<8x128xf32>,
    %c0_143 = arith.constant 0 : index
    %c0_144 = arith.constant 0 : index
    %418 = vector.load %arg8[%c0_143, %c0_144] : memref<8x256xf32, #tpu.memory_space<vmem>>, vector<8x128xf32>
    %419 = vector.shape_cast %405 : vector<8x1xi1> to vector<8x1xi1>
    %420 = vector.broadcast %419 : vector<8x1xi1> to vector<8x128xi1>
    %421 = arith.select %420, %375, %418 : vector<8x128xi1>, vector<8x128xf32>
    %c0_145 = arith.constant 0 : index
    %c0_146 = arith.constant 0 : index
    %422 = vector.load %arg8[%c0_145, %c0_146] : memref<8x256xf32, #tpu.memory_space<vmem>>, vector<8x128xf32>
    tpu.vector_store %arg8[%c0_145, %c0_146], %421 {strides = array<i32>} : memref<8x256xf32, #tpu.memory_space<vmem>>, vector<8x128xf32>,
    %c0_147 = arith.constant 0 : index
    %c128_148 = arith.constant 128 : index
    %423 = vector.load %arg8[%c0_147, %c128_148] : memref<8x256xf32, #tpu.memory_space<vmem>>, vector<8x128xf32>
    %424 = vector.shape_cast %407 : vector<8x1xi1> to vector<8x1xi1>
    %425 = vector.broadcast %424 : vector<8x1xi1> to vector<8x128xi1>
    %426 = arith.select %425, %401, %423 : vector<8x128xi1>, vector<8x128xf32>
    %c0_149 = arith.constant 0 : index
    %c128_150 = arith.constant 128 : index
    %427 = vector.load %arg8[%c0_149, %c128_150] : memref<8x256xf32, #tpu.memory_space<vmem>>, vector<8x128xf32>
    tpu.vector_store %arg8[%c0_149, %c128_150], %426 {strides = array<i32>} : memref<8x256xf32, #tpu.memory_space<vmem>>, vector<8x128xf32>,
    %cst_151 = arith.constant 0.000000e+00 : f32
    %428 = vector.shape_cast %405 : vector<8x1xi1> to vector<8x1xi1>
    %429 = vector.broadcast %428 : vector<8x1xi1> to vector<8x128xi1>
    %430 = vector.broadcast %cst_151 : f32 to vector<8x128xf32>
    %431 = arith.select %429, %377, %430 : vector<8x128xi1>, vector<8x128xf32>
    %432 = arith.index_cast %c3_i32_118 : i32 to index
    %c0_152 = arith.constant 0 : index
    %c0_153 = arith.constant 0 : index
    %433 = vector.load %arg5[%432, %c0_152, %c0_153] : memref<4x8x128xf32, #tpu.memory_space<vmem>>, vector<1x8x128xf32>
    %434 = vector.shape_cast %433 : vector<1x8x128xf32> to vector<8x128xf32>
    %435 = vector.shape_cast %431 : vector<8x128xf32> to vector<1x8x128xf32>
    tpu.vector_store %arg5[%432, %c0_152, %c0_153], %435 {strides = array<i32>} : memref<4x8x128xf32, #tpu.memory_space<vmem>>, vector<1x8x128xf32>,
    %cst_154 = arith.constant 0.000000e+00 : f32
    %436 = vector.shape_cast %407 : vector<8x1xi1> to vector<8x1xi1>
    %437 = vector.broadcast %436 : vector<8x1xi1> to vector<8x128xi1>
    %438 = vector.broadcast %cst_154 : f32 to vector<8x128xf32>
    %439 = arith.select %437, %403, %438 : vector<8x128xi1>, vector<8x128xf32>
    %c3_i32_155 = arith.constant 3 : i32
    %440 = arith.subi %c3_i32_155, %c3_i32_118 : i32
    %441 = arith.index_cast %440 : i32 to index
    %c0_156 = arith.constant 0 : index
    %c0_157 = arith.constant 0 : index
    %442 = vector.load %arg6[%441, %c0_156, %c0_157] : memref<4x8x128xf32, #tpu.memory_space<vmem>>, vector<1x8x128xf32>
    %443 = vector.shape_cast %442 : vector<1x8x128xf32> to vector<8x128xf32>
    %444 = vector.shape_cast %439 : vector<8x128xf32> to vector<1x8x128xf32>
    tpu.vector_store %arg6[%441, %c0_156, %c0_157], %444 {strides = array<i32>} : memref<4x8x128xf32, #tpu.memory_space<vmem>>, vector<1x8x128xf32>,
    %c4_i32_158 = arith.constant 4 : i32
    return
  }
  func.func @transform_0(%arg0: i32) -> (i32, i32, i32) {
    %c0_i32 = arith.constant 0 : i32
    %c0_i32_0 = arith.constant 0 : i32
    %c0_i32_1 = arith.constant 0 : i32
    return %arg0, %c0_i32, %c0_i32_0 : i32, i32, i32
  }
  func.func @transform_1(%arg0: i32) -> (i32, i32, i32) {
    %c0_i32 = arith.constant 0 : i32
    %0 = arith.subi %c0_i32, %arg0 : i32
    %c0_i32_0 = arith.constant 0 : i32
    %c1_i32 = arith.constant 1 : i32
    %c0_i32_1 = arith.constant 0 : i32
    return %0, %c0_i32_0, %c1_i32 : i32, i32, i32
  }
  func.func @transform_2(%arg0: i32) -> (i32, i32) {
    %c0_i32 = arith.constant 0 : i32
    %c0_i32_0 = arith.constant 0 : i32
    %c0_i32_1 = arith.constant 0 : i32
    return %c0_i32, %c0_i32_0 : i32, i32
  }
  func.func @transform_3(%arg0: i32) -> (i32, i32) {
    %c0_i32 = arith.constant 0 : i32
    %c0_i32_0 = arith.constant 0 : i32
    %c0_i32_1 = arith.constant 0 : i32
    return %c0_i32, %c0_i32_0 : i32, i32
  }
  func.func @transform_4(%arg0: i32) -> (i32, i32, i32) {
    %c0_i32 = arith.constant 0 : i32
    %c0_i32_0 = arith.constant 0 : i32
    %c0_i32_1 = arith.constant 0 : i32
    return %arg0, %c0_i32, %c0_i32_0 : i32, i32, i32
  }
  func.func @transform_5(%arg0: i32) -> (i32, i32, i32) {
    %c0_i32 = arith.constant 0 : i32
    %0 = arith.subi %c0_i32, %arg0 : i32
    %c0_i32_0 = arith.constant 0 : i32
    %c0_i32_1 = arith.constant 0 : i32
    %c0_i32_2 = arith.constant 0 : i32
    return %0, %c0_i32_0, %c0_i32_1 : i32, i32, i32
  }
}

module attributes {stable_mosaic.version = 11 : i64} {
  func.func @_mm_bias_kernel(%arg0: i32, %arg1: i32, %arg2: i32, %arg3: memref<8x256xbf16, #tpu.memory_space<vmem>>, %arg4: memref<256x128xbf16, #tpu.memory_space<vmem>>, %arg5: memref<1x128xf32, #tpu.memory_space<vmem>>, %arg6: memref<8x128xf32, #tpu.memory_space<vmem>>, %arg7: memref<8x128xf32, #tpu.memory_space<vmem>>) attributes {dimension_semantics = [#tpu.dimension_semantics<parallel>, #tpu.dimension_semantics<parallel>, #tpu.dimension_semantics<arbitrary>], iteration_bounds = array<i64: 1, 1, 1>, scalar_prefetch = 0 : i64, scratch_operands = 1 : i64, tpu.core_type = #tpu.core_type<tc>, window_params = [{transform_indices = @transform_0, window_bounds = array<i64: 8, 256>}, {transform_indices = @transform_1, window_bounds = array<i64: 256, 128>}, {transform_indices = @transform_2, window_bounds = array<i64: 1, 128>}, {transform_indices = @transform_3, window_bounds = array<i64: 8, 128>}]} {
    %c0_i32 = arith.constant 0 : i32
    %0 = arith.cmpi eq, %arg2, %c0_i32 : i32
    %1 = arith.extui %0 : i1 to i32
    %c0_i32_0 = arith.constant 0 : i32
    %2 = arith.cmpi ne, %1, %c0_i32_0 : i32
    scf.if %2 {
      %cst_10 = arith.constant 0.000000e+00 : f32
      %12 = vector.broadcast %cst_10 : f32 to vector<8x128xf32>
      %c0_11 = arith.constant 0 : index
      %c0_12 = arith.constant 0 : index
      %13 = vector.load %arg7[%c0_11, %c0_12] : memref<8x128xf32, #tpu.memory_space<vmem>>, vector<8x128xf32>
      tpu.vector_store %arg7[%c0_11, %c0_12], %12 {strides = array<i32>} : memref<8x128xf32, #tpu.memory_space<vmem>>, vector<8x128xf32>,
    } else {
    }
    %c0 = arith.constant 0 : index
    %c0_1 = arith.constant 0 : index
    %3 = vector.load %arg7[%c0, %c0_1] : memref<8x128xf32, #tpu.memory_space<vmem>>, vector<8x128xf32>
    %c0_2 = arith.constant 0 : index
    %c0_3 = arith.constant 0 : index
    %4 = vector.load %arg3[%c0_2, %c0_3] : memref<8x256xbf16, #tpu.memory_space<vmem>>, vector<8x256xbf16>
    %c0_4 = arith.constant 0 : index
    %c0_5 = arith.constant 0 : index
    %5 = vector.load %arg4[%c0_4, %c0_5] : memref<256x128xbf16, #tpu.memory_space<vmem>>, vector<256x128xbf16>
    %cst = arith.constant dense<0.000000e+00> : vector<8x128xf32>
    %6 = tpu.matmul %4, %5, %cst {dimension_numbers = #tpu.dot_dimension_numbers<[1], [0], [0], [1], [0, 0, 1, 1], [], []>} : vector<8x256xbf16>, vector<256x128xbf16>, vector<8x128xf32> -> vector<8x128xf32>
    %7 = arith.addf %3, %6 : vector<8x128xf32>
    %c0_6 = arith.constant 0 : index
    %c0_7 = arith.constant 0 : index
    %8 = vector.load %arg7[%c0_6, %c0_7] : memref<8x128xf32, #tpu.memory_space<vmem>>, vector<8x128xf32>
    tpu.vector_store %arg7[%c0_6, %c0_7], %7 {strides = array<i32>} : memref<8x128xf32, #tpu.memory_space<vmem>>, vector<8x128xf32>,
    %c0_i32_8 = arith.constant 0 : i32
    %9 = arith.cmpi eq, %arg2, %c0_i32_8 : i32
    %10 = arith.extui %9 : i1 to i32
    %c0_i32_9 = arith.constant 0 : i32
    %11 = arith.cmpi ne, %10, %c0_i32_9 : i32
    scf.if %11 {
      %c0_10 = arith.constant 0 : index
      %c0_11 = arith.constant 0 : index
      %12 = vector.load %arg7[%c0_10, %c0_11] : memref<8x128xf32, #tpu.memory_space<vmem>>, vector<8x128xf32>
      %c0_12 = arith.constant 0 : index
      %c0_13 = arith.constant 0 : index
      %13 = vector.load %arg5[%c0_12, %c0_13] : memref<1x128xf32, #tpu.memory_space<vmem>>, vector<1x128xf32>
      %14 = vector.broadcast %13 : vector<1x128xf32> to vector<8x128xf32>
      %15 = arith.addf %12, %14 : vector<8x128xf32>
      %c0_14 = arith.constant 0 : index
      %c0_15 = arith.constant 0 : index
      %16 = vector.load %arg6[%c0_14, %c0_15] : memref<8x128xf32, #tpu.memory_space<vmem>>, vector<8x128xf32>
      tpu.vector_store %arg6[%c0_14, %c0_15], %15 {strides = array<i32>} : memref<8x128xf32, #tpu.memory_space<vmem>>, vector<8x128xf32>,
    } else {
    }
    return
  }
  func.func @transform_0(%arg0: i32, %arg1: i32, %arg2: i32) -> (i32, i32) {
    %c0_i32 = arith.constant 0 : i32
    return %arg0, %arg2 : i32, i32
  }
  func.func @transform_1(%arg0: i32, %arg1: i32, %arg2: i32) -> (i32, i32) {
    %c0_i32 = arith.constant 0 : i32
    return %arg2, %arg1 : i32, i32
  }
  func.func @transform_2(%arg0: i32, %arg1: i32, %arg2: i32) -> (i32, i32) {
    %c0_i32 = arith.constant 0 : i32
    %c0_i32_0 = arith.constant 0 : i32
    return %c0_i32, %arg1 : i32, i32
  }
  func.func @transform_3(%arg0: i32, %arg1: i32, %arg2: i32) -> (i32, i32) {
    %c0_i32 = arith.constant 0 : i32
    return %arg0, %arg1 : i32, i32
  }
}

</mosaic_0001>

<bundles_post_ra>
// kernel: asr_forward.7
= control target key start
LH: loop header
LB: loop body
LE: loop exit
PB: predicated region body
PF: predicated region fallthrough
CT: control target
= control target key end

     0   :  { %v212_v0 = vmov 0.0   ;;  %vm213_vm0 = vmmov 0   ;;  %s270_s1 = inlined_call_operand.vmem [shape: bf16[128,128], index: 1, kind: input, shape index: {}]   ;;  %s271_s0 = inlined_call_operand.vmem [shape: bf16[16,128], index: 0, kind: input, shape index: {}]   ;;  %s272_s2 = inlined_call_operand.vmem [shape: f32[1,128], index: 2, kind: input, shape index: {}]   ;;  %s273_s3 = inlined_call_operand.vmem [shape: f32[16,128], index: 3, kind: output, shape index: {}]  }
   0x1   :  { %181 = vmatprep.subr.bf16.mxu0 %v212_v0  ;;  %v203_v1 = vld [vmem:[%s270_s1] sm:$0xff]   ;;  %197 = vmatprep.mubr.msk.bf16.mxu0 %vm213_vm0, %v212_v0  ;;  %v204_v2 = vld [vmem:[%s270_s1 + $0x8] sm:$0xff]   ;;  %v205_v3 = vld [vmem:[%s270_s1 + $0x10] sm:$0xff]  }
   0x2   :  { %182 = vmatpush3.bf16.msra.mxu0 %v203_v1  ;;  %v206_v4 = vld [vmem:[%s270_s1 + $0x18] sm:$0xff]   ;;  %v207_v5 = vld [vmem:[%s270_s1 + $0x20] sm:$0xff]   ;;  %v208_v6 = vld [vmem:[%s270_s1 + $0x28] sm:$0xff]  }
   0x3   :  { %183 = vmatprep.subr.bf16.mxu0 %v212_v0  ;;  %v209_v7 = vld [vmem:[%s270_s1 + $0x30] sm:$0xff]   ;;  %v210_v8 = vld [vmem:[%s270_s1 + $0x38] sm:$0xff]   ;;  %v211_v9 = vld [vmem:[%s271_s0] sm:$0xff]  }
   0x4   :  { %v171_v10 = vld [vmem:[%s272_s2] ss:$0 sm:$0xff] }
   0x6   :  { %184 = vmatpush3.bf16.msra.mxu0 %v204_v2 }
   0x7   :  { %185 = vmatprep.subr.bf16.mxu0 %v212_v0 }
   0xa   :  { %186 = vmatpush3.bf16.msra.mxu0 %v205_v3 }
   0xb   :  { %187 = vmatprep.subr.bf16.mxu0 %v212_v0 }
   0xe   :  { %188 = vmatpush3.bf16.msra.mxu0 %v206_v4 }
   0xf   :  { %189 = vmatprep.subr.bf16.mxu0 %v212_v0 }
  0x12   :  { %190 = vmatpush3.bf16.msra.mxu0 %v207_v5 }
  0x13   :  { %191 = vmatprep.subr.bf16.mxu0 %v212_v0 }
  0x16   :  { %192 = vmatpush3.bf16.msra.mxu0 %v208_v6 }
  0x17   :  { %193 = vmatprep.subr.bf16.mxu0 %v212_v0 }
  0x1a   :  { %194 = vmatpush3.bf16.msra.mxu0 %v209_v7 }
  0x1b   :  { %195 = vmatprep.subr.bf16.mxu0 %v212_v0 }
  0x1e   :  { %196 = vmatpush3.bf16.msra.mxu0 %v210_v8 }
  0x21   :  { %198 = vmatmul.mubr.bf16.vlgmr.msra.gmra.mrb[0].mxu0 %v211_v9 }
  0xf4   :  { %v129_v11 = vpop.f32.mrb[0].mxu0 }
  0xf5   :  { %v152_v12 = vadd.f32 %v171_v10, %v129_v11  ;;  %v199_v13 = vpop.f32.mrb[1].mxu0 }
  0xf6   :  { %v132_v14 = vpop.f32.mrb[2].mxu0 }
  0xf7   :  { %v154_v15 = vmax.f32 %v152_v12, 0.0  ;;  %v153_v16 = vadd.f32 %v171_v10, %v132_v14  ;;  %v200_v17 = vpop.f32.mrb[3].mxu0 }
  0xf9   :  { %156 = vst [vmem:[%s273_s3] sm:$0xff] %v154_v15  ;;  %v155_v18 = vmax.f32 %v153_v16, 0.0 }
  0xfb   :  { %157 = vst [vmem:[%s273_s3 + $0x8] sm:$0xff] %v155_v18 }

// kernel: asr_forward.8
= control target key start
LH: loop header
LB: loop body
LE: loop exit
PB: predicated region body
PF: predicated region fallthrough
CT: control target
= control target key end

     0   :  { %v434_v1 = vmov 0.0   ;;  %vm435_vm0 = vmmov 0   ;;  %s540_s1 = inlined_call_operand.vmem [shape: bf16[384,128], index: 1, kind: input, shape index: {}]   ;;  %s541_s0 = inlined_call_operand.vmem [shape: bf16[8,384], index: 0, kind: input, shape index: {}]   ;;  %s542_s2 = inlined_call_operand.vmem [shape: f32[1,128], index: 2, kind: input, shape index: {}]   ;;  %s543_s3 = inlined_call_operand.vmem [shape: f32[8,128], index: 3, kind: output, shape index: {}]  }
   0x1   :  { %v407_v0 = vld [vmem:[%s540_s1 + $0x40] sm:$0xff]   ;;  %385 = vmatprep.subr.bf16.mxu1 %v434_v1  ;;  %401 = vmatprep.mubr.msk.bf16.mxu1 %vm435_vm0, %v434_v1  ;;  %v410_v4 = vld [vmem:[%s540_s1 + $0x48] sm:$0xff]   ;;  %v413_v7 = vld [vmem:[%s540_s1 + $0x50] sm:$0xff]  }
   0x2   :  { %v408_v2 = vld [vmem:[%s540_s1] sm:$0xff]   ;;  %354 = vmatprep.subr.bf16.mxu0 %v407_v0  ;;  %v411_v5 = vld [vmem:[%s540_s1 + $0x8] sm:$0xff]   ;;  %v414_v8 = vld [vmem:[%s540_s1 + $0x10] sm:$0xff]  }
   0x3   :  { %v409_v3 = vld [vmem:[%s540_s1 + $0x80] sm:$0xff]   ;;  %355 = vmatpush3.bf16.msra.mxu0 %v408_v2  ;;  %v412_v6 = vld [vmem:[%s540_s1 + $0x88] sm:$0xff]   ;;  %v415_v9 = vld [vmem:[%s540_s1 + $0x90] sm:$0xff]  }
   0x4   :  { %386 = vmatpush3.bf16.msra.mxu1 %v409_v3  ;;  %356 = vmatprep.subr.bf16.mxu0 %v410_v4  ;;  %v416_v10 = vld [vmem:[%s540_s1 + $0x58] sm:$0xff]   ;;  %v419_v13 = vld [vmem:[%s540_s1 + $0x60] sm:$0xff]   ;;  %v422_v16 = vld [vmem:[%s540_s1 + $0x68] sm:$0xff]  }
   0x5   :  { %387 = vmatprep.subr.bf16.mxu1 %v434_v1  ;;  %v417_v11 = vld [vmem:[%s540_s1 + $0x18] sm:$0xff]   ;;  %v420_v14 = vld [vmem:[%s540_s1 + $0x20] sm:$0xff]   ;;  %v423_v17 = vld [vmem:[%s540_s1 + $0x28] sm:$0xff]  }
   0x6   :  { %v418_v12 = vld [vmem:[%s540_s1 + $0x98] sm:$0xff]   ;;  %v421_v15 = vld [vmem:[%s540_s1 + $0xa0] sm:$0xff]   ;;  %v424_v18 = vld [vmem:[%s540_s1 + $0xa8] sm:$0xff]  }
   0x7   :  { %357 = vmatpush3.bf16.msra.mxu0 %v411_v5  ;;  %v425_v19 = vld [vmem:[%s540_s1 + $0x70] sm:$0xff]   ;;  %v428_v22 = vld [vmem:[%s540_s1 + $0x78] sm:$0xff]   ;;  %v21_v23 = vld [vmem:[%s541_s0] sm:$0xff] }
   0x8   :  { %388 = vmatpush3.bf16.msra.mxu1 %v412_v6  ;;  %358 = vmatprep.subr.bf16.mxu0 %v413_v7  ;;  %v426_v20 = vld [vmem:[%s540_s1 + $0x30] sm:$0xff]   ;;  %v327_v24 = vcombine.high %v21_v23, %v21_v23  ;;  %v429_v25 = vld [vmem:[%s540_s1 + $0x38] sm:$0xff]   ;;  %v326_v27 = vcombine.low %v21_v23, %v21_v23  ;;  %v433_v28 = vld [vmem:[%s541_s0 + $0x8] ss:$0 sps:$4 sm:$0xff]  }
   0x9   :  { %389 = vmatprep.subr.bf16.mxu1 %v434_v1  ;;  %v427_v21 = vld [vmem:[%s540_s1 + $0xb0] sm:$0xff]   ;;  %v430_v26 = vld [vmem:[%s540_s1 + $0xb8] sm:$0xff]   ;;  %v353_v35 = vld [vmem:[%s542_s2] ss:$0 sm:$0xff] }
   0xa   :  { %258 = vmatprep.mubr.bf16.mxu0 %v327_v24 }
   0xb   :  { %359 = vmatpush3.bf16.msra.mxu0 %v414_v8 }
   0xc   :  { %390 = vmatpush3.bf16.msra.mxu1 %v415_v9  ;;  %360 = vmatprep.subr.bf16.mxu0 %v416_v10 }
   0xd   :  { %391 = vmatprep.subr.bf16.mxu1 %v434_v1 }
   0xf   :  { %361 = vmatpush3.bf16.msra.mxu0 %v417_v11 }
  0x10   :  { %392 = vmatpush3.bf16.msra.mxu1 %v418_v12  ;;  %362 = vmatprep.subr.bf16.mxu0 %v419_v13 }
  0x11   :  { %393 = vmatprep.subr.bf16.mxu1 %v434_v1 }
  0x13   :  { %363 = vmatpush3.bf16.msra.mxu0 %v420_v14 }
  0x14   :  { %394 = vmatpush3.bf16.msra.mxu1 %v421_v15  ;;  %364 = vmatprep.subr.bf16.mxu0 %v422_v16 }
  0x15   :  { %395 = vmatprep.subr.bf16.mxu1 %v434_v1 }
  0x17   :  { %365 = vmatpush3.bf16.msra.mxu0 %v423_v17 }
  0x18   :  { %396 = vmatpush3.bf16.msra.mxu1 %v424_v18  ;;  %366 = vmatprep.subr.bf16.mxu0 %v425_v19 }
  0x19   :  { %397 = vmatprep.subr.bf16.mxu1 %v434_v1 }
  0x1b   :  { %367 = vmatpush3.bf16.msra.mxu0 %v426_v20 }
  0x1c   :  { %398 = vmatpush3.bf16.msra.mxu1 %v427_v21  ;;  %368 = vmatprep.subr.bf16.mxu0 %v428_v22 }
  0x1d   :  { %399 = vmatprep.subr.bf16.mxu1 %v434_v1 }
  0x1f   :  { %369 = vmatpush3.bf16.msra.mxu0 %v429_v25 }
  0x20   :  { %400 = vmatpush3.bf16.msra.mxu1 %v430_v26 }
  0x22   :  { %259 = vmatmul.mubr.bf16.vlgmr.msra.gmra.mrb[0].mxu0 %v326_v27 }
  0x23   :  { %402 = vmatmul.mubr.bf16.vlgmr.msra.gmra.mrb[0].mxu1 %v433_v28 }
  0xf5   :  { %v370_v29 = vpop.f32.mrb[0].mxu0 }
  0xf6   :  { %v300_v30 = vpop.f32.mrb[0].mxu1  ;;  %v371_v31 = vpop.f32.mrb[1].mxu0 }
  0xf7   :  { %v372_v32 = vadd.f32 %v371_v31, %v370_v29  ;;  %v403_v33 = vpop.f32.mrb[1].mxu1  ;;  %v373_v34 = vpop.f32.mrb[2].mxu0 }
  0xf8   :  { %v303_v36 = vpop.f32.mrb[2].mxu1  ;;  %v374_v37 = vpop.f32.mrb[3].mxu0 }
  0xf9   :  { %v301_v38 = vadd.f32 %v372_v32, %v300_v30  ;;  %v404_v39 = vpop.f32.mrb[3].mxu1 }
  0xfb   :  { %v319_v40 = vadd.f32 %v353_v35, %v301_v38 }
  0xfd   :  { %v320_v41 = vmax.f32 %v319_v40, 0.0 }
  0xff   :  { %321 = vst [vmem:[%s543_s3] sm:$0xff] %v320_v41 }

// kernel: asr_forward.9
= control target key start
LH: loop header
LB: loop body
LE: loop exit
PB: predicated region body
PF: predicated region fallthrough
CT: control target
= control target key end

     0   :  { %s909_s12 = smov 0   ;;  %s911_s13 = smov 0   ;;  %s1049_s0 = inlined_call_operand.vmem [shape: bf16[32,128], index: 0, kind: input, shape index: {}]   ;;  %s1050_s1 = inlined_call_operand.vmem [shape: bf16[128,1024], index: 1, kind: input, shape index: {}]   ;;  %s1051_s2 = inlined_call_operand.vmem [shape: f32[1,1024], index: 2, kind: input, shape index: {}]   ;;  %s1052_s3 = inlined_call_operand.vmem [shape: f32[32,1024], index: 3, kind: output, shape index: {}]  }
   0x1   :  { %s913_s14 = smov 0   ;;  %s915_s15 = smov 0  }
   0x2   :  { %s917_s16 = smov 0  }
   0x3 LB: > { %s28_s17 = sadd.s32 1, %s882_s15  ;;  %s728_s18 = sadd.s32 4294967295, %s886_s16   ;;  %s886_s16 = sphi %s917_s16, %s13_s16   ;;  %s882_s15 = sphi %s915_s15, %s1057_s15   ;;  %s878_s14 = sphi %s913_s14, %s1056_s14   ;;  %s874_s13 = sphi %s911_s13, %s1055_s13   ;;  %s870_s12 = sphi %s909_s12, %s1054_s12  }
   0x4   : > { %p30_p0 = scmp.ge.s32.totalorder %s28_s17, 4  ;;  %p76_p1 = scmp.ne.s32.totalorder %s874_s13, %s870_s12 }
   0x5   : > { %p77_p2 = scmp.eq.s32.totalorder %s886_s16, 0  ;;  %p134_p4 = scmp.eq.s32.totalorder %s728_s18, 3 }
   0x6   : > { %s1059_s17 = smov (%p30_p0, %s28_s17), 0  ;;  %s69_s20 = sadd.s32 1, %s874_s13 }
   0x7   : > { %p78_p3 = por %p77_p2, %p76_p1  ;;  %s65_s19 = ssub.s32 %s882_s15, %s1059_s17 }
   0x8   : > { %p67_p5 = scmp.eq.s32.totalorder %s65_s19, 0  ;;  %p944_p6 = por %p134_p4, %p76_p1 }
   0x9   : > { %p732_p7 = scmp.ge.s32.totalorder %s886_s16, 4 }
   0xa   : > { %s949_s22 = scalar_select %p67_p5, %s874_s13, %s69_s20  }
   0xb   : > { %168 = sbr.rel (%p732_p7) target bundleno = 38 (0x26), region = 20 }
  0x12   : > { %171 = sbr.rel (!%p78_p3) target bundleno = 38 (0x26), region = 24  ;;  %s173_s23 = sand.u32 (%p78_p3), 1, %s874_s13  }
  0x13   : > { %s763_s24 = sshll.u32 (%p78_p3), %s882_s15, 3  ;;  %s733_s25 = sshll.u32 (%p78_p3), %s173_s23, 7 }
  0x14   : > { %s957_s28 = scalar_lea.vmem (%p78_p3), %s1050_s1, %s763_s24  ;;  %s175_s29 = scalar_lea.vmem (%p78_p3), [#allocation3], %s733_s25 }
  0x15   : > { %v239_v0 = vld [vmem:[%s957_s28] sm:$0xff] (%p78_p3) }
  0x16   : > { %v241_v1 = vld [vmem:[%s957_s28 + $0x20] sm:$0xff] (%p78_p3)  ;;  %240 = vst [vmem:[%s175_s29] sm:$0xff] (%p78_p3), %v239_v0 }
  0x17   : > { %v243_v2 = vld [vmem:[%s957_s28 + $0x40] sm:$0xff] (%p78_p3)  ;;  %242 = vst [vmem:[%s175_s29 + $0x8] sm:$0xff] (%p78_p3), %v241_v1 }
  0x18   : > { %244 = vst [vmem:[%s175_s29 + $0x10] sm:$0xff] (%p78_p3), %v243_v2  ;;  %v245_v3 = vld [vmem:[%s957_s28 + $0x60] sm:$0xff] (%p78_p3) }
  0x19   : > { %v247_v4 = vld [vmem:[%s957_s28 + $0x80] sm:$0xff]  ;;  %246 = vst [vmem:[%s175_s29 + $0x18] sm:$0xff] %v245_v3 }
  0x1a   : > { %v249_v5 = vld [vmem:[%s957_s28 + $0xa0] sm:$0xff]  ;;  %248 = vst [vmem:[%s175_s29 + $0x20] sm:$0xff] %v247_v4 }
  0x1b   : > { %250 = vst [vmem:[%s175_s29 + $0x28] sm:$0xff] %v249_v5  ;;  %v251_v6 = vld [vmem:[%s957_s28 + $0xc0] sm:$0xff] }
  0x1c   : > { %v253_v7 = vld [vmem:[%s957_s28 + $0xe0] sm:$0xff]  ;;  %252 = vst [vmem:[%s175_s29 + $0x30] sm:$0xff] %v251_v6 }
  0x1d   : > { %v255_v8 = vld [vmem:[%s957_s28 + $0x100] sm:$0xff]  ;;  %254 = vst [vmem:[%s175_s29 + $0x38] sm:$0xff] %v253_v7 }
  0x1e   : > { %256 = vst [vmem:[%s175_s29 + $0x40] sm:$0xff] %v255_v8  ;;  %v257_v9 = vld [vmem:[%s957_s28 + $0x120] sm:$0xff] }
  0x1f   : > { %v259_v10 = vld [vmem:[%s957_s28 + $0x140] sm:$0xff]  ;;  %258 = vst [vmem:[%s175_s29 + $0x48] sm:$0xff] %v257_v9 }
  0x20   : > { %v261_v11 = vld [vmem:[%s957_s28 + $0x160] sm:$0xff]  ;;  %260 = vst [vmem:[%s175_s29 + $0x50] sm:$0xff] %v259_v10 }
  0x21   : > { %262 = vst [vmem:[%s175_s29 + $0x58] sm:$0xff] %v261_v11  ;;  %v263_v12 = vld [vmem:[%s957_s28 + $0x180] sm:$0xff] }
  0x22   : > { %v265_v13 = vld [vmem:[%s957_s28 + $0x1a0] sm:$0xff]  ;;  %264 = vst [vmem:[%s175_s29 + $0x60] sm:$0xff] %v263_v12 }
  0x23   : > { %v267_v14 = vld [vmem:[%s957_s28 + $0x1c0] sm:$0xff]  ;;  %266 = vst [vmem:[%s175_s29 + $0x68] sm:$0xff] %v265_v13 }
  0x24   : > { %268 = vst [vmem:[%s175_s29 + $0x70] sm:$0xff] %v267_v14  ;;  %v269_v15 = vld [vmem:[%s957_s28 + $0x1e0] sm:$0xff] }
  0x25   : > { %270 = vst [vmem:[%s175_s29 + $0x78] sm:$0xff] %v269_v15 }
  0x26 PF: > { %p736_p8 = scmp.ge.s32.totalorder %s886_s16, 1  ;;  %p283_p9 = scmp.lt.s32.totalorder %s886_s16, 5 }
  0x28   : > { %p284_p10 = pnand %p736_p8, %p283_p9 }
  0x29   : > { %s290_s30 = sand.u32 (!%p284_p10), 1, %s870_s12   ;;  %v888_v16 = vmov (!%p284_p10), 0   ;;  %v846_v33 = vld [vmem:[%s1049_s0] sm:$0xff] (!%p284_p10)   ;;  %v847_v34 = vld [vmem:[%s1049_s0 + $0x8] sm:$0xff] (!%p284_p10)   ;;  %s739_s10 = sshll.u32 (!%p284_p10), %s878_s14, 1  ;;  %v557_v35 = vlaneseq (!%p284_p10) }
  0x2a   : > { %287 = sbr.rel (%p284_p10) target bundleno = 304 (0x130), region = 66  ;;  %s737_s4 = sshll.u32 (!%p284_p10), %s290_s30, 7  ;;  %507 = vmatprep.mubr.bf16.mxu0 (!%p284_p10), %v888_v16  ;;  %517 = vmatprep.mubr.bf16.mxu1 (!%p284_p10), %v888_v16 }
  0x2b   : > { %s980_s5 = scalar_lea.vmem (!%p284_p10), [#allocation3], %s737_s4  ;;  %p336_p11 = scmp.lt.s32.totalorder (!%p284_p10), %s739_s10, 7  ;;  %v558_v36 = vshrl.u32 (!%p284_p10), %v557_v35, 7 }
  0x2c   : > { %v822_v17 = vld [vmem:[%s980_s5 + $0x4] ss:$8 sps:$4 sm:$0xff] (!%p284_p10)   ;;  %v824_v18 = vld [vmem:[%s980_s5] ss:$8 sps:$4 sm:$0xff] (!%p284_p10)   ;;  %v825_v19 = vld [vmem:[%s980_s5 + $0x14] ss:$8 sps:$4 sm:$0xff] (!%p284_p10)  }
  0x2d   : > { %475 = vmatprep.subr.bf16.mxu0 (!%p284_p10), %v822_v17  ;;  %765 = vmatprep.subr.bf16.mxu1 (!%p284_p10), %v822_v17  ;;  %v827_v20 = vld [vmem:[%s980_s5 + $0x10] ss:$8 sps:$4 sm:$0xff] (!%p284_p10)   ;;  %v828_v21 = vld [vmem:[%s980_s5 + $0x24] ss:$8 sps:$4 sm:$0xff] (!%p284_p10)   ;;  %v830_v22 = vld [vmem:[%s980_s5 + $0x20] ss:$8 sps:$4 sm:$0xff] (!%p284_p10)  }
  0x2e   : > { %476 = vmatpush1.bf16.msra.mxu0 (!%p284_p10), %v824_v18  ;;  %773 = vmatpush1.bf16.msra.mxu1 (!%p284_p10), %v824_v18  ;;  %v831_v23 = vld [vmem:[%s980_s5 + $0x34] ss:$8 sps:$4 sm:$0xff] (!%p284_p10)   ;;  %v833_v24 = vld [vmem:[%s980_s5 + $0x30] ss:$8 sps:$4 sm:$0xff] (!%p284_p10)   ;;  %v834_v25 = vld [vmem:[%s980_s5 + $0x44] ss:$8 sps:$4 sm:$0xff] (!%p284_p10)  }
  0x2f   : > { %477 = vmatprep.subr.bf16.mxu0 (!%p284_p10), %v825_v19  ;;  %766 = vmatprep.subr.bf16.mxu1 (!%p284_p10), %v825_v19  ;;  %v836_v26 = vld [vmem:[%s980_s5 + $0x40] ss:$8 sps:$4 sm:$0xff] (!%p284_p10)   ;;  %v837_v27 = vld [vmem:[%s980_s5 + $0x54] ss:$8 sps:$4 sm:$0xff] (!%p284_p10)   ;;  %v839_v28 = vld [vmem:[%s980_s5 + $0x50] ss:$8 sps:$4 sm:$0xff] (!%p284_p10)  }
  0x30   : > { %v840_v29 = vld [vmem:[%s980_s5 + $0x64] ss:$8 sps:$4 sm:$0xff] (!%p284_p10)   ;;  %v842_v30 = vld [vmem:[%s980_s5 + $0x60] ss:$8 sps:$4 sm:$0xff] (!%p284_p10)   ;;  %v843_v31 = vld [vmem:[%s980_s5 + $0x74] ss:$8 sps:$4 sm:$0xff] (!%p284_p10)  }
  0x31   : > { %v845_v32 = vld [vmem:[%s980_s5 + $0x70] ss:$8 sps:$4 sm:$0xff]   ;;  %s1061_s10 = smov (!%p336_p11, %s739_s10), 7  ;;  %v559_v37 = vsub.s32 0, %v558_v36  ;;  %v563_v39 = vsub.s32 1, %v558_v36  ;;  %s738_s20 = sshll.u32 %s290_s30, 6 }
  0x32   : > { %478 = vmatpush1.bf16.msra.mxu0 %v827_v20  ;;  %774 = vmatpush1.bf16.msra.mxu1 %v827_v20  ;;  %s338_s19 = scalar_lea.vmem %s1051_s2, %s1061_s10  ;;  %s1010_s23 = scalar_lea.vmem [#allocation4], %s738_s20 }
  0x33   : > { %479 = vmatprep.subr.bf16.mxu0 %v828_v21  ;;  %767 = vmatprep.subr.bf16.mxu1 %v828_v21  ;;  %v555_v38 = vld [vmem:[%s338_s19] sm:$0x3]  ;;  %s764_s12 = sshll.u32 (%p944_p6), %s878_s14, 4 }
  0x34   : > { %v560_v40 = vrot.slane %v555_v38, %v559_v37  ;;  %v564_v41 = vrot.slane %v555_v38, %v563_v39  ;;  %s595_s26 = scalar_lea.vmem (%p944_p6), %s1052_s3, %s764_s12 }
  0x36   : > { %480 = vmatpush1.bf16.msra.mxu0 %v830_v22  ;;  %775 = vmatpush1.bf16.msra.mxu1 %v830_v22 }
  0x37   : > { %481 = vmatprep.subr.bf16.mxu0 %v831_v23  ;;  %768 = vmatprep.subr.bf16.mxu1 %v831_v23 }
  0x3a   : > { %482 = vmatpush1.bf16.msra.mxu0 %v833_v24  ;;  %776 = vmatpush1.bf16.msra.mxu1 %v833_v24 }
  0x3b   : > { %483 = vmatprep.subr.bf16.mxu0 %v834_v25  ;;  %769 = vmatprep.subr.bf16.mxu1 %v834_v25 }
  0x3e   : > { %484 = vmatpush1.bf16.msra.mxu0 %v836_v26  ;;  %777 = vmatpush1.bf16.msra.mxu1 %v836_v26 }
  0x3f   : > { %485 = vmatprep.subr.bf16.mxu0 %v837_v27  ;;  %770 = vmatprep.subr.bf16.mxu1 %v837_v27 }
  0x42   : > { %486 = vmatpush1.bf16.msra.mxu0 %v839_v28  ;;  %778 = vmatpush1.bf16.msra.mxu1 %v839_v28 }
  0x43   : > { %487 = vmatprep.subr.bf16.mxu0 %v840_v29  ;;  %771 = vmatprep.subr.bf16.mxu1 %v840_v29 }
  0x46   : > { %488 = vmatpush1.bf16.msra.mxu0 %v842_v30  ;;  %779 = vmatpush1.bf16.msra.mxu1 %v842_v30 }
  0x47   : > { %489 = vmatprep.subr.bf16.mxu0 %v843_v31  ;;  %772 = vmatprep.subr.bf16.mxu1 %v843_v31 }
  0x4a   : > { %490 = vmatpush1.bf16.msra.mxu0 %v845_v32  ;;  %780 = vmatpush1.bf16.msra.mxu1 %v845_v32 }
  0x4d   : > { %508 = vmatmul.mubr.bf16.vlgmr.msra.gmra.mrb[0].mxu0 %v846_v33  ;;  %518 = vmatmul.mubr.bf16.vlgmr.msra.gmra.mrb[0].mxu1 %v847_v34 }
 0x120   : > { %v509_v42 = vpop.f32.mrb[0].mxu0  ;;  %v519_v43 = vpop.f32.mrb[0].mxu1  ;;  %589 = sbr.rel (!%p944_p6) target bundleno = 304 (0x130), region = 82 }
 0x121   : > { %v567_v44 = vadd.f32 %v560_v40, %v509_v42  ;;  %v571_v45 = vadd.f32 %v560_v40, %v519_v43  ;;  %v511_v46 = vpop.f32.mrb[1].mxu0  ;;  %v521_v47 = vpop.f32.mrb[1].mxu1 }
 0x122   : > { %v568_v48 = vadd.f32 %v564_v41, %v511_v46  ;;  %v572_v49 = vadd.f32 %v564_v41, %v521_v47  ;;  %v513_v50 = vpop.f32.mrb[2].mxu0  ;;  %v523_v51 = vpop.f32.mrb[2].mxu1 }
 0x123   : > { %575 = vst [vmem:[%s1010_s23] sm:$0xff] %v567_v44  ;;  %579 = vst [vmem:[%s1010_s23 + $0x20] sm:$0xff] %v571_v45  ;;  %v569_v52 = vadd.f32 %v560_v40, %v513_v50  ;;  %v573_v53 = vadd.f32 %v560_v40, %v523_v51  ;;  %v515_v54 = vpop.f32.mrb[3].mxu0  ;;  %v525_v55 = vpop.f32.mrb[3].mxu1 }
 0x124   : > { %576 = vst [vmem:[%s1010_s23 + $0x8] sm:$0xff] %v568_v48  ;;  %580 = vst [vmem:[%s1010_s23 + $0x28] sm:$0xff] %v572_v49  ;;  %v570_v56 = vadd.f32 %v564_v41, %v515_v54  ;;  %v574_v57 = vadd.f32 %v564_v41, %v525_v55 }
 0x125   : > { %577 = vst [vmem:[%s1010_s23 + $0x10] sm:$0xff] %v569_v52  ;;  %581 = vst [vmem:[%s1010_s23 + $0x30] sm:$0xff] %v573_v53 }
 0x126   : > { %578 = vst [vmem:[%s1010_s23 + $0x18] sm:$0xff] %v570_v56  ;;  %582 = vst [vmem:[%s1010_s23 + $0x38] sm:$0xff] %v574_v57 }
 0x12a   : > { %v608_v58 = vld [vmem:[%s1010_s23] sm:$0xff] }
 0x12b   : > { %v610_v59 = vld [vmem:[%s1010_s23 + $0x8] sm:$0xff]  ;;  %v616_v62 = vld [vmem:[%s1010_s23 + $0x20] sm:$0xff]  ;;  %609 = vst [vmem:[%s595_s26] sm:$0xff] %v608_v58 }
 0x12c   : > { %v612_v60 = vld [vmem:[%s1010_s23 + $0x10] sm:$0xff]  ;;  %v618_v63 = vld [vmem:[%s1010_s23 + $0x28] sm:$0xff]  ;;  %611 = vst [vmem:[%s595_s26 + $0x8] sm:$0xff] %v610_v59  ;;  %617 = vst [vmem:[%s595_s26 + $0x80] sm:$0xff] %v616_v62 }
 0x12d   : > { %v614_v61 = vld [vmem:[%s1010_s23 + $0x18] sm:$0xff]  ;;  %613 = vst [vmem:[%s595_s26 + $0x40] sm:$0xff] %v612_v60  ;;  %619 = vst [vmem:[%s595_s26 + $0x88] sm:$0xff] %v618_v63  ;;  %v620_v0 = vld [vmem:[%s1010_s23 + $0x30] sm:$0xff] }
 0x12e   : > { %615 = vst [vmem:[%s595_s26 + $0x48] sm:$0xff] %v614_v61  ;;  %v622_v1 = vld [vmem:[%s1010_s23 + $0x38] sm:$0xff]  ;;  %621 = vst [vmem:[%s595_s26 + $0xc0] sm:$0xff] %v620_v0 }
 0x12f   : > { %623 = vst [vmem:[%s595_s26 + $0xc8] sm:$0xff] %v622_v1 }
 0x130 PF: > { %s13_s16 = sadd.s32 1, %s886_s16   ;;  %s1054_s12 = smov %s874_s13 }
 0x131   : > { %p10_p12 = scmp.ge.s32.totalorder %s13_s16, 6   ;;  %s1055_s13 = smov %s949_s22 }
 0x132   : > { %s1056_s14 = smov %s882_s15  ;;  %s1057_s15 = smov %s1059_s17 }
 0x133   :  { %12 = sbr.rel (!%p10_p12) target bundleno = 3 (0x3), region = 142 }

// kernel: asr_forward.11
= control target key start
LH: loop header
LB: loop body
LE: loop exit
PB: predicated region body
PF: predicated region fallthrough
CT: control target
= control target key end

     0   :  { %s1147_s12 = smov 0   ;;  %s1149_s13 = smov 0   ;;  %s1359_s0 = inlined_call_operand.vmem [shape: bf16[32,256], index: 0, kind: input, shape index: {}]   ;;  %s1360_s1 = inlined_call_operand.vmem [shape: bf16[256,1024], index: 1, kind: input, shape index: {}]   ;;  %s1361_s2 = inlined_call_operand.vmem [shape: f32[1,1024], index: 2, kind: input, shape index: {}]   ;;  %s1362_s3 = inlined_call_operand.vmem [shape: f32[32,1024], index: 3, kind: output, shape index: {}]  }
   0x1   :  { %s1151_s14 = smov 0   ;;  %s1153_s15 = smov 0  }
   0x2   :  { %s1155_s16 = smov 0  }
   0x3 LB: > { %s28_s17 = sadd.s32 1, %s1121_s15  ;;  %s906_s18 = sadd.s32 4294967295, %s1125_s16   ;;  %s1125_s16 = sphi %s1155_s16, %s13_s16   ;;  %s1121_s15 = sphi %s1153_s15, %s1367_s15   ;;  %s1117_s14 = sphi %s1151_s14, %s1366_s14   ;;  %s1113_s13 = sphi %s1149_s13, %s1365_s13   ;;  %s1109_s12 = sphi %s1147_s12, %s1364_s12  }
   0x4   : > { %p30_p0 = scmp.ge.s32.totalorder %s28_s17, 4  ;;  %p76_p1 = scmp.ne.s32.totalorder %s1113_s13, %s1109_s12 }
   0x5   : > { %p77_p2 = scmp.eq.s32.totalorder %s1125_s16, 0  ;;  %p134_p4 = scmp.eq.s32.totalorder %s906_s18, 3 }
   0x6   : > { %s1369_s17 = smov (%p30_p0, %s28_s17), 0  ;;  %s69_s20 = sadd.s32 1, %s1113_s13 }
   0x7   : > { %p78_p3 = por %p77_p2, %p76_p1  ;;  %s65_s19 = ssub.s32 %s1121_s15, %s1369_s17 }
   0x8   : > { %p67_p5 = scmp.eq.s32.totalorder %s65_s19, 0  ;;  %p1182_p6 = por %p134_p4, %p76_p1 }
   0x9   : > { %p910_p7 = scmp.ge.s32.totalorder %s1125_s16, 4 }
   0xa   : > { %s1187_s22 = scalar_select %p67_p5, %s1113_s13, %s69_s20  }
   0xb   : > { %171 = sbr.rel (%p910_p7) target bundleno = 54 (0x36), region = 20 }
  0x12   : > { %174 = sbr.rel (!%p78_p3) target bundleno = 54 (0x36), region = 24  ;;  %s176_s23 = sand.u32 (%p78_p3), 1, %s1113_s13  }
  0x13   : > { %s959_s24 = sshll.u32 (%p78_p3), %s1121_s15, 3  ;;  %s911_s25 = sshll.u32 (%p78_p3), %s176_s23, 8 }
  0x14   : > { %s1195_s28 = scalar_lea.vmem (%p78_p3), %s1360_s1, %s959_s24  ;;  %s1200_s29 = scalar_lea.vmem (%p78_p3), [#allocation3], %s911_s25 }
  0x15   : > { %v274_v0 = vld [vmem:[%s1195_s28] sm:$0xff] (%p78_p3) }
  0x16   : > { %v276_v1 = vld [vmem:[%s1195_s28 + $0x20] sm:$0xff] (%p78_p3)  ;;  %275 = vst [vmem:[%s1200_s29] sm:$0xff] (%p78_p3), %v274_v0 }
  0x17   : > { %v278_v2 = vld [vmem:[%s1195_s28 + $0x40] sm:$0xff] (%p78_p3)  ;;  %277 = vst [vmem:[%s1200_s29 + $0x8] sm:$0xff] (%p78_p3), %v276_v1 }
  0x18   : > { %279 = vst [vmem:[%s1200_s29 + $0x10] sm:$0xff] (%p78_p3), %v278_v2  ;;  %v280_v3 = vld [vmem:[%s1195_s28 + $0x60] sm:$0xff] (%p78_p3) }
  0x19   : > { %v282_v4 = vld [vmem:[%s1195_s28 + $0x80] sm:$0xff]  ;;  %281 = vst [vmem:[%s1200_s29 + $0x18] sm:$0xff] %v280_v3 }
  0x1a   : > { %v284_v5 = vld [vmem:[%s1195_s28 + $0xa0] sm:$0xff]  ;;  %283 = vst [vmem:[%s1200_s29 + $0x20] sm:$0xff] %v282_v4 }
  0x1b   : > { %285 = vst [vmem:[%s1200_s29 + $0x28] sm:$0xff] %v284_v5  ;;  %v286_v6 = vld [vmem:[%s1195_s28 + $0xc0] sm:$0xff] }
  0x1c   : > { %v288_v7 = vld [vmem:[%s1195_s28 + $0xe0] sm:$0xff]  ;;  %287 = vst [vmem:[%s1200_s29 + $0x30] sm:$0xff] %v286_v6 }
  0x1d   : > { %v290_v8 = vld [vmem:[%s1195_s28 + $0x100] sm:$0xff]  ;;  %289 = vst [vmem:[%s1200_s29 + $0x38] sm:$0xff] %v288_v7 }
  0x1e   : > { %291 = vst [vmem:[%s1200_s29 + $0x40] sm:$0xff] %v290_v8  ;;  %v292_v9 = vld [vmem:[%s1195_s28 + $0x120] sm:$0xff] }
  0x1f   : > { %v294_v10 = vld [vmem:[%s1195_s28 + $0x140] sm:$0xff]  ;;  %293 = vst [vmem:[%s1200_s29 + $0x48] sm:$0xff] %v292_v9 }
  0x20   : > { %v296_v11 = vld [vmem:[%s1195_s28 + $0x160] sm:$0xff]  ;;  %295 = vst [vmem:[%s1200_s29 + $0x50] sm:$0xff] %v294_v10 }
  0x21   : > { %297 = vst [vmem:[%s1200_s29 + $0x58] sm:$0xff] %v296_v11  ;;  %v298_v12 = vld [vmem:[%s1195_s28 + $0x180] sm:$0xff] }
  0x22   : > { %v300_v13 = vld [vmem:[%s1195_s28 + $0x1a0] sm:$0xff]  ;;  %299 = vst [vmem:[%s1200_s29 + $0x60] sm:$0xff] %v298_v12 }
  0x23   : > { %v302_v14 = vld [vmem:[%s1195_s28 + $0x1c0] sm:$0xff]  ;;  %301 = vst [vmem:[%s1200_s29 + $0x68] sm:$0xff] %v300_v13 }
  0x24   : > { %303 = vst [vmem:[%s1200_s29 + $0x70] sm:$0xff] %v302_v14  ;;  %v304_v15 = vld [vmem:[%s1195_s28 + $0x1e0] sm:$0xff] }
  0x25   : > { %v306_v16 = vld [vmem:[%s1195_s28 + $0x200] sm:$0xff]  ;;  %305 = vst [vmem:[%s1200_s29 + $0x78] sm:$0xff] %v304_v15 }
  0x26   : > { %v308_v17 = vld [vmem:[%s1195_s28 + $0x220] sm:$0xff]  ;;  %307 = vst [vmem:[%s1200_s29 + $0x80] sm:$0xff] %v306_v16 }
  0x27   : > { %309 = vst [vmem:[%s1200_s29 + $0x88] sm:$0xff] %v308_v17  ;;  %v310_v18 = vld [vmem:[%s1195_s28 + $0x240] sm:$0xff] }
  0x28   : > { %v312_v19 = vld [vmem:[%s1195_s28 + $0x260] sm:$0xff]  ;;  %311 = vst [vmem:[%s1200_s29 + $0x90] sm:$0xff] %v310_v18 }
  0x29   : > { %v314_v20 = vld [vmem:[%s1195_s28 + $0x280] sm:$0xff]  ;;  %313 = vst [vmem:[%s1200_s29 + $0x98] sm:$0xff] %v312_v19 }
  0x2a   : > { %315 = vst [vmem:[%s1200_s29 + $0xa0] sm:$0xff] %v314_v20  ;;  %v316_v21 = vld [vmem:[%s1195_s28 + $0x2a0] sm:$0xff] }
  0x2b   : > { %v318_v22 = vld [vmem:[%s1195_s28 + $0x2c0] sm:$0xff]  ;;  %317 = vst [vmem:[%s1200_s29 + $0xa8] sm:$0xff] %v316_v21 }
  0x2c   : > { %v320_v23 = vld [vmem:[%s1195_s28 + $0x2e0] sm:$0xff]  ;;  %319 = vst [vmem:[%s1200_s29 + $0xb0] sm:$0xff] %v318_v22 }
  0x2d   : > { %321 = vst [vmem:[%s1200_s29 + $0xb8] sm:$0xff] %v320_v23  ;;  %v322_v24 = vld [vmem:[%s1195_s28 + $0x300] sm:$0xff] }
  0x2e   : > { %v324_v25 = vld [vmem:[%s1195_s28 + $0x320] sm:$0xff]  ;;  %323 = vst [vmem:[%s1200_s29 + $0xc0] sm:$0xff] %v322_v24 }
  0x2f   : > { %v326_v26 = vld [vmem:[%s1195_s28 + $0x340] sm:$0xff]  ;;  %325 = vst [vmem:[%s1200_s29 + $0xc8] sm:$0xff] %v324_v25 }
  0x30   : > { %327 = vst [vmem:[%s1200_s29 + $0xd0] sm:$0xff] %v326_v26  ;;  %v328_v27 = vld [vmem:[%s1195_s28 + $0x360] sm:$0xff] }
  0x31   : > { %v330_v28 = vld [vmem:[%s1195_s28 + $0x380] sm:$0xff]  ;;  %329 = vst [vmem:[%s1200_s29 + $0xd8] sm:$0xff] %v328_v27 }
  0x32   : > { %v332_v29 = vld [vmem:[%s1195_s28 + $0x3a0] sm:$0xff]  ;;  %331 = vst [vmem:[%s1200_s29 + $0xe0] sm:$0xff] %v330_v28 }
  0x33   : > { %333 = vst [vmem:[%s1200_s29 + $0xe8] sm:$0xff] %v332_v29  ;;  %v334_v30 = vld [vmem:[%s1195_s28 + $0x3c0] sm:$0xff] }
  0x34   : > { %v336_v31 = vld [vmem:[%s1195_s28 + $0x3e0] sm:$0xff]  ;;  %335 = vst [vmem:[%s1200_s29 + $0xf0] sm:$0xff] %v334_v30 }
  0x35   : > { %337 = vst [vmem:[%s1200_s29 + $0xf8] sm:$0xff] %v336_v31 }
  0x36 PF: > { %p914_p8 = scmp.ge.s32.totalorder %s1125_s16, 1  ;;  %p350_p9 = scmp.lt.s32.totalorder %s1125_s16, 5 }
  0x38   : > { %p351_p10 = pnand %p914_p8, %p350_p9 }
  0x39   : > { %s357_s30 = sand.u32 (!%p351_p10), 1, %s1109_s12   ;;  %v1083_v32 = vld [vmem:[%s1359_s0 + $0x4] ss:$8 sps:$4 sm:$0xff] (!%p351_p10)   ;;  %v1086_v33 = vld [vmem:[%s1359_s0 + $0x14] ss:$8 sps:$4 sm:$0xff] (!%p351_p10)   ;;  %s917_s20 = sshll.u32 (!%p351_p10), %s1117_s14, 1  ;;  %v732_v4 = vlaneseq (!%p351_p10) }
  0x3a   : > { %354 = sbr.rel (%p351_p10) target bundleno = 352 (0x160), region = 66  ;;  %s915_s4 = sshll.u32 (!%p351_p10), %s357_s30, 8  ;;  %682 = vmatprep.mubr.bf16.mxu0 (!%p351_p10), %v1083_v32  ;;  %692 = vmatprep.mubr.bf16.mxu1 (!%p351_p10), %v1086_v33  ;;  %v1081_v2 = vld [vmem:[%s1359_s0] ss:$8 sps:$4 sm:$0xff] (!%p351_p10)   ;;  %v1084_v3 = vld [vmem:[%s1359_s0 + $0x10] ss:$8 sps:$4 sm:$0xff] (!%p351_p10)  }
  0x3b   : > { %s1274_s9 = scalar_lea.vmem (!%p351_p10), [#allocation3], %s915_s4  ;;  %p408_p11 = scmp.lt.s32.totalorder (!%p351_p10), %s917_s20, 7  ;;  %v733_v5 = vshrl.u32 (!%p351_p10), %v732_v4, 7 }
  0x3c   : > { %v1033_v34 = vld [vmem:[%s1274_s9 + $0x4] ss:$8 sps:$4 sm:$0xff] (!%p351_p10)   ;;  %v1035_v35 = vld [vmem:[%s1274_s9] ss:$8 sps:$4 sm:$0xff] (!%p351_p10)   ;;  %v1036_v36 = vld [vmem:[%s1274_s9 + $0x14] ss:$8 sps:$4 sm:$0xff] (!%p351_p10)  }
  0x3d   : > { %650 = vmatprep.subr.bf16.mxu0 (!%p351_p10), %v1033_v34  ;;  %961 = vmatprep.subr.bf16.mxu1 (!%p351_p10), %v1033_v34  ;;  %v1038_v37 = vld [vmem:[%s1274_s9 + $0x10] ss:$8 sps:$4 sm:$0xff] (!%p351_p10)   ;;  %v1039_v38 = vld [vmem:[%s1274_s9 + $0x24] ss:$8 sps:$4 sm:$0xff] (!%p351_p10)   ;;  %v1041_v39 = vld [vmem:[%s1274_s9 + $0x20] ss:$8 sps:$4 sm:$0xff] (!%p351_p10)  }
  0x3e   : > { %651 = vmatpush1.bf16.msra.mxu0 (!%p351_p10), %v1035_v35  ;;  %977 = vmatpush1.bf16.msra.mxu1 (!%p351_p10), %v1035_v35  ;;  %v1042_v40 = vld [vmem:[%s1274_s9 + $0x34] ss:$8 sps:$4 sm:$0xff] (!%p351_p10)   ;;  %v1044_v41 = vld [vmem:[%s1274_s9 + $0x30] ss:$8 sps:$4 sm:$0xff] (!%p351_p10)   ;;  %v1045_v42 = vld [vmem:[%s1274_s9 + $0x44] ss:$8 sps:$4 sm:$0xff] (!%p351_p10)  }
  0x3f   : > { %652 = vmatprep.subr.bf16.mxu0 (!%p351_p10), %v1036_v36  ;;  %962 = vmatprep.subr.bf16.mxu1 (!%p351_p10), %v1036_v36  ;;  %v1047_v43 = vld [vmem:[%s1274_s9 + $0x40] ss:$8 sps:$4 sm:$0xff] (!%p351_p10)   ;;  %v1048_v44 = vld [vmem:[%s1274_s9 + $0x54] ss:$8 sps:$4 sm:$0xff] (!%p351_p10)   ;;  %v1050_v45 = vld [vmem:[%s1274_s9 + $0x50] ss:$8 sps:$4 sm:$0xff] (!%p351_p10)  }
  0x40   : > { %v1051_v46 = vld [vmem:[%s1274_s9 + $0x64] ss:$8 sps:$4 sm:$0xff] (!%p351_p10)   ;;  %v1053_v47 = vld [vmem:[%s1274_s9 + $0x60] ss:$8 sps:$4 sm:$0xff] (!%p351_p10)   ;;  %v1054_v48 = vld [vmem:[%s1274_s9 + $0x74] ss:$8 sps:$4 sm:$0xff] (!%p351_p10)  }
  0x41   : > { %v1056_v49 = vld [vmem:[%s1274_s9 + $0x70] ss:$8 sps:$4 sm:$0xff]   ;;  %v1057_v50 = vld [vmem:[%s1274_s9 + $0x84] ss:$8 sps:$4 sm:$0xff]   ;;  %v1059_v51 = vld [vmem:[%s1274_s9 + $0x80] ss:$8 sps:$4 sm:$0xff]  }
  0x42   : > { %653 = vmatpush1.bf16.msra.mxu0 %v1038_v37  ;;  %978 = vmatpush1.bf16.msra.mxu1 %v1038_v37  ;;  %v1060_v52 = vld [vmem:[%s1274_s9 + $0x94] ss:$8 sps:$4 sm:$0xff]   ;;  %v1062_v53 = vld [vmem:[%s1274_s9 + $0x90] ss:$8 sps:$4 sm:$0xff]   ;;  %v1063_v54 = vld [vmem:[%s1274_s9 + $0xa4] ss:$8 sps:$4 sm:$0xff]  }
  0x43   : > { %654 = vmatprep.subr.bf16.mxu0 %v1039_v38  ;;  %963 = vmatprep.subr.bf16.mxu1 %v1039_v38  ;;  %v1065_v55 = vld [vmem:[%s1274_s9 + $0xa0] ss:$8 sps:$4 sm:$0xff]   ;;  %v1066_v56 = vld [vmem:[%s1274_s9 + $0xb4] ss:$8 sps:$4 sm:$0xff]   ;;  %v1068_v57 = vld [vmem:[%s1274_s9 + $0xb0] ss:$8 sps:$4 sm:$0xff]  }
  0x44   : > { %v1069_v58 = vld [vmem:[%s1274_s9 + $0xc4] ss:$8 sps:$4 sm:$0xff]   ;;  %v1071_v59 = vld [vmem:[%s1274_s9 + $0xc0] ss:$8 sps:$4 sm:$0xff]   ;;  %v1072_v60 = vld [vmem:[%s1274_s9 + $0xd4] ss:$8 sps:$4 sm:$0xff]  }
  0x45   : > { %v1074_v61 = vld [vmem:[%s1274_s9 + $0xd0] ss:$8 sps:$4 sm:$0xff]   ;;  %v1075_v62 = vld [vmem:[%s1274_s9 + $0xe4] ss:$8 sps:$4 sm:$0xff]   ;;  %v1077_v63 = vld [vmem:[%s1274_s9 + $0xe0] ss:$8 sps:$4 sm:$0xff]  }
  0x46   : > { %655 = vmatpush1.bf16.msra.mxu0 %v1041_v39  ;;  %979 = vmatpush1.bf16.msra.mxu1 %v1041_v39  ;;  %v1078_v0 = vld [vmem:[%s1274_s9 + $0xf4] ss:$8 sps:$4 sm:$0xff]   ;;  %v1080_v1 = vld [vmem:[%s1274_s9 + $0xf0] ss:$8 sps:$4 sm:$0xff]   ;;  %s1371_s20 = smov (!%p408_p11, %s917_s20), 7  ;;  %v734_v6 = vsub.s32 0, %v733_v5 }
  0x47   : > { %656 = vmatprep.subr.bf16.mxu0 %v1042_v40  ;;  %964 = vmatprep.subr.bf16.mxu1 %v1042_v40  ;;  %s410_s25 = scalar_lea.vmem %s1361_s2, %s1371_s20  ;;  %v738_v8 = vsub.s32 1, %v733_v5  ;;  %s916_s26 = sshll.u32 %s357_s30, 6 }
  0x48   : > { %v730_v7 = vld [vmem:[%s410_s25] sm:$0x3]  ;;  %s1320_s27 = scalar_lea.vmem [#allocation4], %s916_s26  ;;  %s960_s12 = sshll.u32 (%p1182_p6), %s1117_s14, 4 }
  0x49   : > { %v735_v9 = vrot.slane %v730_v7, %v734_v6  ;;  %v739_v10 = vrot.slane %v730_v7, %v738_v8  ;;  %s770_s30 = scalar_lea.vmem (%p1182_p6), %s1362_s3, %s960_s12 }
  0x4a   : > { %657 = vmatpush1.bf16.msra.mxu0 %v1044_v41  ;;  %980 = vmatpush1.bf16.msra.mxu1 %v1044_v41 }
  0x4b   : > { %658 = vmatprep.subr.bf16.mxu0 %v1045_v42  ;;  %965 = vmatprep.subr.bf16.mxu1 %v1045_v42 }
  0x4e   : > { %659 = vmatpush1.bf16.msra.mxu0 %v1047_v43  ;;  %981 = vmatpush1.bf16.msra.mxu1 %v1047_v43 }
  0x4f   : > { %660 = vmatprep.subr.bf16.mxu0 %v1048_v44  ;;  %966 = vmatprep.subr.bf16.mxu1 %v1048_v44 }
  0x52   : > { %661 = vmatpush1.bf16.msra.mxu0 %v1050_v45  ;;  %982 = vmatpush1.bf16.msra.mxu1 %v1050_v45 }
  0x53   : > { %662 = vmatprep.subr.bf16.mxu0 %v1051_v46  ;;  %967 = vmatprep.subr.bf16.mxu1 %v1051_v46 }
  0x56   : > { %663 = vmatpush1.bf16.msra.mxu0 %v1053_v47  ;;  %983 = vmatpush1.bf16.msra.mxu1 %v1053_v47 }
  0x57   : > { %664 = vmatprep.subr.bf16.mxu0 %v1054_v48  ;;  %968 = vmatprep.subr.bf16.mxu1 %v1054_v48 }
  0x5a   : > { %665 = vmatpush1.bf16.msra.mxu0 %v1056_v49  ;;  %984 = vmatpush1.bf16.msra.mxu1 %v1056_v49 }
  0x5b   : > { %666 = vmatprep.subr.bf16.mxu0 %v1057_v50  ;;  %969 = vmatprep.subr.bf16.mxu1 %v1057_v50 }
  0x5e   : > { %667 = vmatpush1.bf16.msra.mxu0 %v1059_v51  ;;  %985 = vmatpush1.bf16.msra.mxu1 %v1059_v51 }
  0x5f   : > { %668 = vmatprep.subr.bf16.mxu0 %v1060_v52  ;;  %970 = vmatprep.subr.bf16.mxu1 %v1060_v52 }
  0x62   : > { %669 = vmatpush1.bf16.msra.mxu0 %v1062_v53  ;;  %986 = vmatpush1.bf16.msra.mxu1 %v1062_v53 }
  0x63   : > { %670 = vmatprep.subr.bf16.mxu0 %v1063_v54  ;;  %971 = vmatprep.subr.bf16.mxu1 %v1063_v54 }
  0x66   : > { %671 = vmatpush1.bf16.msra.mxu0 %v1065_v55  ;;  %987 = vmatpush1.bf16.msra.mxu1 %v1065_v55 }
  0x67   : > { %672 = vmatprep.subr.bf16.mxu0 %v1066_v56  ;;  %972 = vmatprep.subr.bf16.mxu1 %v1066_v56 }
  0x6a   : > { %673 = vmatpush1.bf16.msra.mxu0 %v1068_v57  ;;  %988 = vmatpush1.bf16.msra.mxu1 %v1068_v57 }
  0x6b   : > { %674 = vmatprep.subr.bf16.mxu0 %v1069_v58  ;;  %973 = vmatprep.subr.bf16.mxu1 %v1069_v58 }
  0x6e   : > { %675 = vmatpush1.bf16.msra.mxu0 %v1071_v59  ;;  %989 = vmatpush1.bf16.msra.mxu1 %v1071_v59 }
  0x6f   : > { %676 = vmatprep.subr.bf16.mxu0 %v1072_v60  ;;  %974 = vmatprep.subr.bf16.mxu1 %v1072_v60 }
  0x72   : > { %677 = vmatpush1.bf16.msra.mxu0 %v1074_v61  ;;  %990 = vmatpush1.bf16.msra.mxu1 %v1074_v61 }
  0x73   : > { %678 = vmatprep.subr.bf16.mxu0 %v1075_v62  ;;  %975 = vmatprep.subr.bf16.mxu1 %v1075_v62 }
  0x76   : > { %679 = vmatpush1.bf16.msra.mxu0 %v1077_v63  ;;  %991 = vmatpush1.bf16.msra.mxu1 %v1077_v63 }
  0x77   : > { %680 = vmatprep.subr.bf16.mxu0 %v1078_v0  ;;  %976 = vmatprep.subr.bf16.mxu1 %v1078_v0 }
  0x7a   : > { %681 = vmatpush1.bf16.msra.mxu0 %v1080_v1  ;;  %992 = vmatpush1.bf16.msra.mxu1 %v1080_v1 }
  0x7d   : > { %683 = vmatmul.mubr.bf16.vlgmr.msra.gmra.mrb[0].mxu0 %v1081_v2  ;;  %693 = vmatmul.mubr.bf16.vlgmr.msra.gmra.mrb[0].mxu1 %v1084_v3 }
 0x150   : > { %v684_v11 = vpop.f32.mrb[0].mxu0  ;;  %v694_v12 = vpop.f32.mrb[0].mxu1  ;;  %764 = sbr.rel (!%p1182_p6) target bundleno = 352 (0x160), region = 82 }
 0x151   : > { %v742_v13 = vadd.f32 %v735_v9, %v684_v11  ;;  %v746_v14 = vadd.f32 %v735_v9, %v694_v12  ;;  %v686_v15 = vpop.f32.mrb[1].mxu0  ;;  %v696_v16 = vpop.f32.mrb[1].mxu1 }
 0x152   : > { %v743_v17 = vadd.f32 %v739_v10, %v686_v15  ;;  %v747_v18 = vadd.f32 %v739_v10, %v696_v16  ;;  %v688_v19 = vpop.f32.mrb[2].mxu0  ;;  %v698_v20 = vpop.f32.mrb[2].mxu1 }
 0x153   : > { %750 = vst [vmem:[%s1320_s27] sm:$0xff] %v742_v13  ;;  %754 = vst [vmem:[%s1320_s27 + $0x20] sm:$0xff] %v746_v14  ;;  %v744_v21 = vadd.f32 %v735_v9, %v688_v19  ;;  %v748_v22 = vadd.f32 %v735_v9, %v698_v20  ;;  %v690_v23 = vpop.f32.mrb[3].mxu0  ;;  %v700_v24 = vpop.f32.mrb[3].mxu1 }
 0x154   : > { %751 = vst [vmem:[%s1320_s27 + $0x8] sm:$0xff] %v743_v17  ;;  %755 = vst [vmem:[%s1320_s27 + $0x28] sm:$0xff] %v747_v18  ;;  %v745_v25 = vadd.f32 %v739_v10, %v690_v23  ;;  %v749_v26 = vadd.f32 %v739_v10, %v700_v24 }
 0x155   : > { %752 = vst [vmem:[%s1320_s27 + $0x10] sm:$0xff] %v744_v21  ;;  %756 = vst [vmem:[%s1320_s27 + $0x30] sm:$0xff] %v748_v22 }
 0x156   : > { %753 = vst [vmem:[%s1320_s27 + $0x18] sm:$0xff] %v745_v25  ;;  %757 = vst [vmem:[%s1320_s27 + $0x38] sm:$0xff] %v749_v26 }
 0x15a   : > { %v783_v27 = vld [vmem:[%s1320_s27] sm:$0xff] }
 0x15b   : > { %v785_v28 = vld [vmem:[%s1320_s27 + $0x8] sm:$0xff]  ;;  %v791_v31 = vld [vmem:[%s1320_s27 + $0x20] sm:$0xff]  ;;  %784 = vst [vmem:[%s770_s30] sm:$0xff] %v783_v27 }
 0x15c   : > { %v787_v29 = vld [vmem:[%s1320_s27 + $0x10] sm:$0xff]  ;;  %v793_v32 = vld [vmem:[%s1320_s27 + $0x28] sm:$0xff]  ;;  %786 = vst [vmem:[%s770_s30 + $0x8] sm:$0xff] %v785_v28  ;;  %792 = vst [vmem:[%s770_s30 + $0x80] sm:$0xff] %v791_v31 }
 0x15d   : > { %v789_v30 = vld [vmem:[%s1320_s27 + $0x18] sm:$0xff]  ;;  %788 = vst [vmem:[%s770_s30 + $0x40] sm:$0xff] %v787_v29  ;;  %794 = vst [vmem:[%s770_s30 + $0x88] sm:$0xff] %v793_v32  ;;  %v795_v33 = vld [vmem:[%s1320_s27 + $0x30] sm:$0xff] }
 0x15e   : > { %790 = vst [vmem:[%s770_s30 + $0x48] sm:$0xff] %v789_v30  ;;  %v797_v34 = vld [vmem:[%s1320_s27 + $0x38] sm:$0xff]  ;;  %796 = vst [vmem:[%s770_s30 + $0xc0] sm:$0xff] %v795_v33 }
 0x15f   : > { %798 = vst [vmem:[%s770_s30 + $0xc8] sm:$0xff] %v797_v34 }
 0x160 PF: > { %s13_s16 = sadd.s32 1, %s1125_s16   ;;  %s1364_s12 = smov %s1113_s13 }
 0x161   : > { %p10_p12 = scmp.ge.s32.totalorder %s13_s16, 6   ;;  %s1365_s13 = smov %s1187_s22 }
 0x162   : > { %s1366_s14 = smov %s1121_s15  ;;  %s1367_s15 = smov %s1369_s17 }
 0x163   :  { %12 = sbr.rel (!%p10_p12) target bundleno = 3 (0x3), region = 142 }

// kernel: asr_forward.10
= control target key start
LH: loop header
LB: loop body
LE: loop exit
PB: predicated region body
PF: predicated region fallthrough
CT: control target
= control target key end

     0   :  { %v3790_v6 = vmov 0.0|0.0   ;;  %v3792_v29 = vmov 0   ;;  %s3784_s0 = inlined_call_operand.vmem [shape: f32[4,8,1024], index: 0, kind: input, shape index: {}, may-alias: {0,1}]   ;;  %s3785_s1 = inlined_call_operand.vmem [shape: f32[4,8,1024], index: 1, kind: input, shape index: {}, may-alias: {0,1}]   ;;  %s3786_s2 = inlined_call_operand.vmem [shape: bf16[256,1024], index: 2, kind: input, shape index: {}]   ;;  %s3787_s3 = inlined_call_operand.vmem [shape: s32[8,1], index: 3, kind: input, shape index: {}]   ;;  %s3788_s4 = inlined_call_operand.vmem [shape: f32[4,8,128], index: 4, kind: output, shape index: {0}]   ;;  %s3789_s5 = inlined_call_operand.vmem [shape: f32[4,8,128], index: 5, kind: output, shape index: {1}]  }
   0x1   :  { %v148_v0 = vld [vmem:[%s3786_s2] sm:$0xff]  ;;  %954 = vmatprep.mubr.bf16.mxu0 %v3790_v6  ;;  %995 = vmatprep.mubr.bf16.mxu1 %v3790_v6  ;;  %v149_v10 = vld [vmem:[%s3786_s2 + $0x8] sm:$0xff] }
   0x2   :  { %v152_v1 = vld [vmem:[%s3786_s2 + $0x20] sm:$0xff]  ;;  %v153_v11 = vld [vmem:[%s3786_s2 + $0x28] sm:$0xff]  ;;  %2226 = vset.pattern.permute.xlu0 %v3792_v29  ;;  %2227 = vset.pattern.permute.xlu1 %v3792_v29 }
   0x3   :  { %v156_v2 = vld [vmem:[%s3786_s2 + $0x40] sm:$0xff]  ;;  %v2397_v3 = vcombine.high %v148_v0, %v152_v1  ;;  %v2399_v4 = vcombine.low %v148_v0, %v152_v1  ;;  %v2424_v13 = vcombine.high %v149_v10, %v153_v11  ;;  %v2426_v14 = vcombine.low %v149_v10, %v153_v11  ;;  %v157_v15 = vld [vmem:[%s3786_s2 + $0x48] sm:$0xff] }
   0x4   :  { %v160_v5 = vld [vmem:[%s3786_s2 + $0x60] sm:$0xff]  ;;  %v161_v16 = vld [vmem:[%s3786_s2 + $0x68] sm:$0xff] }
   0x5   :  { %v2406_v7 = vcombine.high %v156_v2, %v160_v5  ;;  %v164_v8 = vld [vmem:[%s3786_s2 + $0x80] sm:$0xff]  ;;  %922 = vmatprep.subr.bf16.mxu0 %v2397_v3  ;;  %v2422_v12 = vcombine.low %v156_v2, %v160_v5  ;;  %v2437_v18 = vcombine.high %v157_v15, %v161_v16  ;;  %v165_v19 = vld [vmem:[%s3786_s2 + $0x88] sm:$0xff]  ;;  %963 = vmatprep.subr.bf16.mxu1 %v2424_v13 }
   0x6   :  { %v168_v9 = vld [vmem:[%s3786_s2 + $0xa0] sm:$0xff]  ;;  %923 = vmatpush1.bf16.msra.mxu0 %v2399_v4  ;;  %v169_v20 = vld [vmem:[%s3786_s2 + $0xa8] sm:$0xff]  ;;  %964 = vmatpush1.bf16.msra.mxu1 %v2426_v14  ;;  %v2453_v23 = vcombine.low %v157_v15, %v161_v16 }
   0x7   :  { %924 = vmatprep.subr.bf16.mxu0 %v2406_v7  ;;  %v2435_v17 = vcombine.high %v164_v8, %v168_v9  ;;  %v172_v21 = vld [vmem:[%s3786_s2 + $0xc0] sm:$0xff]  ;;  %v2456_v24 = vcombine.low %v164_v8, %v168_v9  ;;  %965 = vmatprep.subr.bf16.mxu1 %v2437_v18  ;;  %v2459_v25 = vcombine.high %v165_v19, %v169_v20  ;;  %v173_v27 = vld [vmem:[%s3786_s2 + $0xc8] sm:$0xff] }
   0x8   :  { %v176_v22 = vld [vmem:[%s3786_s2 + $0xe0] sm:$0xff]  ;;  %v177_v28 = vld [vmem:[%s3786_s2 + $0xe8] sm:$0xff]  ;;  %v2479_v32 = vcombine.low %v165_v19, %v169_v20 }
   0x9   :  { %v2462_v26 = vcombine.high %v172_v21, %v176_v22  ;;  %v180_v30 = vld [vmem:[%s3786_s2 + $0x100] sm:$0xff]  ;;  %v2482_v33 = vcombine.low %v172_v21, %v176_v22  ;;  %v2485_v34 = vcombine.high %v173_v27, %v177_v28  ;;  %v181_v36 = vld [vmem:[%s3786_s2 + $0x108] sm:$0xff]  ;;  %v2503_v40 = vcombine.low %v173_v27, %v177_v28 }
   0xa   :  { %925 = vmatpush1.bf16.msra.mxu0 %v2422_v12  ;;  %v184_v31 = vld [vmem:[%s3786_s2 + $0x120] sm:$0xff]  ;;  %966 = vmatpush1.bf16.msra.mxu1 %v2453_v23  ;;  %v185_v37 = vld [vmem:[%s3786_s2 + $0x128] sm:$0xff] }
   0xb   :  { %926 = vmatprep.subr.bf16.mxu0 %v2435_v17  ;;  %967 = vmatprep.subr.bf16.mxu1 %v2459_v25  ;;  %v2488_v35 = vcombine.high %v180_v30, %v184_v31  ;;  %v188_v38 = vld [vmem:[%s3786_s2 + $0x140] sm:$0xff]  ;;  %v2506_v41 = vcombine.low %v180_v30, %v184_v31  ;;  %v2509_v42 = vcombine.high %v181_v36, %v185_v37  ;;  %v189_v44 = vld [vmem:[%s3786_s2 + $0x148] sm:$0xff] }
   0xc   :  { %v192_v39 = vld [vmem:[%s3786_s2 + $0x160] sm:$0xff]  ;;  %v193_v45 = vld [vmem:[%s3786_s2 + $0x168] sm:$0xff]  ;;  %v2527_v48 = vcombine.low %v181_v36, %v185_v37 }
   0xd   :  { %3985 = vst [vmem:[#allocation6_spill] sm:$0xff] %v2488_v35  ;;  %3986 = vst [vmem:[#allocation7_spill] sm:$0xff] %v2506_v41  ;;  %v2512_v43 = vcombine.high %v188_v38, %v192_v39  ;;  %v196_v46 = vld [vmem:[%s3786_s2 + $0x180] sm:$0xff]  ;;  %v2530_v49 = vcombine.low %v188_v38, %v192_v39  ;;  %v2533_v50 = vcombine.high %v189_v44, %v193_v45  ;;  %v197_v52 = vld [vmem:[%s3786_s2 + $0x188] sm:$0xff] }
   0xe   :  { %927 = vmatpush1.bf16.msra.mxu0 %v2456_v24  ;;  %968 = vmatpush1.bf16.msra.mxu1 %v2479_v32  ;;  %3987 = vst [vmem:[#allocation8_spill] sm:$0xff] %v2509_v42  ;;  %v200_v47 = vld [vmem:[%s3786_s2 + $0x1a0] sm:$0xff]  ;;  %3989 = vst [vmem:[#allocation10_spill] sm:$0xff] %v2527_v48  ;;  %v201_v53 = vld [vmem:[%s3786_s2 + $0x1a8] sm:$0xff]  ;;  %v2551_v56 = vcombine.low %v189_v44, %v193_v45 }
   0xf   :  { %928 = vmatprep.subr.bf16.mxu0 %v2462_v26  ;;  %969 = vmatprep.subr.bf16.mxu1 %v2485_v34  ;;  %3988 = vst [vmem:[#allocation9_spill] sm:$0xff] %v2512_v43  ;;  %3990 = vst [vmem:[#allocation11_spill] sm:$0xff] %v2530_v49  ;;  %v2536_v51 = vcombine.high %v196_v46, %v200_v47  ;;  %v204_v54 = vld [vmem:[%s3786_s2 + $0x1c0] sm:$0xff]  ;;  %v2554_v57 = vcombine.low %v196_v46, %v200_v47  ;;  %v205_v60 = vld [vmem:[%s3786_s2 + $0x1c8] sm:$0xff] }
  0x10   :  { %3991 = vst [vmem:[#allocation12_spill] sm:$0xff] %v2533_v50  ;;  %v208_v55 = vld [vmem:[%s3786_s2 + $0x1e0] sm:$0xff]  ;;  %3993 = vst [vmem:[#allocation14_spill] sm:$0xff] %v2551_v56  ;;  %v2557_v58 = vcombine.high %v197_v52, %v201_v53  ;;  %v209_v61 = vld [vmem:[%s3786_s2 + $0x1e8] sm:$0xff]  ;;  %v2575_v0 = vcombine.low %v197_v52, %v201_v53 }
  0x11   :  { %3992 = vst [vmem:[#allocation13_spill] sm:$0xff] %v2536_v51  ;;  %3994 = vst [vmem:[#allocation15_spill] sm:$0xff] %v2554_v57  ;;  %v2560_v59 = vcombine.high %v204_v54, %v208_v55  ;;  %v212_v62 = vld [vmem:[%s3786_s2 + $0x200] sm:$0xff]  ;;  %v2578_v1 = vcombine.low %v204_v54, %v208_v55  ;;  %v2581_v2 = vcombine.high %v205_v60, %v209_v61  ;;  %v213_v8 = vld [vmem:[%s3786_s2 + $0x208] sm:$0xff] }
  0x12   :  { %929 = vmatpush1.bf16.msra.mxu0 %v2482_v33  ;;  %970 = vmatpush1.bf16.msra.mxu1 %v2503_v40  ;;  %3995 = vst [vmem:[#allocation16_spill] sm:$0xff] %v2557_v58  ;;  %v216_v63 = vld [vmem:[%s3786_s2 + $0x220] sm:$0xff]  ;;  %3997 = vst [vmem:[#allocation18_spill] sm:$0xff] %v2575_v0  ;;  %v217_v9 = vld [vmem:[%s3786_s2 + $0x228] sm:$0xff]  ;;  %v2599_v15 = vcombine.low %v205_v60, %v209_v61 }
  0x13   :  { %930 = vmatprep.subr.bf16.mxu0 %v2488_v35  ;;  %971 = vmatprep.subr.bf16.mxu1 %v2509_v42  ;;  %3996 = vst [vmem:[#allocation17_spill] sm:$0xff] %v2560_v59  ;;  %3998 = vst [vmem:[#allocation19_spill] sm:$0xff] %v2578_v1  ;;  %v2584_v5 = vcombine.high %v212_v62, %v216_v63  ;;  %v220_v10 = vld [vmem:[%s3786_s2 + $0x240] sm:$0xff]  ;;  %v2602_v16 = vcombine.low %v212_v62, %v216_v63  ;;  %v221_v21 = vld [vmem:[%s3786_s2 + $0x248] sm:$0xff] }
  0x14   :  { %3999 = vst [vmem:[#allocation20_spill] sm:$0xff] %v2581_v2  ;;  %v224_v11 = vld [vmem:[%s3786_s2 + $0x260] sm:$0xff]  ;;  %4001 = vst [vmem:[#allocation22_spill] sm:$0xff] %v2599_v15  ;;  %v2605_v19 = vcombine.high %v213_v8, %v217_v9  ;;  %v225_v22 = vld [vmem:[%s3786_s2 + $0x268] sm:$0xff]  ;;  %v2623_v30 = vcombine.low %v213_v8, %v217_v9 }
  0x15   :  { %4000 = vst [vmem:[#allocation21_spill] sm:$0xff] %v2584_v5  ;;  %4002 = vst [vmem:[#allocation23_spill] sm:$0xff] %v2602_v16  ;;  %v2608_v20 = vcombine.high %v220_v10, %v224_v11  ;;  %v228_v27 = vld [vmem:[%s3786_s2 + $0x280] sm:$0xff]  ;;  %v2626_v31 = vcombine.low %v220_v10, %v224_v11  ;;  %v2629_v36 = vcombine.high %v221_v21, %v225_v22  ;;  %v229_v38 = vld [vmem:[%s3786_s2 + $0x288] sm:$0xff] }
  0x16   :  { %931 = vmatpush1.bf16.msra.mxu0 %v2506_v41  ;;  %972 = vmatpush1.bf16.msra.mxu1 %v2527_v48  ;;  %4003 = vst [vmem:[#allocation24_spill] sm:$0xff] %v2605_v19  ;;  %v232_v28 = vld [vmem:[%s3786_s2 + $0x2a0] sm:$0xff]  ;;  %4005 = vst [vmem:[#allocation26_spill] sm:$0xff] %v2623_v30  ;;  %v233_v39 = vld [vmem:[%s3786_s2 + $0x2a8] sm:$0xff]  ;;  %v2647_v46 = vcombine.low %v221_v21, %v225_v22 }
  0x17   :  { %932 = vmatprep.subr.bf16.mxu0 %v2512_v43  ;;  %973 = vmatprep.subr.bf16.mxu1 %v2533_v50  ;;  %4004 = vst [vmem:[#allocation25_spill] sm:$0xff] %v2608_v20  ;;  %4006 = vst [vmem:[#allocation27_spill] sm:$0xff] %v2626_v31  ;;  %v2632_v37 = vcombine.high %v228_v27, %v232_v28  ;;  %v236_v44 = vld [vmem:[%s3786_s2 + $0x2c0] sm:$0xff]  ;;  %v2650_v47 = vcombine.low %v228_v27, %v232_v28  ;;  %v237_v54 = vld [vmem:[%s3786_s2 + $0x2c8] sm:$0xff] }
  0x18   :  { %4007 = vst [vmem:[#allocation28_spill] sm:$0xff] %v2629_v36  ;;  %v240_v45 = vld [vmem:[%s3786_s2 + $0x2e0] sm:$0xff]  ;;  %4009 = vst [vmem:[#allocation30_spill] sm:$0xff] %v2647_v46  ;;  %v2653_v52 = vcombine.high %v229_v38, %v233_v39  ;;  %v241_v55 = vld [vmem:[%s3786_s2 + $0x2e8] sm:$0xff]  ;;  %v2676_v63 = vcombine.low %v229_v38, %v233_v39 }
  0x19   :  { %4008 = vst [vmem:[#allocation29_spill] sm:$0xff] %v2632_v37  ;;  %4010 = vst [vmem:[#allocation31_spill] sm:$0xff] %v2650_v47  ;;  %v2656_v53 = vcombine.high %v236_v44, %v240_v45  ;;  %v244_v60 = vld [vmem:[%s3786_s2 + $0x300] sm:$0xff]  ;;  %v2681_v8 = vcombine.low %v236_v44, %v240_v45  ;;  %v2684_v9 = vcombine.high %v237_v54, %v241_v55  ;;  %v245_v21 = vld [vmem:[%s3786_s2 + $0x308] sm:$0xff] }
  0x1a   :  { %933 = vmatpush1.bf16.msra.mxu0 %v2530_v49  ;;  %974 = vmatpush1.bf16.msra.mxu1 %v2551_v56  ;;  %4011 = vst [vmem:[#allocation32_spill] sm:$0xff] %v2653_v52  ;;  %v248_v61 = vld [vmem:[%s3786_s2 + $0x320] sm:$0xff]  ;;  %4014 = vst [vmem:[#allocation35_spill] sm:$0xff] %v2676_v63  ;;  %v249_v22 = vld [vmem:[%s3786_s2 + $0x328] sm:$0xff]  ;;  %v2706_v39 = vcombine.low %v237_v54, %v241_v55 }
  0x1b   :  { %934 = vmatprep.subr.bf16.mxu0 %v2536_v51  ;;  %975 = vmatprep.subr.bf16.mxu1 %v2557_v58  ;;  %4012 = vst [vmem:[#allocation33_spill] sm:$0xff] %v2656_v53  ;;  %v2673_v62 = vld [vmem:[%s3787_s3] sm:$0xff]  ;;  %4015 = vst [vmem:[#allocation36_spill] sm:$0xff] %v2681_v8  ;;  %v2688_v11 = vcombine.high %v244_v60, %v248_v61  ;;  %v2710_v44 = vcombine.low %v244_v60, %v248_v61  ;;  %v257_v54 = vld [vmem:[%s3786_s2 + $0x368] sm:$0xff]  ;;  %v4023_v61 = vmov 0  }
  0x1c   :  { %4013 = vst [vmem:[#allocation34_spill] sm:$0xff] %v2673_v62  ;;  %vm1156_vm0 = vcmp.gt.s32.totalorder %v2673_v62, 3  ;;  %vm1154_vm1 = vcmp.gt.s32.totalorder %v2673_v62, 0  ;;  %4016 = vst [vmem:[#allocation37_spill] sm:$0xff] %v2684_v9  ;;  %v252_v27 = vld [vmem:[%s3786_s2 + $0x340] sm:$0xff]  ;;  %vm1421_vm2 = vcmp.gt.s32.totalorder %v2673_v62, 1  ;;  %v2713_v45 = vcombine.high %v245_v21, %v249_v22 }
  0x1d   :  { %v1164_v10 = vsel %vm1156_vm0, 1, %v3792_v29  ;;  %4017 = vst [vmem:[#allocation38_spill] sm:$0xff] %v2688_v11  ;;  %v256_v28 = vld [vmem:[%s3786_s2 + $0x360] sm:$0xff]  ;;  %v2703_v38 = vsel %vm1154_vm1, 1, %v3792_v29  ;;  %4019 = vst [vmem:[#allocation40_spill] sm:$0xff] %v2706_v39  ;;  %v253_v29 = vld [vmem:[%s3786_s2 + $0x348] sm:$0xff] }
  0x1e   :  { %935 = vmatpush1.bf16.msra.mxu0 %v2554_v57  ;;  %976 = vmatpush1.bf16.msra.mxu1 %v2575_v0  ;;  %4018 = vst [vmem:[#allocation39_spill] sm:$0xff] %v2703_v38  ;;  %4020 = vst [vmem:[#allocation41_spill] sm:$0xff] %v2710_v44  ;;  %v2716_v6 = vcombine.high %v252_v27, %v256_v28  ;;  %v260_v55 = vld [vmem:[%s3786_s2 + $0x380] sm:$0xff]  ;;  %v2732_v62 = vsel %vm1421_vm2, 1, %v4023_v61  ;;  %v261_v61 = vld [vmem:[%s3786_s2 + $0x388] sm:$0xff] }
  0x1f   :  { %936 = vmatprep.subr.bf16.mxu0 %v2560_v59  ;;  %977 = vmatprep.subr.bf16.mxu1 %v2581_v2  ;;  %4021 = vst [vmem:[#allocation42_spill] sm:$0xff] %v2713_v45  ;;  %v264_v60 = vld [vmem:[%s3786_s2 + $0x3a0] sm:$0xff]  ;;  %4024 = vst [vmem:[#allocation44_spill] sm:$0xff] %v2732_v62 }
  0x20   :  { %1166 = vperm.xlu0 %2226, %v1164_v10   ;;  %4022 = vst [vmem:[#allocation43_spill] sm:$0xff] %v2716_v6 }
  0x22   :  { %937 = vmatpush1.bf16.msra.mxu0 %v2578_v1  ;;  %978 = vmatpush1.bf16.msra.mxu1 %v2599_v15 }
  0x23   :  { %938 = vmatprep.subr.bf16.mxu0 %v2584_v5  ;;  %979 = vmatprep.subr.bf16.mxu1 %v2605_v19 }
  0x24   :  { %1159 = vperm.xlu0 %2226, %v2703_v38   ;;  %v2741_v38 = vcombine.high %v253_v29, %v257_v54 }
  0x26   :  { %939 = vmatpush1.bf16.msra.mxu0 %v2602_v16  ;;  %980 = vmatpush1.bf16.msra.mxu1 %v2623_v30  ;;  %4027 = vst [vmem:[#allocation47_spill] sm:$0xff] %v2741_v38 }
  0x27   :  { %940 = vmatprep.subr.bf16.mxu0 %v2608_v20  ;;  %981 = vmatprep.subr.bf16.mxu1 %v2629_v36 }
  0x28   :  { %1701 = vperm.xlu0 %2226, %v2732_v62  }
  0x2a   :  { %941 = vmatpush1.bf16.msra.mxu0 %v2626_v31  ;;  %982 = vmatpush1.bf16.msra.mxu1 %v2647_v46 }
  0x2b   :  { %942 = vmatprep.subr.bf16.mxu0 %v2632_v37  ;;  %983 = vmatprep.subr.bf16.mxu1 %v2653_v52 }
  0x2c   :  { %1961 = vperm.xlu0 %2226, %v1164_v10  }
  0x2e   :  { %943 = vmatpush1.bf16.msra.mxu0 %v2650_v47  ;;  %984 = vmatpush1.bf16.msra.mxu1 %v2676_v63 }
  0x2f   :  { %944 = vmatprep.subr.bf16.mxu0 %v2656_v53  ;;  %985 = vmatprep.subr.bf16.mxu1 %v2684_v9  ;;  %v2744_v9 = vcombine.high %v260_v55, %v264_v60 }
  0x31   :  { %4028 = vst [vmem:[#allocation48_spill] sm:$0xff] %v2744_v9 }
  0x32   :  { %945 = vmatpush1.bf16.msra.mxu0 %v2681_v8  ;;  %986 = vmatpush1.bf16.msra.mxu1 %v2706_v39  ;;  %v2738_v8 = vcombine.low %v252_v27, %v256_v28  ;;  %v272_v27 = vld [vmem:[%s3786_s2 + $0x3e0] sm:$0xff]  ;;  %v2760_v28 = vcombine.low %v253_v29, %v257_v54  ;;  %v273_v29 = vld [vmem:[%s3786_s2 + $0x3e8] sm:$0xff]  ;;  %v150_v54 = vld [vmem:[%s3786_s2 + $0x10] sm:$0xff] }
  0x33   :  { %946 = vmatprep.subr.bf16.mxu0 %v2688_v11  ;;  %v2735_v11 = vcombine.low %v245_v21, %v249_v22  ;;  %987 = vmatprep.subr.bf16.mxu1 %v2713_v45  ;;  %v265_v21 = vld [vmem:[%s3786_s2 + $0x3a8] sm:$0xff]  ;;  %v268_v22 = vld [vmem:[%s3786_s2 + $0x3c0] sm:$0xff] }
  0x34   :  { %4026 = vst [vmem:[#allocation46_spill] sm:$0xff] %v2738_v8  ;;  %4029 = vst [vmem:[#allocation49_spill] sm:$0xff] %v2760_v28  ;;  %v2769_v62 = vcombine.high %v268_v22, %v272_v27  ;;  %v269_v45 = vld [vmem:[%s3786_s2 + $0x3c8] sm:$0xff] }
  0x35   :  { %4025 = vst [vmem:[#allocation45_spill] sm:$0xff] %v2735_v11 }
  0x36   :  { %947 = vmatpush1.bf16.msra.mxu0 %v2710_v44  ;;  %988 = vmatpush1.bf16.msra.mxu1 %v2735_v11  ;;  %v2766_v44 = vcombine.high %v261_v61, %v265_v21  ;;  %4032 = vst [vmem:[#allocation52_spill] sm:$0xff] %v2769_v62  ;;  %v167_v11 = vld [vmem:[%s3786_s2 + $0x98] sm:$0xff] }
  0x37   :  { %948 = vmatprep.subr.bf16.mxu0 %v2716_v6  ;;  %v2763_v6 = vcombine.low %v260_v55, %v264_v60  ;;  %989 = vmatprep.subr.bf16.mxu1 %v2741_v38  ;;  %v154_v55 = vld [vmem:[%s3786_s2 + $0x30] sm:$0xff]  ;;  %v2784_v60 = vcombine.low %v261_v61, %v265_v21  ;;  %v151_v38 = vld [vmem:[%s3786_s2 + $0x18] sm:$0xff] }
  0x38   :  { %4031 = vst [vmem:[#allocation51_spill] sm:$0xff] %v2766_v44  ;;  %v2793_v10 = vcombine.high %v150_v54, %v154_v55  ;;  %v155_v61 = vld [vmem:[%s3786_s2 + $0x38] sm:$0xff]  ;;  %v158_v21 = vld [vmem:[%s3786_s2 + $0x50] sm:$0xff] }
  0x39   :  { %4030 = vst [vmem:[#allocation50_spill] sm:$0xff] %v2763_v6  ;;  %4033 = vst [vmem:[#allocation53_spill] sm:$0xff] %v2784_v60 }
  0x3a   :  { %949 = vmatpush1.bf16.msra.mxu0 %v2738_v8  ;;  %990 = vmatpush1.bf16.msra.mxu1 %v2760_v28  ;;  %v2790_v8 = vcombine.high %v269_v45, %v273_v29  ;;  %4036 = vst [vmem:[#allocation56_spill] sm:$0xff] %v2793_v10  ;;  %v159_v28 = vld [vmem:[%s3786_s2 + $0x58] sm:$0xff] }
  0x3b   :  { %950 = vmatprep.subr.bf16.mxu0 %v2744_v9  ;;  %v2787_v9 = vcombine.low %v268_v22, %v272_v27  ;;  %991 = vmatprep.subr.bf16.mxu1 %v2766_v44  ;;  %v162_v22 = vld [vmem:[%s3786_s2 + $0x70] sm:$0xff]  ;;  %v2808_v27 = vcombine.low %v269_v45, %v273_v29  ;;  %v163_v45 = vld [vmem:[%s3786_s2 + $0x78] sm:$0xff] }
  0x3c   :  { %4035 = vst [vmem:[#allocation55_spill] sm:$0xff] %v2790_v8  ;;  %v2817_v44 = vcombine.high %v158_v21, %v162_v22  ;;  %v166_v29 = vld [vmem:[%s3786_s2 + $0x90] sm:$0xff] }
  0x3d   :  { %4034 = vst [vmem:[#allocation54_spill] sm:$0xff] %v2787_v9  ;;  %4037 = vst [vmem:[#allocation57_spill] sm:$0xff] %v2808_v27 }
  0x3e   :  { %951 = vmatpush1.bf16.msra.mxu0 %v2763_v6  ;;  %992 = vmatpush1.bf16.msra.mxu1 %v2784_v60  ;;  %v2814_v6 = vcombine.high %v151_v38, %v155_v61  ;;  %4040 = vst [vmem:[#allocation60_spill] sm:$0xff] %v2817_v44 }
  0x3f   :  { %952 = vmatprep.subr.bf16.mxu0 %v2769_v62  ;;  %v2811_v62 = vcombine.low %v150_v54, %v154_v55  ;;  %993 = vmatprep.subr.bf16.mxu1 %v2790_v8  ;;  %v170_v54 = vld [vmem:[%s3786_s2 + $0xb0] sm:$0xff]  ;;  %v4041_v55 = vmov 0.0|0.0   ;;  %v2839_v8 = vcombine.high %v159_v28, %v163_v45 }
  0x40   :  { %4039 = vst [vmem:[#allocation59_spill] sm:$0xff] %v2814_v6  ;;  %v2842_v60 = vcombine.high %v166_v29, %v170_v54 }
  0x41   :  { %4038 = vst [vmem:[#allocation58_spill] sm:$0xff] %v2811_v62  ;;  %4044 = vst [vmem:[#allocation63_spill] sm:$0xff] %v2839_v8 }
  0x42   :  { %953 = vmatpush1.bf16.msra.mxu0 %v2787_v9  ;;  %994 = vmatpush1.bf16.msra.mxu1 %v2808_v27  ;;  %v2836_v9 = vcombine.low %v158_v21, %v162_v22  ;;  %4045 = vst [vmem:[#allocation64_spill] sm:$0xff] %v2842_v60  ;;  %v178_v21 = vld [vmem:[%s3786_s2 + $0xf0] sm:$0xff]  ;;  %v2859_v22 = vcombine.low %v159_v28, %v163_v45  ;;  %v179_v28 = vld [vmem:[%s3786_s2 + $0xf8] sm:$0xff] }
  0x43   :  { %1004 = vmatprep.subr.bf16.mxu0 %v2793_v10  ;;  %v2833_v10 = vcombine.low %v151_v38, %v155_v61  ;;  %1045 = vmatprep.subr.bf16.mxu1 %v2814_v6  ;;  %v171_v38 = vld [vmem:[%s3786_s2 + $0xb8] sm:$0xff]  ;;  %v174_v61 = vld [vmem:[%s3786_s2 + $0xd0] sm:$0xff] }
  0x44   :  { %4043 = vst [vmem:[#allocation62_spill] sm:$0xff] %v2836_v9  ;;  %4046 = vst [vmem:[#allocation65_spill] sm:$0xff] %v2859_v22  ;;  %v2869_v6 = vcombine.high %v174_v61, %v178_v21  ;;  %v182_v45 = vld [vmem:[%s3786_s2 + $0x110] sm:$0xff]  ;;  %v183_v27 = vld [vmem:[%s3786_s2 + $0x118] sm:$0xff] }
  0x45   :  { %955 = vmatmul.mubr.bf16.vlgmr.msra.gmra.mrb[0].mxu0 %v4041_v55  ;;  %4042 = vst [vmem:[#allocation61_spill] sm:$0xff] %v2833_v10  ;;  %996 = vmatmul.mubr.bf16.vlgmr.msra.gmra.mrb[0].mxu1 %v4041_v55 }
  0x46   :  { %1005 = vmatpush1.bf16.msra.mxu0 %v2811_v62  ;;  %1036 = vmatprep.mubr.bf16.mxu0 %v4041_v55  ;;  %v2866_v62 = vcombine.high %v167_v11, %v171_v38  ;;  %4049 = vst [vmem:[#allocation68_spill] sm:$0xff] %v2869_v6 }
  0x47   :  { %1006 = vmatprep.subr.bf16.mxu0 %v2817_v44  ;;  %1046 = vmatpush1.bf16.msra.mxu1 %v2833_v10  ;;  %v2863_v44 = vcombine.low %v166_v29, %v170_v54  ;;  %v175_v10 = vld [vmem:[%s3786_s2 + $0xd8] sm:$0xff]  ;;  %v186_v29 = vld [vmem:[%s3786_s2 + $0x130] sm:$0xff]  ;;  %v2884_v54 = vcombine.low %v167_v11, %v171_v38 }
  0x48   :  { %1077 = vmatprep.mubr.bf16.mxu1 %v4041_v55  ;;  %1047 = vmatprep.subr.bf16.mxu1 %v2839_v8  ;;  %4048 = vst [vmem:[#allocation67_spill] sm:$0xff] %v2866_v62  ;;  %v2893_v8 = vcombine.high %v182_v45, %v186_v29  ;;  %v187_v11 = vld [vmem:[%s3786_s2 + $0x138] sm:$0xff]  ;;  %v190_v38 = vld [vmem:[%s3786_s2 + $0x150] sm:$0xff] }
  0x49   :  { %4047 = vst [vmem:[#allocation66_spill] sm:$0xff] %v2863_v44  ;;  %4050 = vst [vmem:[#allocation69_spill] sm:$0xff] %v2884_v54 }
  0x4a   :  { %1007 = vmatpush1.bf16.msra.mxu0 %v2836_v9  ;;  %v2890_v9 = vcombine.high %v175_v10, %v179_v28  ;;  %4053 = vst [vmem:[#allocation72_spill] sm:$0xff] %v2893_v8 }
  0x4b   :  { %1008 = vmatprep.subr.bf16.mxu0 %v2842_v60  ;;  %1048 = vmatpush1.bf16.msra.mxu1 %v2859_v22  ;;  %v2887_v60 = vcombine.low %v174_v61, %v178_v21  ;;  %v194_v61 = vld [vmem:[%s3786_s2 + $0x170] sm:$0xff]  ;;  %v2908_v21 = vcombine.low %v175_v10, %v179_v28  ;;  %v191_v22 = vld [vmem:[%s3786_s2 + $0x158] sm:$0xff] }
  0x4c   :  { %1049 = vmatprep.subr.bf16.mxu1 %v2866_v62  ;;  %4052 = vst [vmem:[#allocation71_spill] sm:$0xff] %v2890_v9  ;;  %v2917_v62 = vcombine.high %v190_v38, %v194_v61  ;;  %v195_v10 = vld [vmem:[%s3786_s2 + $0x178] sm:$0xff]  ;;  %v198_v28 = vld [vmem:[%s3786_s2 + $0x190] sm:$0xff] }
  0x4d   :  { %4051 = vst [vmem:[#allocation70_spill] sm:$0xff] %v2887_v60  ;;  %4054 = vst [vmem:[#allocation73_spill] sm:$0xff] %v2908_v21 }
  0x4e   :  { %1009 = vmatpush1.bf16.msra.mxu0 %v2863_v44  ;;  %v2914_v44 = vcombine.high %v183_v27, %v187_v11  ;;  %4057 = vst [vmem:[#allocation76_spill] sm:$0xff] %v2917_v62 }
  0x4f   :  { %1010 = vmatprep.subr.bf16.mxu0 %v2869_v6  ;;  %1050 = vmatpush1.bf16.msra.mxu1 %v2884_v54  ;;  %v2911_v6 = vcombine.low %v182_v45, %v186_v29  ;;  %v202_v45 = vld [vmem:[%s3786_s2 + $0x1b0] sm:$0xff]  ;;  %v2932_v29 = vcombine.low %v183_v27, %v187_v11  ;;  %v199_v54 = vld [vmem:[%s3786_s2 + $0x198] sm:$0xff] }
  0x50   :  { %1051 = vmatprep.subr.bf16.mxu1 %v2890_v9  ;;  %4056 = vst [vmem:[#allocation75_spill] sm:$0xff] %v2914_v44  ;;  %v2941_v9 = vcombine.high %v198_v28, %v202_v45  ;;  %v203_v27 = vld [vmem:[%s3786_s2 + $0x1b8] sm:$0xff]  ;;  %v206_v11 = vld [vmem:[%s3786_s2 + $0x1d0] sm:$0xff] }
  0x51   :  { %4055 = vst [vmem:[#allocation74_spill] sm:$0xff] %v2911_v6  ;;  %4058 = vst [vmem:[#allocation77_spill] sm:$0xff] %v2932_v29 }
  0x52   :  { %1011 = vmatpush1.bf16.msra.mxu0 %v2887_v60  ;;  %v2938_v60 = vcombine.high %v191_v22, %v195_v10  ;;  %4061 = vst [vmem:[#allocation80_spill] sm:$0xff] %v2941_v9 }
  0x53   :  { %1012 = vmatprep.subr.bf16.mxu0 %v2893_v8  ;;  %1052 = vmatpush1.bf16.msra.mxu1 %v2908_v21  ;;  %v2935_v8 = vcombine.low %v190_v38, %v194_v61  ;;  %v210_v38 = vld [vmem:[%s3786_s2 + $0x1f0] sm:$0xff]  ;;  %v2956_v61 = vcombine.low %v191_v22, %v195_v10  ;;  %v207_v21 = vld [vmem:[%s3786_s2 + $0x1d8] sm:$0xff] }
  0x54   :  { %1053 = vmatprep.subr.bf16.mxu1 %v2914_v44  ;;  %4060 = vst [vmem:[#allocation79_spill] sm:$0xff] %v2938_v60  ;;  %v2965_v44 = vcombine.high %v206_v11, %v210_v38  ;;  %v211_v22 = vld [vmem:[%s3786_s2 + $0x1f8] sm:$0xff]  ;;  %v214_v10 = vld [vmem:[%s3786_s2 + $0x210] sm:$0xff] }
  0x55   :  { %4059 = vst [vmem:[#allocation78_spill] sm:$0xff] %v2935_v8  ;;  %4062 = vst [vmem:[#allocation81_spill] sm:$0xff] %v2956_v61 }
  0x56   :  { %1013 = vmatpush1.bf16.msra.mxu0 %v2911_v6  ;;  %v2962_v6 = vcombine.high %v199_v54, %v203_v27  ;;  %4065 = vst [vmem:[#allocation84_spill] sm:$0xff] %v2965_v44 }
  0x57   :  { %1014 = vmatprep.subr.bf16.mxu0 %v2917_v62  ;;  %1054 = vmatpush1.bf16.msra.mxu1 %v2932_v29  ;;  %v2959_v62 = vcombine.low %v198_v28, %v202_v45  ;;  %v218_v28 = vld [vmem:[%s3786_s2 + $0x230] sm:$0xff]  ;;  %v2980_v45 = vcombine.low %v199_v54, %v203_v27  ;;  %v215_v29 = vld [vmem:[%s3786_s2 + $0x218] sm:$0xff] }
  0x58   :  { %1055 = vmatprep.subr.bf16.mxu1 %v2938_v60  ;;  %4064 = vst [vmem:[#allocation83_spill] sm:$0xff] %v2962_v6  ;;  %v2989_v60 = vcombine.high %v214_v10, %v218_v28  ;;  %v219_v54 = vld [vmem:[%s3786_s2 + $0x238] sm:$0xff]  ;;  %v222_v27 = vld [vmem:[%s3786_s2 + $0x250] sm:$0xff] }
  0x59   :  { %4063 = vst [vmem:[#allocation82_spill] sm:$0xff] %v2959_v62  ;;  %4066 = vst [vmem:[#allocation85_spill] sm:$0xff] %v2980_v45 }
  0x5a   :  { %1015 = vmatpush1.bf16.msra.mxu0 %v2935_v8  ;;  %v2986_v8 = vcombine.high %v207_v21, %v211_v22  ;;  %4069 = vst [vmem:[#allocation88_spill] sm:$0xff] %v2989_v60 }
  0x5b   :  { %1016 = vmatprep.subr.bf16.mxu0 %v2941_v9  ;;  %1056 = vmatpush1.bf16.msra.mxu1 %v2956_v61  ;;  %v2983_v9 = vcombine.low %v206_v11, %v210_v38  ;;  %v226_v11 = vld [vmem:[%s3786_s2 + $0x270] sm:$0xff]  ;;  %v3004_v38 = vcombine.low %v207_v21, %v211_v22  ;;  %v223_v61 = vld [vmem:[%s3786_s2 + $0x258] sm:$0xff] }
  0x5c   :  { %1057 = vmatprep.subr.bf16.mxu1 %v2962_v6  ;;  %4068 = vst [vmem:[#allocation87_spill] sm:$0xff] %v2986_v8  ;;  %v3013_v6 = vcombine.high %v222_v27, %v226_v11  ;;  %v227_v21 = vld [vmem:[%s3786_s2 + $0x278] sm:$0xff]  ;;  %v230_v22 = vld [vmem:[%s3786_s2 + $0x290] sm:$0xff] }
  0x5d   :  { %4067 = vst [vmem:[#allocation86_spill] sm:$0xff] %v2983_v9  ;;  %4070 = vst [vmem:[#allocation89_spill] sm:$0xff] %v3004_v38 }
  0x5e   :  { %1017 = vmatpush1.bf16.msra.mxu0 %v2959_v62  ;;  %v3010_v62 = vcombine.high %v215_v29, %v219_v54  ;;  %4073 = vst [vmem:[#allocation92_spill] sm:$0xff] %v3013_v6 }
  0x5f   :  { %1018 = vmatprep.subr.bf16.mxu0 %v2965_v44  ;;  %1058 = vmatpush1.bf16.msra.mxu1 %v2980_v45  ;;  %v3007_v44 = vcombine.low %v214_v10, %v218_v28  ;;  %v234_v10 = vld [vmem:[%s3786_s2 + $0x2b0] sm:$0xff]  ;;  %v3028_v28 = vcombine.low %v215_v29, %v219_v54  ;;  %v231_v45 = vld [vmem:[%s3786_s2 + $0x298] sm:$0xff] }
  0x60   :  { %1059 = vmatprep.subr.bf16.mxu1 %v2986_v8  ;;  %4072 = vst [vmem:[#allocation91_spill] sm:$0xff] %v3010_v62  ;;  %v3037_v8 = vcombine.high %v230_v22, %v234_v10  ;;  %v235_v29 = vld [vmem:[%s3786_s2 + $0x2b8] sm:$0xff]  ;;  %v238_v54 = vld [vmem:[%s3786_s2 + $0x2d0] sm:$0xff] }
  0x61   :  { %4071 = vst [vmem:[#allocation90_spill] sm:$0xff] %v3007_v44  ;;  %4074 = vst [vmem:[#allocation93_spill] sm:$0xff] %v3028_v28 }
  0x62   :  { %1019 = vmatpush1.bf16.msra.mxu0 %v2983_v9  ;;  %v3034_v9 = vcombine.high %v223_v61, %v227_v21  ;;  %4077 = vst [vmem:[#allocation96_spill] sm:$0xff] %v3037_v8 }
  0x63   :  { %1020 = vmatprep.subr.bf16.mxu0 %v2989_v60  ;;  %1060 = vmatpush1.bf16.msra.mxu1 %v3004_v38  ;;  %v3031_v60 = vcombine.low %v222_v27, %v226_v11  ;;  %v242_v27 = vld [vmem:[%s3786_s2 + $0x2f0] sm:$0xff]  ;;  %v3052_v11 = vcombine.low %v223_v61, %v227_v21  ;;  %v239_v38 = vld [vmem:[%s3786_s2 + $0x2d8] sm:$0xff] }
  0x64   :  { %1061 = vmatprep.subr.bf16.mxu1 %v3010_v62  ;;  %4076 = vst [vmem:[#allocation95_spill] sm:$0xff] %v3034_v9  ;;  %v3061_v62 = vcombine.high %v238_v54, %v242_v27  ;;  %v243_v61 = vld [vmem:[%s3786_s2 + $0x2f8] sm:$0xff]  ;;  %v246_v21 = vld [vmem:[%s3786_s2 + $0x310] sm:$0xff] }
  0x65   :  { %4075 = vst [vmem:[#allocation94_spill] sm:$0xff] %v3031_v60  ;;  %4078 = vst [vmem:[#allocation97_spill] sm:$0xff] %v3052_v11 }
  0x66   :  { %1021 = vmatpush1.bf16.msra.mxu0 %v3007_v44  ;;  %v3058_v44 = vcombine.high %v231_v45, %v235_v29  ;;  %4081 = vst [vmem:[#allocation100_spill] sm:$0xff] %v3061_v62 }
  0x67   :  { %1022 = vmatprep.subr.bf16.mxu0 %v3013_v6  ;;  %1062 = vmatpush1.bf16.msra.mxu1 %v3028_v28  ;;  %v3055_v6 = vcombine.low %v230_v22, %v234_v10  ;;  %v250_v22 = vld [vmem:[%s3786_s2 + $0x330] sm:$0xff]  ;;  %v3076_v10 = vcombine.low %v231_v45, %v235_v29  ;;  %v247_v28 = vld [vmem:[%s3786_s2 + $0x318] sm:$0xff] }
  0x68   :  { %1063 = vmatprep.subr.bf16.mxu1 %v3034_v9  ;;  %4080 = vst [vmem:[#allocation99_spill] sm:$0xff] %v3058_v44  ;;  %v3085_v9 = vcombine.high %v246_v21, %v250_v22  ;;  %v251_v45 = vld [vmem:[%s3786_s2 + $0x338] sm:$0xff]  ;;  %v254_v29 = vld [vmem:[%s3786_s2 + $0x350] sm:$0xff] }
  0x69   :  { %4079 = vst [vmem:[#allocation98_spill] sm:$0xff] %v3055_v6  ;;  %4082 = vst [vmem:[#allocation101_spill] sm:$0xff] %v3076_v10 }
  0x6a   :  { %1023 = vmatpush1.bf16.msra.mxu0 %v3031_v60  ;;  %v3082_v60 = vcombine.high %v239_v38, %v243_v61  ;;  %4085 = vst [vmem:[#allocation104_spill] sm:$0xff] %v3085_v9 }
  0x6b   :  { %1024 = vmatprep.subr.bf16.mxu0 %v3037_v8  ;;  %1064 = vmatpush1.bf16.msra.mxu1 %v3052_v11  ;;  %v3079_v8 = vcombine.low %v238_v54, %v242_v27  ;;  %v258_v54 = vld [vmem:[%s3786_s2 + $0x370] sm:$0xff]  ;;  %v3100_v27 = vcombine.low %v239_v38, %v243_v61  ;;  %v255_v11 = vld [vmem:[%s3786_s2 + $0x358] sm:$0xff] }
  0x6c   :  { %1065 = vmatprep.subr.bf16.mxu1 %v3058_v44  ;;  %4084 = vst [vmem:[#allocation103_spill] sm:$0xff] %v3082_v60  ;;  %v3109_v44 = vcombine.high %v254_v29, %v258_v54  ;;  %v259_v38 = vld [vmem:[%s3786_s2 + $0x378] sm:$0xff]  ;;  %v262_v61 = vld [vmem:[%s3786_s2 + $0x390] sm:$0xff] }
  0x6d   :  { %4083 = vst [vmem:[#allocation102_spill] sm:$0xff] %v3079_v8  ;;  %4086 = vst [vmem:[#allocation105_spill] sm:$0xff] %v3100_v27 }
  0x6e   :  { %1025 = vmatpush1.bf16.msra.mxu0 %v3055_v6  ;;  %v3106_v6 = vcombine.high %v247_v28, %v251_v45  ;;  %4089 = vst [vmem:[#allocation108_spill] sm:$0xff] %v3109_v44 }
  0x6f   :  { %1026 = vmatprep.subr.bf16.mxu0 %v3061_v62  ;;  %1066 = vmatpush1.bf16.msra.mxu1 %v3076_v10  ;;  %v3103_v62 = vcombine.low %v246_v21, %v250_v22  ;;  %v266_v21 = vld [vmem:[%s3786_s2 + $0x3b0] sm:$0xff]  ;;  %v3124_v22 = vcombine.low %v247_v28, %v251_v45  ;;  %v263_v10 = vld [vmem:[%s3786_s2 + $0x398] sm:$0xff] }
  0x70   :  { %1067 = vmatprep.subr.bf16.mxu1 %v3082_v60  ;;  %4088 = vst [vmem:[#allocation107_spill] sm:$0xff] %v3106_v6  ;;  %v3133_v60 = vcombine.high %v262_v61, %v266_v21  ;;  %v267_v28 = vld [vmem:[%s3786_s2 + $0x3b8] sm:$0xff]  ;;  %v270_v45 = vld [vmem:[%s3786_s2 + $0x3d0] sm:$0xff] }
  0x71   :  { %4087 = vst [vmem:[#allocation106_spill] sm:$0xff] %v3103_v62 }
  0x72   :  { %1027 = vmatpush1.bf16.msra.mxu0 %v3079_v8  ;;  %v3130_v8 = vcombine.high %v255_v11, %v259_v38  ;;  %4090 = vst [vmem:[#allocation109_spill] sm:$0xff] %v3133_v60 }
  0x73   :  { %1028 = vmatprep.subr.bf16.mxu0 %v3085_v9  ;;  %1068 = vmatpush1.bf16.msra.mxu1 %v3100_v27  ;;  %v3127_v9 = vcombine.low %v254_v29, %v258_v54  ;;  %v274_v29 = vld [vmem:[%s3786_s2 + $0x3f0] sm:$0xff]  ;;  %v3148_v54 = vcombine.low %v255_v11, %v259_v38  ;;  %v271_v27 = vld [vmem:[%s3786_s2 + $0x3d8] sm:$0xff]  ;;  %v3166_v38 = vcombine.low %v263_v10, %v267_v28 }
  0x74   :  { %1069 = vmatprep.subr.bf16.mxu1 %v3106_v6  ;;  %v3157_v6 = vcombine.high %v270_v45, %v274_v29  ;;  %v275_v11 = vld [vmem:[%s3786_s2 + $0x3f8] sm:$0xff] }
  0x76   :  { %1029 = vmatpush1.bf16.msra.mxu0 %v3103_v62  ;;  %v3154_v62 = vcombine.high %v263_v10, %v267_v28  ;;  %v4093_v10 = vld [vmem:[#allocation36_spill] sm:$0xff]  ;;  %v4095_v28 = vld [vmem:[#allocation42_spill] sm:$0xff] }
  0x77   :  { %1030 = vmatprep.subr.bf16.mxu0 %v3109_v44  ;;  %1070 = vmatpush1.bf16.msra.mxu1 %v3124_v22  ;;  %v3151_v44 = vcombine.low %v262_v61, %v266_v21  ;;  %v3169_v61 = vcombine.low %v270_v45, %v274_v29  ;;  %v3172_v21 = vcombine.high %v271_v27, %v275_v11  ;;  %v4096_v45 = vld [vmem:[#allocation41_spill] sm:$0xff]  ;;  %v4097_v29 = vld [vmem:[#allocation43_spill] sm:$0xff] }
  0x78   :  { %1071 = vmatprep.subr.bf16.mxu1 %v3130_v8 }
  0x7a   :  { %1031 = vmatpush1.bf16.msra.mxu0 %v3127_v9 }
  0x7b   :  { %1032 = vmatprep.subr.bf16.mxu0 %v3133_v60  ;;  %1072 = vmatpush1.bf16.msra.mxu1 %v3148_v54  ;;  %v3176_v60 = vcombine.low %v271_v27, %v275_v11  ;;  %v4094_v27 = vld [vmem:[#allocation38_spill] sm:$0xff]  ;;  %v4098_v11 = vld [vmem:[#allocation45_spill] sm:$0xff] }
  0x7c   :  { %1073 = vmatprep.subr.bf16.mxu1 %v3154_v62 }
  0x7d   :  { %4091 = vst [vmem:[#allocation110_spill] sm:$0xff] %v3176_v60 }
  0x7e   :  { %1033 = vmatpush1.bf16.msra.mxu0 %v3151_v44 }
  0x7f   :  { %1034 = vmatprep.subr.bf16.mxu0 %v3157_v6  ;;  %1074 = vmatpush1.bf16.msra.mxu1 %v3166_v38 }
  0x80   :  { %1075 = vmatprep.subr.bf16.mxu1 %v3172_v21 }
  0x82   :  { %1035 = vmatpush1.bf16.msra.mxu0 %v3169_v61 }
  0x83   :  { %1188 = vmatprep.subr.bf16.mxu0 %v2397_v3  ;;  %1076 = vmatpush1.bf16.msra.mxu1 %v3176_v60 }
  0x84   :  { %1229 = vmatprep.subr.bf16.mxu1 %v2424_v13 }
  0x85   :  { %1037 = vmatmul.mubr.bf16.vlgmr.msra.gmra.mrb[4].mxu0 %v4041_v55 }
  0x86   :  { %1189 = vmatpush1.bf16.msra.mxu0 %v2399_v4  ;;  %1078 = vmatmul.mubr.bf16.vlgmr.msra.gmra.mrb[4].mxu1 %v4041_v55  ;;  %v4092_v55 = vld [vmem:[#allocation37_spill] sm:$0xff] }
  0x87   :  { %1190 = vmatprep.subr.bf16.mxu0 %v2406_v7  ;;  %1230 = vmatpush1.bf16.msra.mxu1 %v2426_v14 }
  0x88   :  { %1231 = vmatprep.subr.bf16.mxu1 %v2437_v18 }
  0x8a   :  { %1191 = vmatpush1.bf16.msra.mxu0 %v2422_v12 }
  0x8b   :  { %1192 = vmatprep.subr.bf16.mxu0 %v2435_v17  ;;  %1232 = vmatpush1.bf16.msra.mxu1 %v2453_v23 }
  0x8c   :  { %1233 = vmatprep.subr.bf16.mxu1 %v2459_v25 }
  0x8e   :  { %1193 = vmatpush1.bf16.msra.mxu0 %v2456_v24 }
  0x8f   :  { %1194 = vmatprep.subr.bf16.mxu0 %v2462_v26  ;;  %1234 = vmatpush1.bf16.msra.mxu1 %v2479_v32 }
  0x90   :  { %1235 = vmatprep.subr.bf16.mxu1 %v2485_v34 }
  0x92   :  { %1195 = vmatpush1.bf16.msra.mxu0 %v2482_v33 }
  0x93   :  { %1196 = vmatprep.subr.bf16.mxu0 %v2488_v35  ;;  %1236 = vmatpush1.bf16.msra.mxu1 %v2503_v40 }
  0x94   :  { %1237 = vmatprep.subr.bf16.mxu1 %v2509_v42 }
  0x96   :  { %1197 = vmatpush1.bf16.msra.mxu0 %v2506_v41 }
  0x97   :  { %1198 = vmatprep.subr.bf16.mxu0 %v2512_v43  ;;  %1238 = vmatpush1.bf16.msra.mxu1 %v2527_v48 }
  0x98   :  { %1239 = vmatprep.subr.bf16.mxu1 %v2533_v50 }
  0x9a   :  { %1199 = vmatpush1.bf16.msra.mxu0 %v2530_v49 }
  0x9b   :  { %1200 = vmatprep.subr.bf16.mxu0 %v2536_v51  ;;  %1240 = vmatpush1.bf16.msra.mxu1 %v2551_v56 }
  0x9c   :  { %1241 = vmatprep.subr.bf16.mxu1 %v2557_v58 }
  0x9e   :  { %1201 = vmatpush1.bf16.msra.mxu0 %v2554_v57 }
  0x9f   :  { %1202 = vmatprep.subr.bf16.mxu0 %v2560_v59  ;;  %1242 = vmatpush1.bf16.msra.mxu1 %v2575_v0 }
  0xa0   :  { %1243 = vmatprep.subr.bf16.mxu1 %v2581_v2 }
  0xa2   :  { %1203 = vmatpush1.bf16.msra.mxu0 %v2578_v1 }
  0xa3   :  { %1204 = vmatprep.subr.bf16.mxu0 %v2584_v5  ;;  %1244 = vmatpush1.bf16.msra.mxu1 %v2599_v15 }
  0xa4   :  { %1245 = vmatprep.subr.bf16.mxu1 %v2605_v19 }
  0xa6   :  { %1205 = vmatpush1.bf16.msra.mxu0 %v2602_v16 }
  0xa7   :  { %1206 = vmatprep.subr.bf16.mxu0 %v2608_v20  ;;  %1246 = vmatpush1.bf16.msra.mxu1 %v2623_v30 }
  0xa8   :  { %1247 = vmatprep.subr.bf16.mxu1 %v2629_v36 }
  0xaa   :  { %1207 = vmatpush1.bf16.msra.mxu0 %v2626_v31 }
  0xab   :  { %1208 = vmatprep.subr.bf16.mxu0 %v2632_v37  ;;  %1248 = vmatpush1.bf16.msra.mxu1 %v2647_v46 }
  0xac   :  { %1249 = vmatprep.subr.bf16.mxu1 %v2653_v52 }
  0xae   :  { %1209 = vmatpush1.bf16.msra.mxu0 %v2650_v47  ;;  %v4099_v47 = vld [vmem:[#allocation47_spill] sm:$0xff] }
  0xaf   :  { %1210 = vmatprep.subr.bf16.mxu0 %v2656_v53  ;;  %1250 = vmatpush1.bf16.msra.mxu1 %v2676_v63  ;;  %v4100_v53 = vld [vmem:[#allocation46_spill] sm:$0xff]  ;;  %v4101_v63 = vld [vmem:[#allocation48_spill] sm:$0xff] }
  0xb0   :  { %1251 = vmatprep.subr.bf16.mxu1 %v4092_v55  ;;  %v4102_v55 = vld [vmem:[#allocation49_spill] sm:$0xff] }
  0xb2   :  { %1211 = vmatpush1.bf16.msra.mxu0 %v4093_v10  ;;  %v4103_v10 = vld [vmem:[#allocation51_spill] sm:$0xff] }
  0xb3   :  { %1212 = vmatprep.subr.bf16.mxu0 %v4094_v27  ;;  %1252 = vmatpush1.bf16.msra.mxu1 %v2706_v39  ;;  %v4104_v27 = vld [vmem:[#allocation50_spill] sm:$0xff]  ;;  %v4105_v39 = vld [vmem:[#allocation52_spill] sm:$0xff] }
  0xb4   :  { %1253 = vmatprep.subr.bf16.mxu1 %v4095_v28  ;;  %v4106_v28 = vld [vmem:[#allocation53_spill] sm:$0xff] }
  0xb6   :  { %1213 = vmatpush1.bf16.msra.mxu0 %v4096_v45  ;;  %v4107_v45 = vld [vmem:[#allocation55_spill] sm:$0xff] }
  0xb7   :  { %1214 = vmatprep.subr.bf16.mxu0 %v4097_v29  ;;  %1254 = vmatpush1.bf16.msra.mxu1 %v4098_v11  ;;  %v4108_v29 = vld [vmem:[#allocation54_spill] sm:$0xff]  ;;  %v4109_v11 = vld [vmem:[#allocation56_spill] sm:$0xff] }
  0xb8   :  { %1255 = vmatprep.subr.bf16.mxu1 %v4099_v47  ;;  %v4110_v47 = vld [vmem:[#allocation57_spill] sm:$0xff] }
  0xba   :  { %1215 = vmatpush1.bf16.msra.mxu0 %v4100_v53  ;;  %v4111_v53 = vld [vmem:[#allocation59_spill] sm:$0xff] }
  0xbb   :  { %1216 = vmatprep.subr.bf16.mxu0 %v4101_v63  ;;  %1256 = vmatpush1.bf16.msra.mxu1 %v4102_v55 }
  0xbc   :  { %1257 = vmatprep.subr.bf16.mxu1 %v4103_v10  ;;  %v25_v10 = vld [vmem:[%s3784_s0] sm:$0xff] }
  0xbe   :  { %1217 = vmatpush1.bf16.msra.mxu0 %v4104_v27 }
  0xbf   :  { %1218 = vmatprep.subr.bf16.mxu0 %v4105_v39  ;;  %1258 = vmatpush1.bf16.msra.mxu1 %v4106_v28  ;;  %v27_v39 = vld [vmem:[%s3784_s0 + $0x8] sm:$0xff] }
  0xc0   :  { %1259 = vmatprep.subr.bf16.mxu1 %v4107_v45 }
  0xc2   :  { %1219 = vmatpush1.bf16.msra.mxu0 %v4108_v29 }
  0xc3   :  { %1270 = vmatprep.subr.bf16.mxu0 %v4109_v11  ;;  %1260 = vmatpush1.bf16.msra.mxu1 %v4110_v47 }
  0xc4   :  { %1311 = vmatprep.subr.bf16.mxu1 %v4111_v53  ;;  %v31_v53 = vld [vmem:[%s3784_s0 + $0x18] sm:$0xff] }
 0x118   :  { %v956_v27 = vpop.f32.mrb[0].mxu0  ;;  %v997_v11 = vpop.f32.mrb[0].mxu1 }
 0x119   :  { %v1090_v28 = vadd.f32 %v956_v27, %v25_v10  ;;  %v958_v63 = vpop.f32.mrb[1].mxu0  ;;  %v999_v47 = vpop.f32.mrb[1].mxu1  ;;  %v29_v10 = vld [vmem:[%s3784_s0 + $0x10] sm:$0xff] }
 0x11a   :  { %v1091_v45 = vadd.f32 %v958_v63, %v27_v39  ;;  %v960_v55 = vpop.f32.mrb[2].mxu0  ;;  %v1001_v46 = vpop.f32.mrb[2].mxu1  ;;  %v1093_v36 = vadd.f32 %v999_v47, %v31_v53  ;;  %v1092_v39 = vadd.f32 %v997_v11, %v29_v10 }
 0x11b   :  { %v2170_v29 = vmul.f32 -1.442695, %v1090_v28  ;;  %v961_v52 = vpop.f32.mrb[3].mxu0  ;;  %v1002_v31 = vpop.f32.mrb[3].mxu1 }
 0x11c   :  { %v2171_v37 = vmul.f32 -1.442695, %v1091_v45  ;;  %v2172_v63 = vmul.f32 -1.442695, %v1093_v36  ;;  %v3264_v36 = vpop.permute.xlu0 %1166 }
 0x11d   :  { %2228 = vpow2.f32 %v2170_v29  ;;  %vm1168_vm5 = vcmp.eq.s32.totalorder %v3264_v36, 1 }
 0x11e   :  { %2230 = vpow2.f32 %v2171_v37  ;;  %vm2200_vm6 = vmpackc.low %vm1168_vm5, %vm1168_vm5 }
 0x11f   :  { %2232 = vpow2.f32 %v2172_v63 }
 0x120   :  { %2234 = vtanh.f32 %v1092_v39  ;;  %v3266_v10 = vpop.permute.xlu0 %1159 }
 0x121   :  { %vm1161_vm3 = vcmp.eq.s32.totalorder %v3266_v10, 1  ;;  %v2034_v10 = vld [vmem:[%s3785_s1 + $0xa0] sm:$0xff] }
 0x122   :  { %vm3313_vm7 = vmpackc.low %vm1161_vm3, %vm1161_vm3 }
 0x127   :  { %v2229_v55 = vpop.eup %2228 }
 0x128   :  { %v2231_v52 = vpop.eup %2230  ;;  %v1107_v27 = vadd.f32 1.0, %v2229_v55 }
 0x129   :  { %v1113_v28 = vadd.f32 1.0, %v2231_v52  ;;  %v2233_v45 = vpop.eup %2232  ;;  %v4114_v52 = vld [vmem:[#allocation34_spill] sm:$0xff] }
 0x12a   :  { %2236 = vrcp.f32 %v1107_v27  ;;  %v2235_v29 = vpop.eup %2234  ;;  %v1120_v37 = vadd.f32 1.0, %v2233_v45  ;;  %vm1423_vm4 = vcmp.gt.s32.totalorder %v4114_v52, 2  ;;  %v4115_v27 = vmov 0   ;;  %v4116_v45 = vld [vmem:[#allocation44_spill] sm:$0xff] }
 0x12b   :  { %2238 = vrcp.f32 %v1113_v28  ;;  %v1431_v28 = vsel %vm1423_vm4, 1, %v4115_v27 }
 0x12c   :  { %2240 = vrcp.f32 %v1120_v37  ;;  %1433 = vperm.xlu1 %2227, %v1431_v28  }
 0x130   :  { %1426 = vperm.xlu1 %2227, %v4116_v45  }
 0x134   :  { %v2237_v46 = vpop.eup %2236  ;;  %1694 = vperm.xlu1 %2227, %v1431_v28   ;;  %v2041_v28 = vld [vmem:[%s3785_s1 + $0xf8] sm:$0xff] }
 0x135   :  { %v2239_v31 = vpop.eup %2238  ;;  %v1124_v47 = vmul.f32 %v2237_v46, %v2235_v29  ;;  %v2038_v29 = vld [vmem:[%s3785_s1 + $0xe0] sm:$0xff]  ;;  %v2039_v46 = vld [vmem:[%s3785_s1 + $0xe8] sm:$0xff] }
 0x136   :  { %v1123_v53 = vmul.f32 0.0, %v2239_v31  ;;  %v2241_v11 = vpop.eup %2240  ;;  %v4117_v31 = vld [vmem:[#allocation39_spill] sm:$0xff] }
 0x138   :  { %v3261_v20 = vadd.f32 %v1124_v47, %v1123_v53  ;;  %1968 = vperm.xlu1 %2227, %v4117_v31  }
 0x13a   :  { %4112 = vst [vmem:[#allocation111_spill] sm:$0xff] %v3261_v20  ;;  %2242 = vtanh.f32 %v3261_v20 }
 0x144   :  { %v2243_v63 = vpop.eup %2242 }
 0x145   :  { %v1127_v39 = vmul.f32 %v2243_v63, %v2241_v11 }
 0x147   :  { %v3271_v55 = vsel %vm1161_vm3, %v1127_v39, 0.0 }
 0x148   :  { %4113 = vst [vmem:[#allocation112_spill] sm:$0xff] %v3271_v55  ;;  %1178 = vst [vmem:[%s3788_s4] sm:$0xff] %v3271_v55 }
 0x158   :  { %v1038_v37 = vpop.f32.mrb[4].mxu0 }
 0x159   :  { %v1099_v47 = vadd.f32 %v2038_v29, %v1038_v37  ;;  %v1040_v53 = vpop.f32.mrb[5].mxu0  ;;  %v1079_v55 = vpop.f32.mrb[4].mxu1  ;;  %v2040_v29 = vld [vmem:[%s3785_s1 + $0xf0] sm:$0xff] }
 0x15a   :  { %v1100_v11 = vadd.f32 %v2039_v46, %v1040_v53  ;;  %v1042_v63 = vpop.f32.mrb[6].mxu0  ;;  %v1081_v20 = vpop.f32.mrb[5].mxu1  ;;  %v1101_v37 = vadd.f32 %v2040_v29, %v1079_v55 }
 0x15b   :  { %v2173_v52 = vmul.f32 -1.442695, %v1099_v47  ;;  %v1043_v27 = vpop.f32.mrb[7].mxu0  ;;  %v1083_v30 = vpop.f32.mrb[6].mxu1  ;;  %v1102_v19 = vadd.f32 %v2041_v28, %v1081_v20 }
 0x15c   :  { %v2174_v45 = vmul.f32 -1.442695, %v1100_v11  ;;  %v1084_v16 = vpop.f32.mrb[7].mxu1 }
 0x15d   :  { %2244 = vpow2.f32 %v2173_v52  ;;  %v2175_v46 = vmul.f32 -1.442695, %v1102_v19 }
 0x15e   :  { %2246 = vpow2.f32 %v2174_v45 }
 0x15f   :  { %2248 = vpow2.f32 %v2175_v46 }
 0x160   :  { %2250 = vtanh.f32 %v1101_v37 }
 0x167   :  { %v2245_v31 = vpop.eup %2244 }
 0x168   :  { %v2247_v47 = vpop.eup %2246  ;;  %v1132_v53 = vadd.f32 1.0, %v2245_v31  ;;  %v3304_v31 = vpack.c.bf16 %v1127_v39, %v1127_v39  ;;  %v4120_v39 = vld [vmem:[#allocation58_spill] sm:$0xff] }
 0x169   :  { %v1138_v11 = vadd.f32 1.0, %v2247_v47  ;;  %v2249_v63 = vpop.eup %2248  ;;  %v4172_v47 = vld [vmem:[#allocation23_spill] sm:$0xff] }
 0x16a   :  { %2252 = vrcp.f32 %v1132_v53  ;;  %v2251_v52 = vpop.eup %2250  ;;  %v1145_v27 = vadd.f32 1.0, %v2249_v63  ;;  %v4121_v53 = vld [vmem:[#allocation61_spill] sm:$0xff]  ;;  %v4123_v63 = vld [vmem:[#allocation63_spill] sm:$0xff] }
 0x16b   :  { %2254 = vrcp.f32 %v1138_v11  ;;  %v4122_v11 = vld [vmem:[#allocation60_spill] sm:$0xff] }
 0x16c   :  { %2256 = vrcp.f32 %v1145_v27  ;;  %v4126_v27 = vld [vmem:[#allocation64_spill] sm:$0xff] }
 0x174   :  { %v2253_v30 = vpop.eup %2252 }
 0x175   :  { %v2255_v16 = vpop.eup %2254  ;;  %v1149_v20 = vmul.f32 %v2253_v30, %v2251_v52  ;;  %v4124_v52 = vld [vmem:[#allocation62_spill] sm:$0xff]  ;;  %v4125_v30 = vld [vmem:[#allocation65_spill] sm:$0xff] }
 0x176   :  { %v1148_v45 = vmul.f32 0.0, %v2255_v16  ;;  %v2257_v19 = vpop.eup %2256  ;;  %v4127_v16 = vld [vmem:[#allocation67_spill] sm:$0xff] }
 0x178   :  { %v3293_v28 = vadd.f32 %v1149_v20, %v1148_v45  ;;  %v4128_v20 = vld [vmem:[#allocation66_spill] sm:$0xff]  ;;  %v4129_v45 = vld [vmem:[#allocation69_spill] sm:$0xff] }
 0x17a   :  { %2258 = vtanh.f32 %v3293_v28 }
 0x184   :  { %v2259_v55 = vpop.eup %2258 }
 0x185   :  { %v1152_v29 = vmul.f32 %v2259_v55, %v2257_v19  ;;  %v4130_v19 = vld [vmem:[#allocation68_spill] sm:$0xff]  ;;  %v4131_v55 = vld [vmem:[#allocation71_spill] sm:$0xff] }
 0x187   :  { %v2201_v46 = vpack.c.bf16 %v1152_v29, %v1152_v29  ;;  %v3299_v37 = vsel %vm1168_vm5, %v1152_v29, 0.0  ;;  %v4132_v29 = vld [vmem:[#allocation70_spill] sm:$0xff] }
 0x188   :  { %2176 = vst [vmem:[%s3789_s5 + $0x18] sm:$0xff] %v3299_v37 }
 0x189   :  { %2202 = vmatprep.mubr.msk.bf16.mxu0 %vm2200_vm6, %v2201_v46  ;;  %2208 = vmatprep.mubr.msk.bf16.mxu1 %vm2200_vm6, %v2201_v46 }
 0x18a   :  { %2205 = vmatmul.mubr.msk.bf16.vlgmr.msra.gmra.mrb[8].mxu0 %vm3313_vm7, %v3304_v31  ;;  %2211 = vmatmul.mubr.msk.bf16.vlgmr.msra.gmra.mrb[8].mxu1 %vm3313_vm7, %v3304_v31 }
 0x18b   :  { %1271 = vmatpush1.bf16.msra.mxu0 %v4120_v39  ;;  %1312 = vmatpush1.bf16.msra.mxu1 %v4121_v53 }
 0x18c   :  { %2214 = vmatprep.mubr.msk.bf16.mxu0 %vm2200_vm6, %v2201_v46  ;;  %2220 = vmatprep.mubr.msk.bf16.mxu1 %vm2200_vm6, %v2201_v46  ;;  %v4133_v46 = vld [vmem:[#allocation73_spill] sm:$0xff] }
 0x18d   :  { %1272 = vmatprep.subr.bf16.mxu0 %v4122_v11  ;;  %1313 = vmatprep.subr.bf16.mxu1 %v4123_v63  ;;  %v4134_v63 = vld [vmem:[#allocation72_spill] sm:$0xff] }
 0x18f   :  { %1273 = vmatpush1.bf16.msra.mxu0 %v4124_v52  ;;  %1314 = vmatpush1.bf16.msra.mxu1 %v4125_v30  ;;  %v4135_v52 = vld [vmem:[#allocation75_spill] sm:$0xff]  ;;  %v4136_v30 = vld [vmem:[#allocation74_spill] sm:$0xff] }
 0x190   :  { %1274 = vmatprep.subr.bf16.mxu0 %v4126_v27  ;;  %1315 = vmatprep.subr.bf16.mxu1 %v4127_v16  ;;  %v4137_v27 = vld [vmem:[#allocation77_spill] sm:$0xff]  ;;  %v4138_v16 = vld [vmem:[#allocation76_spill] sm:$0xff] }
 0x193   :  { %1275 = vmatpush1.bf16.msra.mxu0 %v4128_v20  ;;  %1316 = vmatpush1.bf16.msra.mxu1 %v4129_v45  ;;  %v4139_v20 = vld [vmem:[#allocation79_spill] sm:$0xff]  ;;  %v4140_v45 = vld [vmem:[#allocation78_spill] sm:$0xff] }
 0x194   :  { %1276 = vmatprep.subr.bf16.mxu0 %v4130_v19  ;;  %1317 = vmatprep.subr.bf16.mxu1 %v4131_v55  ;;  %v4141_v19 = vld [vmem:[#allocation81_spill] sm:$0xff]  ;;  %v4142_v55 = vld [vmem:[#allocation80_spill] sm:$0xff] }
 0x197   :  { %1277 = vmatpush1.bf16.msra.mxu0 %v4132_v29  ;;  %1318 = vmatpush1.bf16.msra.mxu1 %v4133_v46  ;;  %v4143_v29 = vld [vmem:[#allocation83_spill] sm:$0xff]  ;;  %v4144_v46 = vld [vmem:[#allocation82_spill] sm:$0xff] }
 0x198   :  { %1278 = vmatprep.subr.bf16.mxu0 %v4134_v63  ;;  %1319 = vmatprep.subr.bf16.mxu1 %v4135_v52  ;;  %v4145_v63 = vld [vmem:[#allocation85_spill] sm:$0xff]  ;;  %v4146_v52 = vld [vmem:[#allocation84_spill] sm:$0xff] }
 0x19b   :  { %1279 = vmatpush1.bf16.msra.mxu0 %v4136_v30  ;;  %1320 = vmatpush1.bf16.msra.mxu1 %v4137_v27  ;;  %v4147_v30 = vld [vmem:[#allocation87_spill] sm:$0xff]  ;;  %v4148_v27 = vld [vmem:[#allocation86_spill] sm:$0xff] }
 0x19c   :  { %1280 = vmatprep.subr.bf16.mxu0 %v4138_v16  ;;  %1321 = vmatprep.subr.bf16.mxu1 %v4139_v20  ;;  %v4149_v16 = vld [vmem:[#allocation89_spill] sm:$0xff]  ;;  %v4150_v20 = vld [vmem:[#allocation88_spill] sm:$0xff] }
 0x19f   :  { %1281 = vmatpush1.bf16.msra.mxu0 %v4140_v45  ;;  %1322 = vmatpush1.bf16.msra.mxu1 %v4141_v19  ;;  %v4151_v45 = vld [vmem:[#allocation91_spill] sm:$0xff]  ;;  %v4152_v19 = vld [vmem:[#allocation90_spill] sm:$0xff] }
 0x1a0   :  { %1282 = vmatprep.subr.bf16.mxu0 %v4142_v55  ;;  %1323 = vmatprep.subr.bf16.mxu1 %v4143_v29  ;;  %v4153_v55 = vld [vmem:[#allocation93_spill] sm:$0xff]  ;;  %v4154_v29 = vld [vmem:[#allocation92_spill] sm:$0xff] }
 0x1a3   :  { %1283 = vmatpush1.bf16.msra.mxu0 %v4144_v46  ;;  %1324 = vmatpush1.bf16.msra.mxu1 %v4145_v63  ;;  %v4155_v46 = vld [vmem:[#allocation95_spill] sm:$0xff]  ;;  %v4156_v63 = vld [vmem:[#allocation94_spill] sm:$0xff] }
 0x1a4   :  { %1284 = vmatprep.subr.bf16.mxu0 %v4146_v52  ;;  %1325 = vmatprep.subr.bf16.mxu1 %v4147_v30  ;;  %v4157_v52 = vld [vmem:[#allocation97_spill] sm:$0xff]  ;;  %v4158_v30 = vld [vmem:[#allocation96_spill] sm:$0xff] }
 0x1a7   :  { %1285 = vmatpush1.bf16.msra.mxu0 %v4148_v27  ;;  %1326 = vmatpush1.bf16.msra.mxu1 %v4149_v16  ;;  %v4159_v27 = vld [vmem:[#allocation99_spill] sm:$0xff]  ;;  %v4160_v16 = vld [vmem:[#allocation98_spill] sm:$0xff] }
 0x1a8   :  { %1286 = vmatprep.subr.bf16.mxu0 %v4150_v20  ;;  %1327 = vmatprep.subr.bf16.mxu1 %v4151_v45  ;;  %v4161_v20 = vld [vmem:[#allocation101_spill] sm:$0xff]  ;;  %v4162_v45 = vld [vmem:[#allocation100_spill] sm:$0xff] }
 0x1ab   :  { %1287 = vmatpush1.bf16.msra.mxu0 %v4152_v19  ;;  %1328 = vmatpush1.bf16.msra.mxu1 %v4153_v55  ;;  %v4163_v19 = vld [vmem:[#allocation103_spill] sm:$0xff]  ;;  %v4164_v55 = vld [vmem:[#allocation102_spill] sm:$0xff] }
 0x1ac   :  { %1288 = vmatprep.subr.bf16.mxu0 %v4154_v29  ;;  %1329 = vmatprep.subr.bf16.mxu1 %v4155_v46  ;;  %v4165_v29 = vld [vmem:[#allocation105_spill] sm:$0xff]  ;;  %v4166_v46 = vld [vmem:[#allocation104_spill] sm:$0xff] }
 0x1af   :  { %1289 = vmatpush1.bf16.msra.mxu0 %v4156_v63  ;;  %1330 = vmatpush1.bf16.msra.mxu1 %v4157_v52  ;;  %v4167_v63 = vld [vmem:[#allocation107_spill] sm:$0xff]  ;;  %v4168_v52 = vld [vmem:[#allocation106_spill] sm:$0xff] }
 0x1b0   :  { %1290 = vmatprep.subr.bf16.mxu0 %v4158_v30  ;;  %1331 = vmatprep.subr.bf16.mxu1 %v4159_v27  ;;  %v4169_v27 = vld [vmem:[#allocation108_spill] sm:$0xff] }
 0x1b3   :  { %1291 = vmatpush1.bf16.msra.mxu0 %v4160_v16  ;;  %1332 = vmatpush1.bf16.msra.mxu1 %v4161_v20 }
 0x1b4   :  { %1292 = vmatprep.subr.bf16.mxu0 %v4162_v45  ;;  %1333 = vmatprep.subr.bf16.mxu1 %v4163_v19  ;;  %v4170_v19 = vld [vmem:[#allocation109_spill] sm:$0xff] }
 0x1b7   :  { %1293 = vmatpush1.bf16.msra.mxu0 %v4164_v55  ;;  %1334 = vmatpush1.bf16.msra.mxu1 %v4165_v29 }
 0x1b8   :  { %1294 = vmatprep.subr.bf16.mxu0 %v4166_v46  ;;  %1335 = vmatprep.subr.bf16.mxu1 %v4167_v63 }
 0x1bb   :  { %1295 = vmatpush1.bf16.msra.mxu0 %v4168_v52  ;;  %1336 = vmatpush1.bf16.msra.mxu1 %v3124_v22 }
 0x1bc   :  { %1296 = vmatprep.subr.bf16.mxu0 %v4169_v27  ;;  %1337 = vmatprep.subr.bf16.mxu1 %v3130_v8 }
 0x1bf   :  { %1297 = vmatpush1.bf16.msra.mxu0 %v3127_v9  ;;  %1338 = vmatpush1.bf16.msra.mxu1 %v3148_v54 }
 0x1c0   :  { %1298 = vmatprep.subr.bf16.mxu0 %v4170_v19  ;;  %1339 = vmatprep.subr.bf16.mxu1 %v3154_v62 }
 0x1c3   :  { %1299 = vmatpush1.bf16.msra.mxu0 %v3151_v44  ;;  %1340 = vmatpush1.bf16.msra.mxu1 %v3166_v38 }
 0x1c4   :  { %1300 = vmatprep.subr.bf16.mxu0 %v3157_v6  ;;  %1341 = vmatprep.subr.bf16.mxu1 %v3172_v21 }
 0x1c7   :  { %1301 = vmatpush1.bf16.msra.mxu0 %v3169_v61  ;;  %1342 = vmatpush1.bf16.msra.mxu1 %v3176_v60 }
 0x1c8   :  { %1456 = vmatprep.subr.bf16.mxu0 %v2397_v3  ;;  %1497 = vmatprep.subr.bf16.mxu1 %v2424_v13 }
 0x1ca   :  { %2217 = vmatmul.mubr.msk.bf16.vlgmr.msra.gmra.mrb[12].mxu0 %vm3313_vm7, %v3304_v31  ;;  %2223 = vmatmul.mubr.msk.bf16.vlgmr.msra.gmra.mrb[12].mxu1 %vm3313_vm7, %v3304_v31  ;;  %v4171_v31 = vld [vmem:[#allocation24_spill] sm:$0xff] }
 0x1cb   :  { %1457 = vmatpush1.bf16.msra.mxu0 %v2399_v4  ;;  %1498 = vmatpush1.bf16.msra.mxu1 %v2426_v14 }
 0x1cc   :  { %1458 = vmatprep.subr.bf16.mxu0 %v2406_v7  ;;  %1499 = vmatprep.subr.bf16.mxu1 %v2437_v18 }
 0x1cf   :  { %1459 = vmatpush1.bf16.msra.mxu0 %v2422_v12  ;;  %1500 = vmatpush1.bf16.msra.mxu1 %v2453_v23 }
 0x1d0   :  { %1460 = vmatprep.subr.bf16.mxu0 %v2435_v17  ;;  %1501 = vmatprep.subr.bf16.mxu1 %v2459_v25 }
 0x1d3   :  { %1461 = vmatpush1.bf16.msra.mxu0 %v2456_v24  ;;  %1502 = vmatpush1.bf16.msra.mxu1 %v2479_v32 }
 0x1d4   :  { %1462 = vmatprep.subr.bf16.mxu0 %v2462_v26  ;;  %1503 = vmatprep.subr.bf16.mxu1 %v2485_v34 }
 0x1d7   :  { %1463 = vmatpush1.bf16.msra.mxu0 %v2482_v33  ;;  %1504 = vmatpush1.bf16.msra.mxu1 %v2503_v40 }
 0x1d8   :  { %1464 = vmatprep.subr.bf16.mxu0 %v2488_v35  ;;  %1505 = vmatprep.subr.bf16.mxu1 %v2509_v42 }
 0x1db   :  { %1465 = vmatpush1.bf16.msra.mxu0 %v2506_v41  ;;  %1506 = vmatpush1.bf16.msra.mxu1 %v2527_v48 }
 0x1dc   :  { %1466 = vmatprep.subr.bf16.mxu0 %v2512_v43  ;;  %1507 = vmatprep.subr.bf16.mxu1 %v2533_v50  ;;  %v39_v43 = vld [vmem:[%s3784_s0 + $0x58] sm:$0xff] }
 0x1df   :  { %1467 = vmatpush1.bf16.msra.mxu0 %v2530_v49  ;;  %1508 = vmatpush1.bf16.msra.mxu1 %v2551_v56 }
 0x1e0   :  { %1468 = vmatprep.subr.bf16.mxu0 %v2536_v51  ;;  %1509 = vmatprep.subr.bf16.mxu1 %v2557_v58  ;;  %v4173_v51 = vld [vmem:[#allocation26_spill] sm:$0xff]  ;;  %v4174_v58 = vld [vmem:[#allocation25_spill] sm:$0xff] }
 0x1e3   :  { %1469 = vmatpush1.bf16.msra.mxu0 %v2554_v57  ;;  %1510 = vmatpush1.bf16.msra.mxu1 %v2575_v0  ;;  %v4175_v57 = vld [vmem:[#allocation28_spill] sm:$0xff]  ;;  %v4176_v0 = vld [vmem:[#allocation27_spill] sm:$0xff] }
 0x1e4   :  { %1470 = vmatprep.subr.bf16.mxu0 %v2560_v59  ;;  %1511 = vmatprep.subr.bf16.mxu1 %v2581_v2  ;;  %v4177_v59 = vld [vmem:[#allocation30_spill] sm:$0xff]  ;;  %v4178_v2 = vld [vmem:[#allocation29_spill] sm:$0xff] }
 0x1e7   :  { %1471 = vmatpush1.bf16.msra.mxu0 %v2578_v1  ;;  %1512 = vmatpush1.bf16.msra.mxu1 %v2599_v15  ;;  %v4179_v1 = vld [vmem:[#allocation32_spill] sm:$0xff]  ;;  %v4180_v15 = vld [vmem:[#allocation31_spill] sm:$0xff] }
 0x1e8   :  { %1472 = vmatprep.subr.bf16.mxu0 %v2584_v5  ;;  %1513 = vmatprep.subr.bf16.mxu1 %v4171_v31  ;;  %v4181_v5 = vld [vmem:[#allocation35_spill] sm:$0xff]  ;;  %v4182_v31 = vld [vmem:[#allocation33_spill] sm:$0xff] }
 0x1eb   :  { %1473 = vmatpush1.bf16.msra.mxu0 %v4172_v47  ;;  %1514 = vmatpush1.bf16.msra.mxu1 %v4173_v51  ;;  %v4183_v47 = vld [vmem:[#allocation37_spill] sm:$0xff]  ;;  %v4184_v51 = vld [vmem:[#allocation36_spill] sm:$0xff] }
 0x1ec   :  { %1474 = vmatprep.subr.bf16.mxu0 %v4174_v58  ;;  %1515 = vmatprep.subr.bf16.mxu1 %v4175_v57  ;;  %v4185_v58 = vld [vmem:[#allocation40_spill] sm:$0xff]  ;;  %v4186_v57 = vld [vmem:[#allocation38_spill] sm:$0xff] }
 0x1ef   :  { %1475 = vmatpush1.bf16.msra.mxu0 %v4176_v0  ;;  %1516 = vmatpush1.bf16.msra.mxu1 %v4177_v59  ;;  %v4187_v0 = vld [vmem:[#allocation42_spill] sm:$0xff]  ;;  %v4188_v59 = vld [vmem:[#allocation41_spill] sm:$0xff] }
 0x1f0   :  { %1476 = vmatprep.subr.bf16.mxu0 %v4178_v2  ;;  %1517 = vmatprep.subr.bf16.mxu1 %v4179_v1  ;;  %v4189_v2 = vld [vmem:[#allocation45_spill] sm:$0xff]  ;;  %v4190_v1 = vld [vmem:[#allocation43_spill] sm:$0xff] }
 0x1f3   :  { %1477 = vmatpush1.bf16.msra.mxu0 %v4180_v15  ;;  %1518 = vmatpush1.bf16.msra.mxu1 %v4181_v5  ;;  %v4191_v15 = vld [vmem:[#allocation47_spill] sm:$0xff]  ;;  %v4192_v5 = vld [vmem:[#allocation46_spill] sm:$0xff] }
 0x1f4   :  { %1478 = vmatprep.subr.bf16.mxu0 %v4182_v31  ;;  %1519 = vmatprep.subr.bf16.mxu1 %v4183_v47  ;;  %v4193_v31 = vld [vmem:[#allocation49_spill] sm:$0xff]  ;;  %v4194_v47 = vld [vmem:[#allocation48_spill] sm:$0xff] }
 0x1f7   :  { %1479 = vmatpush1.bf16.msra.mxu0 %v4184_v51  ;;  %1520 = vmatpush1.bf16.msra.mxu1 %v4185_v58  ;;  %v4195_v51 = vld [vmem:[#allocation51_spill] sm:$0xff]  ;;  %v4196_v58 = vld [vmem:[#allocation50_spill] sm:$0xff] }
 0x1f8   :  { %1480 = vmatprep.subr.bf16.mxu0 %v4186_v57  ;;  %1521 = vmatprep.subr.bf16.mxu1 %v4187_v0  ;;  %v4197_v57 = vld [vmem:[#allocation53_spill] sm:$0xff]  ;;  %v4198_v0 = vld [vmem:[#allocation52_spill] sm:$0xff] }
 0x1fb   :  { %1481 = vmatpush1.bf16.msra.mxu0 %v4188_v59  ;;  %1522 = vmatpush1.bf16.msra.mxu1 %v4189_v2  ;;  %v4199_v59 = vld [vmem:[#allocation55_spill] sm:$0xff]  ;;  %v4200_v2 = vld [vmem:[#allocation54_spill] sm:$0xff] }
 0x1fc   :  { %1482 = vmatprep.subr.bf16.mxu0 %v4190_v1  ;;  %1523 = vmatprep.subr.bf16.mxu1 %v4191_v15  ;;  %v4201_v1 = vld [vmem:[#allocation57_spill] sm:$0xff]  ;;  %v4202_v15 = vld [vmem:[#allocation56_spill] sm:$0xff] }
 0x1ff   :  { %1483 = vmatpush1.bf16.msra.mxu0 %v4192_v5  ;;  %1524 = vmatpush1.bf16.msra.mxu1 %v4193_v31  ;;  %v4203_v5 = vld [vmem:[#allocation59_spill] sm:$0xff] }
 0x200   :  { %1484 = vmatprep.subr.bf16.mxu0 %v4194_v47  ;;  %1525 = vmatprep.subr.bf16.mxu1 %v4195_v51  ;;  %v33_v51 = vld [vmem:[%s3784_s0 + $0x40] sm:$0xff] }
 0x203   :  { %1485 = vmatpush1.bf16.msra.mxu0 %v4196_v58  ;;  %1526 = vmatpush1.bf16.msra.mxu1 %v4197_v57  ;;  %v35_v57 = vld [vmem:[%s3784_s0 + $0x48] sm:$0xff] }
 0x204   :  { %1486 = vmatprep.subr.bf16.mxu0 %v4198_v0  ;;  %1527 = vmatprep.subr.bf16.mxu1 %v4199_v59 }
 0x207   :  { %1487 = vmatpush1.bf16.msra.mxu0 %v4200_v2  ;;  %1528 = vmatpush1.bf16.msra.mxu1 %v4201_v1 }
 0x208   :  { %1538 = vmatprep.subr.bf16.mxu0 %v4202_v15  ;;  %1579 = vmatprep.subr.bf16.mxu1 %v4203_v5 }
 0x25d   :  { %v1222_v58 = vpop.f32.mrb[8].mxu0  ;;  %v1263_v0 = vpop.f32.mrb[8].mxu1 }
 0x25e   :  { %v1357_v47 = vadd.f32 %v1222_v58, %v33_v51  ;;  %v1224_v59 = vpop.f32.mrb[9].mxu0  ;;  %v1265_v31 = vpop.f32.mrb[9].mxu1  ;;  %v37_v51 = vld [vmem:[%s3784_s0 + $0x50] sm:$0xff] }
 0x25f   :  { %v1358_v2 = vadd.f32 %v1224_v59, %v35_v57  ;;  %v1226_v56 = vpop.f32.mrb[10].mxu0  ;;  %v1267_v1 = vpop.f32.mrb[10].mxu1  ;;  %v1360_v48 = vadd.f32 %v1265_v31, %v39_v43  ;;  %v1359_v41 = vadd.f32 %v1263_v0, %v37_v51  ;;  %v4204_v31 = vld [vmem:[#allocation111_spill] sm:$0xff] }
 0x260   :  { %v2177_v49 = vmul.f32 -1.442695, %v1357_v47  ;;  %v1227_v15 = vpop.f32.mrb[11].mxu0  ;;  %v1268_v50 = vpop.f32.mrb[11].mxu1 }
 0x261   :  { %v2178_v5 = vmul.f32 -1.442695, %v1358_v2  ;;  %v2179_v58 = vmul.f32 -1.442695, %v1360_v48  ;;  %v1172_v48 = vsel %vm1161_vm3, %v4204_v31, 0.0 }
 0x262   :  { %2260 = vpow2.f32 %v2177_v49  ;;  %v3469_v49 = vpop.permute.xlu1 %1433 }
 0x263   :  { %2262 = vpow2.f32 %v2178_v5  ;;  %vm1435_vm9 = vcmp.eq.s32.totalorder %v3469_v49, 1  ;;  %v4207_v49 = vld [vmem:[#allocation62_spill] sm:$0xff] }
 0x264   :  { %2264 = vpow2.f32 %v2179_v58 }
 0x265   :  { %2266 = vtanh.f32 %v1359_v41 }
 0x266   :  { %v1427_v43 = vpop.permute.xlu1 %1426 }
 0x267   :  { %vm1428_vm8 = vcmp.eq.s32.totalorder %v1427_v43, 1 }
 0x26c   :  { %v2261_v57 = vpop.eup %2260 }
 0x26d   :  { %v2263_v56 = vpop.eup %2262  ;;  %v1374_v59 = vadd.f32 1.0, %v2261_v57 }
 0x26e   :  { %v1380_v50 = vadd.f32 1.0, %v2263_v56  ;;  %v2265_v1 = vpop.eup %2264 }
 0x26f   :  { %2268 = vrcp.f32 %v1374_v59  ;;  %v2267_v2 = vpop.eup %2266  ;;  %v1387_v0 = vadd.f32 1.0, %v2265_v1  ;;  %v2035_v1 = vld [vmem:[%s3785_s1 + $0xa8] sm:$0xff] }
 0x270   :  { %2270 = vrcp.f32 %v1380_v50  ;;  %v4205_v50 = vld [vmem:[#allocation112_spill] sm:$0xff] }
 0x271   :  { %2272 = vrcp.f32 %v1387_v0 }
 0x279   :  { %v2269_v5 = vpop.eup %2268 }
 0x27a   :  { %v2271_v15 = vpop.eup %2270  ;;  %v1391_v47 = vmul.f32 %v2269_v5, %v2267_v2 }
 0x27b   :  { %v1390_v51 = vmul.f32 %v2271_v15, %v1172_v48  ;;  %v2273_v57 = vpop.eup %2272 }
 0x27d   :  { %v1392_v58 = vadd.f32 %v1391_v47, %v1390_v51 }
 0x27f   :  { %2274 = vtanh.f32 %v1392_v58  ;;  %v3474_v41 = vsel %vm1428_vm8, %v1392_v58, %v1172_v48 }
 0x289   :  { %v2275_v56 = vpop.eup %2274 }
 0x28a   :  { %v1394_v59 = vmul.f32 %v2275_v56, %v2273_v57  ;;  %v2037_v56 = vld [vmem:[%s3785_s1 + $0xb8] sm:$0xff] }
 0x28c   :  { %v3477_v42 = vsel %vm1428_vm8, %v1394_v59, %v4205_v50  ;;  %v1444_v35 = vsel %vm1428_vm8, %v1394_v59, 0.0  ;;  %v2036_v50 = vld [vmem:[%s3785_s1 + $0xb0] sm:$0xff] }
 0x28d   :  { %2183 = vst [vmem:[%s3788_s4 + $0x8] sm:$0xff] %v1444_v35 }
 0x29d   :  { %v1304_v2 = vpop.f32.mrb[12].mxu0  ;;  %v1345_v5 = vpop.f32.mrb[12].mxu1 }
 0x29e   :  { %v1366_v43 = vadd.f32 %v2034_v10, %v1304_v2  ;;  %v1306_v15 = vpop.f32.mrb[13].mxu0  ;;  %v1347_v31 = vpop.f32.mrb[13].mxu1  ;;  %v1368_v2 = vadd.f32 %v2036_v50, %v1345_v5 }
 0x29f   :  { %v1367_v48 = vadd.f32 %v2035_v1, %v1306_v15  ;;  %v1308_v0 = vpop.f32.mrb[14].mxu0  ;;  %v1349_v47 = vpop.f32.mrb[14].mxu1  ;;  %v1369_v59 = vadd.f32 %v2037_v56, %v1347_v31  ;;  %v1175_v31 = vsel %vm1168_vm5, %v3293_v28, 0.0  ;;  %v3510_v28 = vpack.c.bf16 %v3477_v42, %v3477_v42 }
 0x2a0   :  { %v2180_v51 = vmul.f32 -1.442695, %v1366_v43  ;;  %v1309_v58 = vpop.f32.mrb[15].mxu0  ;;  %v1350_v57 = vpop.f32.mrb[15].mxu1 }
 0x2a1   :  { %v2181_v35 = vmul.f32 -1.442695, %v1367_v48  ;;  %v2182_v10 = vmul.f32 -1.442695, %v1369_v59 }
 0x2a2   :  { %2276 = vpow2.f32 %v2180_v51 }
 0x2a3   :  { %2278 = vpow2.f32 %v2181_v35 }
 0x2a4   :  { %2280 = vpow2.f32 %v2182_v10 }
 0x2a5   :  { %2282 = vtanh.f32 %v1368_v2 }
 0x2ac   :  { %v2277_v1 = vpop.eup %2276 }
 0x2ad   :  { %v2279_v15 = vpop.eup %2278  ;;  %v1399_v0 = vadd.f32 1.0, %v2277_v1 }
 0x2ae   :  { %v1405_v43 = vadd.f32 1.0, %v2279_v15  ;;  %v2281_v48 = vpop.eup %2280 }
 0x2af   :  { %2284 = vrcp.f32 %v1399_v0  ;;  %v2283_v47 = vpop.eup %2282  ;;  %v1412_v35 = vadd.f32 1.0, %v2281_v48  ;;  %v4208_v0 = vld [vmem:[#allocation65_spill] sm:$0xff]  ;;  %v4210_v48 = vld [vmem:[#allocation67_spill] sm:$0xff] }
 0x2b0   :  { %2286 = vrcp.f32 %v1405_v43  ;;  %v4209_v43 = vld [vmem:[#allocation64_spill] sm:$0xff] }
 0x2b1   :  { %2288 = vrcp.f32 %v1412_v35  ;;  %v4216_v35 = vld [vmem:[#allocation73_spill] sm:$0xff] }
 0x2b9   :  { %v2285_v51 = vpop.eup %2284 }
 0x2ba   :  { %v2287_v58 = vpop.eup %2286  ;;  %v1416_v57 = vmul.f32 %v2285_v51, %v2283_v47  ;;  %v4211_v47 = vld [vmem:[#allocation66_spill] sm:$0xff]  ;;  %v4212_v51 = vld [vmem:[#allocation69_spill] sm:$0xff] }
 0x2bb   :  { %v1415_v56 = vmul.f32 %v2287_v58, %v1175_v31  ;;  %v2289_v50 = vpop.eup %2288  ;;  %v4213_v58 = vld [vmem:[#allocation68_spill] sm:$0xff] }
 0x2bd   :  { %v1417_v5 = vadd.f32 %v1416_v57, %v1415_v56  ;;  %v4215_v57 = vld [vmem:[#allocation70_spill] sm:$0xff]  ;;  %v4217_v56 = vld [vmem:[#allocation72_spill] sm:$0xff] }
 0x2bf   :  { %2290 = vtanh.f32 %v1417_v5  ;;  %v3498_v59 = vsel %vm1435_vm9, %v1417_v5, %v1175_v31  ;;  %v4214_v31 = vld [vmem:[#allocation71_spill] sm:$0xff] }
 0x2c0   :  { %v4218_v5 = vld [vmem:[#allocation75_spill] sm:$0xff] }
 0x2c9   :  { %v2291_v10 = vpop.eup %2290 }
 0x2ca   :  { %v1419_v2 = vmul.f32 %v2291_v10, %v2289_v50  ;;  %v4219_v50 = vld [vmem:[#allocation74_spill] sm:$0xff]  ;;  %v4220_v10 = vld [vmem:[#allocation77_spill] sm:$0xff] }
 0x2cc   :  { %v3501_v1 = vsel %vm1435_vm9, %v1419_v2, %v3299_v37  ;;  %v1447_v15 = vsel %vm1435_vm9, %v1419_v2, 0.0  ;;  %v4206_v37 = vld [vmem:[#allocation63_spill] sm:$0xff]  ;;  %v4221_v2 = vld [vmem:[#allocation76_spill] sm:$0xff] }
 0x2cd   :  { %2184 = vst [vmem:[%s3789_s5 + $0x10] sm:$0xff] %v1447_v15  ;;  %v1455_v36 = vpack.c.bf16 %v3501_v1, %v3501_v1  ;;  %v4222_v15 = vld [vmem:[#allocation79_spill] sm:$0xff] }
 0x2cf   :  { %1488 = vmatprep.mubr.bf16.mxu0 %v1455_v36  ;;  %1529 = vmatprep.mubr.bf16.mxu1 %v1455_v36 }
 0x2d0   :  { %1489 = vmatmul.mubr.bf16.vlgmr.msra.gmra.mrb[16].mxu0 %v3510_v28  ;;  %1530 = vmatmul.mubr.bf16.vlgmr.msra.gmra.mrb[16].mxu1 %v3510_v28 }
 0x2d1   :  { %1539 = vmatpush1.bf16.msra.mxu0 %v4120_v39  ;;  %1580 = vmatpush1.bf16.msra.mxu1 %v4121_v53 }
 0x2d2   :  { %1570 = vmatprep.mubr.bf16.mxu0 %v1455_v36  ;;  %1611 = vmatprep.mubr.bf16.mxu1 %v1455_v36  ;;  %v4223_v36 = vld [vmem:[#allocation78_spill] sm:$0xff] }
 0x2d3   :  { %1540 = vmatprep.subr.bf16.mxu0 %v4122_v11  ;;  %1581 = vmatprep.subr.bf16.mxu1 %v4206_v37 }
 0x2d5   :  { %1541 = vmatpush1.bf16.msra.mxu0 %v4207_v49  ;;  %1582 = vmatpush1.bf16.msra.mxu1 %v4208_v0 }
 0x2d6   :  { %1542 = vmatprep.subr.bf16.mxu0 %v4209_v43  ;;  %1583 = vmatprep.subr.bf16.mxu1 %v4210_v48 }
 0x2d9   :  { %1543 = vmatpush1.bf16.msra.mxu0 %v4211_v47  ;;  %1584 = vmatpush1.bf16.msra.mxu1 %v4212_v51 }
 0x2da   :  { %1544 = vmatprep.subr.bf16.mxu0 %v4213_v58  ;;  %1585 = vmatprep.subr.bf16.mxu1 %v4214_v31  ;;  %v4224_v58 = vld [vmem:[#allocation81_spill] sm:$0xff]  ;;  %v4225_v31 = vld [vmem:[#allocation80_spill] sm:$0xff] }
 0x2dd   :  { %1545 = vmatpush1.bf16.msra.mxu0 %v4215_v57  ;;  %1586 = vmatpush1.bf16.msra.mxu1 %v4216_v35  ;;  %v4226_v57 = vld [vmem:[#allocation83_spill] sm:$0xff]  ;;  %v4227_v35 = vld [vmem:[#allocation82_spill] sm:$0xff] }
 0x2de   :  { %1546 = vmatprep.subr.bf16.mxu0 %v4217_v56  ;;  %1587 = vmatprep.subr.bf16.mxu1 %v4218_v5  ;;  %v4228_v56 = vld [vmem:[#allocation85_spill] sm:$0xff]  ;;  %v4229_v5 = vld [vmem:[#allocation84_spill] sm:$0xff] }
 0x2e1   :  { %1547 = vmatpush1.bf16.msra.mxu0 %v4219_v50  ;;  %1588 = vmatpush1.bf16.msra.mxu1 %v4220_v10  ;;  %v4230_v50 = vld [vmem:[#allocation87_spill] sm:$0xff]  ;;  %v4231_v10 = vld [vmem:[#allocation86_spill] sm:$0xff] }
 0x2e2   :  { %1548 = vmatprep.subr.bf16.mxu0 %v4221_v2  ;;  %1589 = vmatprep.subr.bf16.mxu1 %v4222_v15  ;;  %v4232_v2 = vld [vmem:[#allocation89_spill] sm:$0xff]  ;;  %v4233_v15 = vld [vmem:[#allocation88_spill] sm:$0xff] }
 0x2e5   :  { %1549 = vmatpush1.bf16.msra.mxu0 %v4223_v36  ;;  %1590 = vmatpush1.bf16.msra.mxu1 %v4224_v58  ;;  %v4234_v36 = vld [vmem:[#allocation91_spill] sm:$0xff]  ;;  %v4235_v58 = vld [vmem:[#allocation90_spill] sm:$0xff] }
 0x2e6   :  { %1550 = vmatprep.subr.bf16.mxu0 %v4225_v31  ;;  %1591 = vmatprep.subr.bf16.mxu1 %v4226_v57  ;;  %v4236_v31 = vld [vmem:[#allocation93_spill] sm:$0xff]  ;;  %v4237_v57 = vld [vmem:[#allocation92_spill] sm:$0xff] }
 0x2e9   :  { %1551 = vmatpush1.bf16.msra.mxu0 %v4227_v35  ;;  %1592 = vmatpush1.bf16.msra.mxu1 %v4228_v56  ;;  %v4238_v35 = vld [vmem:[#allocation95_spill] sm:$0xff]  ;;  %v4239_v56 = vld [vmem:[#allocation94_spill] sm:$0xff] }
 0x2ea   :  { %1552 = vmatprep.subr.bf16.mxu0 %v4229_v5  ;;  %1593 = vmatprep.subr.bf16.mxu1 %v4230_v50  ;;  %v4240_v5 = vld [vmem:[#allocation97_spill] sm:$0xff] }
 0x2ed   :  { %1553 = vmatpush1.bf16.msra.mxu0 %v4231_v10  ;;  %1594 = vmatpush1.bf16.msra.mxu1 %v4232_v2  ;;  %v4241_v10 = vld [vmem:[#allocation99_spill] sm:$0xff] }
 0x2ee   :  { %1554 = vmatprep.subr.bf16.mxu0 %v4233_v15  ;;  %1595 = vmatprep.subr.bf16.mxu1 %v4234_v36 }
 0x2f1   :  { %1555 = vmatpush1.bf16.msra.mxu0 %v4235_v58  ;;  %1596 = vmatpush1.bf16.msra.mxu1 %v4236_v31  ;;  %v4242_v58 = vld [vmem:[#allocation103_spill] sm:$0xff] }
 0x2f2   :  { %1556 = vmatprep.subr.bf16.mxu0 %v4237_v57  ;;  %1597 = vmatprep.subr.bf16.mxu1 %v4238_v35 }
 0x2f5   :  { %1557 = vmatpush1.bf16.msra.mxu0 %v4239_v56  ;;  %1598 = vmatpush1.bf16.msra.mxu1 %v4240_v5 }
 0x2f6   :  { %1558 = vmatprep.subr.bf16.mxu0 %v4158_v30  ;;  %1599 = vmatprep.subr.bf16.mxu1 %v4241_v10 }
 0x2f9   :  { %1559 = vmatpush1.bf16.msra.mxu0 %v4160_v16  ;;  %1600 = vmatpush1.bf16.msra.mxu1 %v4161_v20 }
 0x2fa   :  { %1560 = vmatprep.subr.bf16.mxu0 %v4162_v45  ;;  %1601 = vmatprep.subr.bf16.mxu1 %v4242_v58 }
 0x2fd   :  { %1561 = vmatpush1.bf16.msra.mxu0 %v4164_v55  ;;  %1602 = vmatpush1.bf16.msra.mxu1 %v4165_v29 }
 0x2fe   :  { %1562 = vmatprep.subr.bf16.mxu0 %v4166_v46  ;;  %1603 = vmatprep.subr.bf16.mxu1 %v4167_v63 }
 0x301   :  { %1563 = vmatpush1.bf16.msra.mxu0 %v4168_v52  ;;  %1604 = vmatpush1.bf16.msra.mxu1 %v3124_v22 }
 0x302   :  { %1564 = vmatprep.subr.bf16.mxu0 %v4169_v27  ;;  %1605 = vmatprep.subr.bf16.mxu1 %v3130_v8 }
 0x305   :  { %1565 = vmatpush1.bf16.msra.mxu0 %v3127_v9  ;;  %1606 = vmatpush1.bf16.msra.mxu1 %v3148_v54 }
 0x306   :  { %1566 = vmatprep.subr.bf16.mxu0 %v4170_v19  ;;  %1607 = vmatprep.subr.bf16.mxu1 %v3154_v62 }
 0x309   :  { %1567 = vmatpush1.bf16.msra.mxu0 %v3151_v44  ;;  %1608 = vmatpush1.bf16.msra.mxu1 %v3166_v38 }
 0x30a   :  { %1568 = vmatprep.subr.bf16.mxu0 %v3157_v6  ;;  %1609 = vmatprep.subr.bf16.mxu1 %v3172_v21 }
 0x30d   :  { %1569 = vmatpush1.bf16.msra.mxu0 %v3169_v61  ;;  %1610 = vmatpush1.bf16.msra.mxu1 %v3176_v60 }
 0x30e   :  { %1724 = vmatprep.subr.bf16.mxu0 %v2397_v3  ;;  %1765 = vmatprep.subr.bf16.mxu1 %v2424_v13  ;;  %v4243_v3 = vld [vmem:[#allocation6_spill] sm:$0xff]  ;;  %v4247_v13 = vld [vmem:[#allocation9_spill] sm:$0xff] }
 0x310   :  { %1571 = vmatmul.mubr.bf16.vlgmr.msra.gmra.mrb[20].mxu0 %v3510_v28  ;;  %1612 = vmatmul.mubr.bf16.vlgmr.msra.gmra.mrb[20].mxu1 %v3510_v28  ;;  %v4259_v28 = vld [vmem:[#allocation21_spill] sm:$0xff] }
 0x311   :  { %1725 = vmatpush1.bf16.msra.mxu0 %v2399_v4  ;;  %1766 = vmatpush1.bf16.msra.mxu1 %v2426_v14  ;;  %v4244_v4 = vld [vmem:[#allocation8_spill] sm:$0xff] }
 0x312   :  { %1726 = vmatprep.subr.bf16.mxu0 %v2406_v7  ;;  %1767 = vmatprep.subr.bf16.mxu1 %v2437_v18  ;;  %v4245_v7 = vld [vmem:[#allocation7_spill] sm:$0xff]  ;;  %v4248_v14 = vld [vmem:[#allocation12_spill] sm:$0xff]  ;;  %v4250_v18 = vld [vmem:[#allocation14_spill] sm:$0xff] }
 0x315   :  { %1727 = vmatpush1.bf16.msra.mxu0 %v2422_v12  ;;  %1768 = vmatpush1.bf16.msra.mxu1 %v2453_v23  ;;  %v4246_v12 = vld [vmem:[#allocation10_spill] sm:$0xff]  ;;  %v4251_v23 = vld [vmem:[#allocation13_spill] sm:$0xff] }
 0x316   :  { %1728 = vmatprep.subr.bf16.mxu0 %v2435_v17  ;;  %1769 = vmatprep.subr.bf16.mxu1 %v2459_v25  ;;  %v4249_v17 = vld [vmem:[#allocation11_spill] sm:$0xff] }
 0x317   :  { %v4253_v25 = vld [vmem:[#allocation15_spill] sm:$0xff] }
 0x319   :  { %1729 = vmatpush1.bf16.msra.mxu0 %v2456_v24  ;;  %1770 = vmatpush1.bf16.msra.mxu1 %v2479_v32  ;;  %v4252_v24 = vld [vmem:[#allocation16_spill] sm:$0xff]  ;;  %v4255_v32 = vld [vmem:[#allocation17_spill] sm:$0xff] }
 0x31a   :  { %1730 = vmatprep.subr.bf16.mxu0 %v2462_v26  ;;  %1771 = vmatprep.subr.bf16.mxu1 %v2485_v34  ;;  %v4254_v26 = vld [vmem:[#allocation18_spill] sm:$0xff]  ;;  %v4257_v34 = vld [vmem:[#allocation19_spill] sm:$0xff] }
 0x31d   :  { %1731 = vmatpush1.bf16.msra.mxu0 %v2482_v33  ;;  %1772 = vmatpush1.bf16.msra.mxu1 %v2503_v40  ;;  %v4256_v33 = vld [vmem:[#allocation20_spill] sm:$0xff]  ;;  %v4258_v40 = vld [vmem:[#allocation22_spill] sm:$0xff] }
 0x31e   :  { %1732 = vmatprep.subr.bf16.mxu0 %v4243_v3  ;;  %1773 = vmatprep.subr.bf16.mxu1 %v4244_v4  ;;  %v4260_v3 = vld [vmem:[#allocation24_spill] sm:$0xff]  ;;  %v4261_v4 = vld [vmem:[#allocation23_spill] sm:$0xff] }
 0x321   :  { %1733 = vmatpush1.bf16.msra.mxu0 %v4245_v7  ;;  %1774 = vmatpush1.bf16.msra.mxu1 %v4246_v12  ;;  %v4262_v7 = vld [vmem:[#allocation26_spill] sm:$0xff]  ;;  %v4263_v12 = vld [vmem:[#allocation25_spill] sm:$0xff] }
 0x322   :  { %1734 = vmatprep.subr.bf16.mxu0 %v4247_v13  ;;  %1775 = vmatprep.subr.bf16.mxu1 %v4248_v14  ;;  %v4264_v13 = vld [vmem:[#allocation28_spill] sm:$0xff]  ;;  %v4265_v14 = vld [vmem:[#allocation27_spill] sm:$0xff] }
 0x325   :  { %1735 = vmatpush1.bf16.msra.mxu0 %v4249_v17  ;;  %1776 = vmatpush1.bf16.msra.mxu1 %v4250_v18  ;;  %v4266_v17 = vld [vmem:[#allocation30_spill] sm:$0xff]  ;;  %v4267_v18 = vld [vmem:[#allocation29_spill] sm:$0xff] }
 0x326   :  { %1736 = vmatprep.subr.bf16.mxu0 %v4251_v23  ;;  %1777 = vmatprep.subr.bf16.mxu1 %v4252_v24  ;;  %v4268_v23 = vld [vmem:[#allocation32_spill] sm:$0xff]  ;;  %v4269_v24 = vld [vmem:[#allocation31_spill] sm:$0xff] }
 0x329   :  { %1737 = vmatpush1.bf16.msra.mxu0 %v4253_v25  ;;  %1778 = vmatpush1.bf16.msra.mxu1 %v4254_v26  ;;  %v4270_v25 = vld [vmem:[#allocation35_spill] sm:$0xff]  ;;  %v4271_v26 = vld [vmem:[#allocation33_spill] sm:$0xff] }
 0x32a   :  { %1738 = vmatprep.subr.bf16.mxu0 %v4255_v32  ;;  %1779 = vmatprep.subr.bf16.mxu1 %v4256_v33  ;;  %v4272_v32 = vld [vmem:[#allocation37_spill] sm:$0xff]  ;;  %v4273_v33 = vld [vmem:[#allocation36_spill] sm:$0xff] }
 0x32d   :  { %1739 = vmatpush1.bf16.msra.mxu0 %v4257_v34  ;;  %1780 = vmatpush1.bf16.msra.mxu1 %v4258_v40  ;;  %v4274_v34 = vld [vmem:[#allocation40_spill] sm:$0xff]  ;;  %v4275_v40 = vld [vmem:[#allocation38_spill] sm:$0xff] }
 0x32e   :  { %1740 = vmatprep.subr.bf16.mxu0 %v4259_v28  ;;  %1781 = vmatprep.subr.bf16.mxu1 %v4260_v3  ;;  %v4276_v28 = vld [vmem:[#allocation42_spill] sm:$0xff]  ;;  %v4277_v3 = vld [vmem:[#allocation41_spill] sm:$0xff] }
 0x331   :  { %1741 = vmatpush1.bf16.msra.mxu0 %v4261_v4  ;;  %1782 = vmatpush1.bf16.msra.mxu1 %v4262_v7  ;;  %v4278_v4 = vld [vmem:[#allocation45_spill] sm:$0xff]  ;;  %v4279_v7 = vld [vmem:[#allocation43_spill] sm:$0xff] }
 0x332   :  { %1742 = vmatprep.subr.bf16.mxu0 %v4263_v12  ;;  %1783 = vmatprep.subr.bf16.mxu1 %v4264_v13  ;;  %v4280_v12 = vld [vmem:[#allocation47_spill] sm:$0xff]  ;;  %v4281_v13 = vld [vmem:[#allocation46_spill] sm:$0xff] }
 0x335   :  { %1743 = vmatpush1.bf16.msra.mxu0 %v4265_v14  ;;  %1784 = vmatpush1.bf16.msra.mxu1 %v4266_v17  ;;  %v4282_v14 = vld [vmem:[#allocation49_spill] sm:$0xff]  ;;  %v4283_v17 = vld [vmem:[#allocation48_spill] sm:$0xff] }
 0x336   :  { %1744 = vmatprep.subr.bf16.mxu0 %v4267_v18  ;;  %1785 = vmatprep.subr.bf16.mxu1 %v4268_v23  ;;  %v4284_v18 = vld [vmem:[#allocation51_spill] sm:$0xff]  ;;  %v4285_v23 = vld [vmem:[#allocation50_spill] sm:$0xff] }
 0x339   :  { %1745 = vmatpush1.bf16.msra.mxu0 %v4269_v24  ;;  %1786 = vmatpush1.bf16.msra.mxu1 %v4270_v25  ;;  %v4286_v24 = vld [vmem:[#allocation53_spill] sm:$0xff]  ;;  %v4287_v25 = vld [vmem:[#allocation52_spill] sm:$0xff] }
 0x33a   :  { %1746 = vmatprep.subr.bf16.mxu0 %v4271_v26  ;;  %1787 = vmatprep.subr.bf16.mxu1 %v4272_v32  ;;  %v4288_v26 = vld [vmem:[#allocation55_spill] sm:$0xff]  ;;  %v4289_v32 = vld [vmem:[#allocation54_spill] sm:$0xff] }
 0x33d   :  { %1747 = vmatpush1.bf16.msra.mxu0 %v4273_v33  ;;  %1788 = vmatpush1.bf16.msra.mxu1 %v4274_v34  ;;  %v4290_v33 = vld [vmem:[#allocation57_spill] sm:$0xff]  ;;  %v4291_v34 = vld [vmem:[#allocation56_spill] sm:$0xff] }
 0x33e   :  { %1748 = vmatprep.subr.bf16.mxu0 %v4275_v40  ;;  %1789 = vmatprep.subr.bf16.mxu1 %v4276_v28  ;;  %v4292_v40 = vld [vmem:[#allocation59_spill] sm:$0xff]  ;;  %v41_v28 = vld [vmem:[%s3784_s0 + $0x80] sm:$0xff] }
 0x341   :  { %1749 = vmatpush1.bf16.msra.mxu0 %v4277_v3  ;;  %1790 = vmatpush1.bf16.msra.mxu1 %v4278_v4  ;;  %v43_v3 = vld [vmem:[%s3784_s0 + $0x88] sm:$0xff] }
 0x342   :  { %1750 = vmatprep.subr.bf16.mxu0 %v4279_v7  ;;  %1791 = vmatprep.subr.bf16.mxu1 %v4280_v12 }
 0x345   :  { %1751 = vmatpush1.bf16.msra.mxu0 %v4281_v13  ;;  %1792 = vmatpush1.bf16.msra.mxu1 %v4282_v14 }
 0x346   :  { %1752 = vmatprep.subr.bf16.mxu0 %v4283_v17  ;;  %1793 = vmatprep.subr.bf16.mxu1 %v4284_v18 }
 0x349   :  { %1753 = vmatpush1.bf16.msra.mxu0 %v4285_v23  ;;  %1794 = vmatpush1.bf16.msra.mxu1 %v4286_v24 }
 0x34a   :  { %1754 = vmatprep.subr.bf16.mxu0 %v4287_v25  ;;  %1795 = vmatprep.subr.bf16.mxu1 %v4288_v26 }
 0x34d   :  { %1755 = vmatpush1.bf16.msra.mxu0 %v4289_v32  ;;  %1796 = vmatpush1.bf16.msra.mxu1 %v4290_v33  ;;  %v47_v33 = vld [vmem:[%s3784_s0 + $0x98] sm:$0xff] }
 0x34e   :  { %1806 = vmatprep.subr.bf16.mxu0 %v4291_v34  ;;  %1847 = vmatprep.subr.bf16.mxu1 %v4292_v40  ;;  %v45_v40 = vld [vmem:[%s3784_s0 + $0x90] sm:$0xff] }
 0x3a3   :  { %v1490_v4 = vpop.f32.mrb[16].mxu0  ;;  %v1531_v7 = vpop.f32.mrb[16].mxu1 }
 0x3a4   :  { %v1625_v12 = vadd.f32 %v1490_v4, %v41_v28  ;;  %v1492_v13 = vpop.f32.mrb[17].mxu0  ;;  %v1533_v14 = vpop.f32.mrb[17].mxu1  ;;  %v1627_v4 = vadd.f32 %v1531_v7, %v45_v40 }
 0x3a5   :  { %v1626_v17 = vadd.f32 %v1492_v13, %v43_v3  ;;  %v1494_v18 = vpop.f32.mrb[18].mxu0  ;;  %v1535_v23 = vpop.f32.mrb[18].mxu1  ;;  %v1628_v34 = vadd.f32 %v1533_v14, %v47_v33 }
 0x3a6   :  { %v2185_v24 = vmul.f32 -1.442695, %v1625_v12  ;;  %v1495_v25 = vpop.f32.mrb[19].mxu0  ;;  %v1536_v26 = vpop.f32.mrb[19].mxu1 }
 0x3a7   :  { %v2186_v32 = vmul.f32 -1.442695, %v1626_v17  ;;  %v2187_v28 = vmul.f32 -1.442695, %v1628_v34  ;;  %v1695_v33 = vpop.permute.xlu1 %1694 }
 0x3a8   :  { %2292 = vpow2.f32 %v2185_v24  ;;  %vm1696_vm10 = vcmp.eq.s32.totalorder %v1695_v33, 1 }
 0x3a9   :  { %2294 = vpow2.f32 %v2186_v32 }
 0x3aa   :  { %2296 = vpow2.f32 %v2187_v28 }
 0x3ab   :  { %2298 = vtanh.f32 %v1627_v4 }
 0x3b2   :  { %v2293_v3 = vpop.eup %2292 }
 0x3b3   :  { %v2295_v13 = vpop.eup %2294  ;;  %v1642_v18 = vadd.f32 1.0, %v2293_v3 }
 0x3b4   :  { %v1648_v12 = vadd.f32 1.0, %v2295_v13  ;;  %v2297_v17 = vpop.eup %2296  ;;  %v2030_v13 = vld [vmem:[%s3785_s1 + $0x60] sm:$0xff] }
 0x3b5   :  { %2300 = vrcp.f32 %v1642_v18  ;;  %v2299_v23 = vpop.eup %2298  ;;  %v1655_v14 = vadd.f32 1.0, %v2297_v17  ;;  %v2031_v18 = vld [vmem:[%s3785_s1 + $0x68] sm:$0xff] }
 0x3b6   :  { %2302 = vrcp.f32 %v1648_v12 }
 0x3b7   :  { %2304 = vrcp.f32 %v1655_v14 }
 0x3bf   :  { %v2301_v24 = vpop.eup %2300 }
 0x3c0   :  { %v2303_v25 = vpop.eup %2302  ;;  %v1659_v26 = vmul.f32 %v2301_v24, %v2299_v23 }
 0x3c1   :  { %v1658_v32 = vmul.f32 %v2303_v25, %v3474_v41  ;;  %v2305_v34 = vpop.eup %2304 }
 0x3c3   :  { %v1660_v60 = vadd.f32 %v1659_v26, %v1658_v32 }
 0x3c5   :  { %2306 = vtanh.f32 %v1660_v60  ;;  %v3658_v7 = vsel %vm1696_vm10, %v1660_v60, %v3474_v41 }
 0x3cf   :  { %v2307_v40 = vpop.eup %2306 }
 0x3d0   :  { %v1662_v28 = vmul.f32 %v2307_v40, %v2305_v34  ;;  %v2033_v34 = vld [vmem:[%s3785_s1 + $0x78] sm:$0xff] }
 0x3d2   :  { %v1697_v4 = vsel %vm1696_vm10, %v1662_v28, %v3477_v42  ;;  %v1712_v3 = vsel %vm1696_vm10, %v1662_v28, 0.0  ;;  %v2032_v28 = vld [vmem:[%s3785_s1 + $0x70] sm:$0xff] }
 0x3d3   :  { %2191 = vst [vmem:[%s3788_s4 + $0x10] sm:$0xff] %v1712_v3 }
 0x3e3   :  { %v1572_v60 = vpop.f32.mrb[20].mxu0  ;;  %v1613_v41 = vpop.f32.mrb[20].mxu1 }
 0x3e4   :  { %v1634_v12 = vadd.f32 %v2030_v13, %v1572_v60  ;;  %v1574_v17 = vpop.f32.mrb[21].mxu0  ;;  %v1615_v23 = vpop.f32.mrb[21].mxu1  ;;  %v1636_v13 = vadd.f32 %v2032_v28, %v1613_v41 }
 0x3e5   :  { %v1635_v24 = vadd.f32 %v2031_v18, %v1574_v17  ;;  %v1576_v42 = vpop.f32.mrb[22].mxu0  ;;  %v1617_v25 = vpop.f32.mrb[22].mxu1  ;;  %v1637_v40 = vadd.f32 %v2033_v34, %v1615_v23 }
 0x3e6   :  { %v2188_v26 = vmul.f32 -1.442695, %v1634_v12  ;;  %v1577_v14 = vpop.f32.mrb[23].mxu0  ;;  %v1618_v32 = vpop.f32.mrb[23].mxu1 }
 0x3e7   :  { %v2189_v33 = vmul.f32 -1.442695, %v1635_v24  ;;  %v2190_v3 = vmul.f32 -1.442695, %v1637_v40 }
 0x3e8   :  { %2308 = vpow2.f32 %v2188_v26 }
 0x3e9   :  { %2310 = vpow2.f32 %v2189_v33  ;;  %v1702_v33 = vpop.permute.xlu0 %1701 }
 0x3ea   :  { %2312 = vpow2.f32 %v2190_v3  ;;  %vm1703_vm11 = vcmp.eq.s32.totalorder %v1702_v33, 1 }
 0x3eb   :  { %2314 = vtanh.f32 %v1636_v13 }
 0x3f2   :  { %v2309_v18 = vpop.eup %2308 }
 0x3f3   :  { %v2311_v60 = vpop.eup %2310  ;;  %v1667_v17 = vadd.f32 1.0, %v2309_v18 }
 0x3f4   :  { %v1673_v12 = vadd.f32 1.0, %v2311_v60  ;;  %v2313_v24 = vpop.eup %2312 }
 0x3f5   :  { %2316 = vrcp.f32 %v1667_v17  ;;  %v2315_v42 = vpop.eup %2314  ;;  %v1680_v23 = vadd.f32 1.0, %v2313_v24  ;;  %v3684_v17 = vpack.c.bf16 %v1697_v4, %v1697_v4  ;;  %v4305_v4 = vld [vmem:[#allocation80_spill] sm:$0xff]  ;;  %v4307_v24 = vld [vmem:[#allocation82_spill] sm:$0xff] }
 0x3f6   :  { %2318 = vrcp.f32 %v1673_v12  ;;  %v4306_v12 = vld [vmem:[#allocation83_spill] sm:$0xff] }
 0x3f7   :  { %2320 = vrcp.f32 %v1680_v23 }
 0x3ff   :  { %v2317_v25 = vpop.eup %2316 }
 0x400   :  { %v2319_v26 = vpop.eup %2318  ;;  %v1684_v14 = vmul.f32 %v2317_v25, %v2315_v42  ;;  %v4308_v42 = vld [vmem:[#allocation85_spill] sm:$0xff]  ;;  %v4309_v25 = vld [vmem:[#allocation84_spill] sm:$0xff] }
 0x401   :  { %v1683_v32 = vmul.f32 %v2319_v26, %v3498_v59  ;;  %v2321_v40 = vpop.eup %2320  ;;  %v4310_v26 = vld [vmem:[#allocation86_spill] sm:$0xff] }
 0x403   :  { %v1685_v34 = vadd.f32 %v1684_v14, %v1683_v32  ;;  %v4311_v14 = vld [vmem:[#allocation90_spill] sm:$0xff]  ;;  %v1962_v32 = vpop.permute.xlu0 %1961 }
 0x404   :  { %vm1963_vm12 = vcmp.eq.s32.totalorder %v1962_v32, 1 }
 0x405   :  { %2322 = vtanh.f32 %v1685_v34  ;;  %v3678_v41 = vsel %vm1703_vm11, %v1685_v34, %v3498_v59  ;;  %v4295_v59 = vld [vmem:[#allocation70_spill] sm:$0xff] }
 0x40f   :  { %v2323_v28 = vpop.eup %2322 }
 0x410   :  { %v1687_v3 = vmul.f32 %v2323_v28, %v2321_v40  ;;  %v2026_v28 = vld [vmem:[%s3785_s1 + $0x20] sm:$0xff] }
 0x412   :  { %v1704_v13 = vsel %vm1703_vm11, %v1687_v3, %v3501_v1  ;;  %v1715_v18 = vsel %vm1703_vm11, %v1687_v3, 0.0  ;;  %v4297_v1 = vld [vmem:[#allocation72_spill] sm:$0xff] }
 0x413   :  { %2192 = vst [vmem:[%s3789_s5 + $0x8] sm:$0xff] %v1715_v18  ;;  %v1723_v60 = vpack.c.bf16 %v1704_v13, %v1704_v13 }
 0x415   :  { %1756 = vmatprep.mubr.bf16.mxu0 %v1723_v60  ;;  %1797 = vmatprep.mubr.bf16.mxu1 %v1723_v60 }
 0x416   :  { %1757 = vmatmul.mubr.bf16.vlgmr.msra.gmra.mrb[24].mxu0 %v3684_v17  ;;  %1798 = vmatmul.mubr.bf16.vlgmr.msra.gmra.mrb[24].mxu1 %v3684_v17 }
 0x417   :  { %1807 = vmatpush1.bf16.msra.mxu0 %v4120_v39  ;;  %1848 = vmatpush1.bf16.msra.mxu1 %v4121_v53  ;;  %v4293_v39 = vld [vmem:[#allocation68_spill] sm:$0xff]  ;;  %v4294_v53 = vld [vmem:[#allocation71_spill] sm:$0xff] }
 0x418   :  { %1838 = vmatprep.mubr.bf16.mxu0 %v1723_v60  ;;  %1879 = vmatprep.mubr.bf16.mxu1 %v1723_v60 }
 0x419   :  { %1808 = vmatprep.subr.bf16.mxu0 %v4122_v11  ;;  %1849 = vmatprep.subr.bf16.mxu1 %v4206_v37  ;;  %v4296_v11 = vld [vmem:[#allocation73_spill] sm:$0xff]  ;;  %v4298_v37 = vld [vmem:[#allocation75_spill] sm:$0xff] }
 0x41b   :  { %1809 = vmatpush1.bf16.msra.mxu0 %v4207_v49  ;;  %1850 = vmatpush1.bf16.msra.mxu1 %v4208_v0  ;;  %v4299_v49 = vld [vmem:[#allocation74_spill] sm:$0xff]  ;;  %v4300_v0 = vld [vmem:[#allocation77_spill] sm:$0xff] }
 0x41c   :  { %1810 = vmatprep.subr.bf16.mxu0 %v4209_v43  ;;  %1851 = vmatprep.subr.bf16.mxu1 %v4210_v48  ;;  %v4301_v43 = vld [vmem:[#allocation76_spill] sm:$0xff]  ;;  %v4302_v48 = vld [vmem:[#allocation79_spill] sm:$0xff] }
 0x41f   :  { %1811 = vmatpush1.bf16.msra.mxu0 %v4211_v47  ;;  %1852 = vmatpush1.bf16.msra.mxu1 %v4212_v51  ;;  %v4303_v47 = vld [vmem:[#allocation78_spill] sm:$0xff]  ;;  %v4304_v51 = vld [vmem:[#allocation81_spill] sm:$0xff] }
 0x420   :  { %1812 = vmatprep.subr.bf16.mxu0 %v4293_v39  ;;  %1853 = vmatprep.subr.bf16.mxu1 %v4294_v53 }
 0x423   :  { %1813 = vmatpush1.bf16.msra.mxu0 %v4295_v59  ;;  %1854 = vmatpush1.bf16.msra.mxu1 %v4296_v11 }
 0x424   :  { %1814 = vmatprep.subr.bf16.mxu0 %v4297_v1  ;;  %1855 = vmatprep.subr.bf16.mxu1 %v4298_v37 }
 0x427   :  { %1815 = vmatpush1.bf16.msra.mxu0 %v4299_v49  ;;  %1856 = vmatpush1.bf16.msra.mxu1 %v4300_v0  ;;  %v2029_v0 = vld [vmem:[%s3785_s1 + $0x38] sm:$0xff] }
 0x428   :  { %1816 = vmatprep.subr.bf16.mxu0 %v4301_v43  ;;  %1857 = vmatprep.subr.bf16.mxu1 %v4302_v48  ;;  %v2028_v48 = vld [vmem:[%s3785_s1 + $0x30] sm:$0xff] }
 0x42b   :  { %1817 = vmatpush1.bf16.msra.mxu0 %v4303_v47  ;;  %1858 = vmatpush1.bf16.msra.mxu1 %v4304_v51 }
 0x42c   :  { %1818 = vmatprep.subr.bf16.mxu0 %v4305_v4  ;;  %1859 = vmatprep.subr.bf16.mxu1 %v4306_v12 }
 0x42f   :  { %1819 = vmatpush1.bf16.msra.mxu0 %v4307_v24  ;;  %1860 = vmatpush1.bf16.msra.mxu1 %v4308_v42 }
 0x430   :  { %1820 = vmatprep.subr.bf16.mxu0 %v4309_v25  ;;  %1861 = vmatprep.subr.bf16.mxu1 %v4230_v50 }
 0x433   :  { %1821 = vmatpush1.bf16.msra.mxu0 %v4310_v26  ;;  %1862 = vmatpush1.bf16.msra.mxu1 %v4232_v2 }
 0x434   :  { %1822 = vmatprep.subr.bf16.mxu0 %v4233_v15  ;;  %1863 = vmatprep.subr.bf16.mxu1 %v4234_v36 }
 0x437   :  { %1823 = vmatpush1.bf16.msra.mxu0 %v4311_v14  ;;  %1864 = vmatpush1.bf16.msra.mxu1 %v4236_v31 }
 0x438   :  { %1824 = vmatprep.subr.bf16.mxu0 %v4237_v57  ;;  %1865 = vmatprep.subr.bf16.mxu1 %v4238_v35 }
 0x43b   :  { %1825 = vmatpush1.bf16.msra.mxu0 %v4239_v56  ;;  %1866 = vmatpush1.bf16.msra.mxu1 %v4240_v5 }
 0x43c   :  { %1826 = vmatprep.subr.bf16.mxu0 %v4158_v30  ;;  %1867 = vmatprep.subr.bf16.mxu1 %v4241_v10 }
 0x43f   :  { %1827 = vmatpush1.bf16.msra.mxu0 %v4160_v16  ;;  %1868 = vmatpush1.bf16.msra.mxu1 %v4161_v20  ;;  %v55_v20 = vld [vmem:[%s3784_s0 + $0xd8] sm:$0xff] }
 0x440   :  { %1828 = vmatprep.subr.bf16.mxu0 %v4162_v45  ;;  %1869 = vmatprep.subr.bf16.mxu1 %v4242_v58 }
 0x443   :  { %1829 = vmatpush1.bf16.msra.mxu0 %v4164_v55  ;;  %1870 = vmatpush1.bf16.msra.mxu1 %v4165_v29 }
 0x444   :  { %1830 = vmatprep.subr.bf16.mxu0 %v4166_v46  ;;  %1871 = vmatprep.subr.bf16.mxu1 %v4167_v63 }
 0x447   :  { %1831 = vmatpush1.bf16.msra.mxu0 %v4168_v52  ;;  %1872 = vmatpush1.bf16.msra.mxu1 %v3124_v22  ;;  %v4312_v22 = vld [vmem:[#allocation110_spill] sm:$0xff] }
 0x448   :  { %1832 = vmatprep.subr.bf16.mxu0 %v4169_v27  ;;  %1873 = vmatprep.subr.bf16.mxu1 %v3130_v8  ;;  %v51_v8 = vld [vmem:[%s3784_s0 + $0xc8] sm:$0xff] }
 0x44b   :  { %1833 = vmatpush1.bf16.msra.mxu0 %v3127_v9  ;;  %1874 = vmatpush1.bf16.msra.mxu1 %v3148_v54 }
 0x44c   :  { %1834 = vmatprep.subr.bf16.mxu0 %v4170_v19  ;;  %1875 = vmatprep.subr.bf16.mxu1 %v3154_v62  ;;  %v49_v62 = vld [vmem:[%s3784_s0 + $0xc0] sm:$0xff]  ;;  %v53_v19 = vld [vmem:[%s3784_s0 + $0xd0] sm:$0xff] }
 0x44f   :  { %1835 = vmatpush1.bf16.msra.mxu0 %v3151_v44  ;;  %1876 = vmatpush1.bf16.msra.mxu1 %v3166_v38 }
 0x450   :  { %1836 = vmatprep.subr.bf16.mxu0 %v3157_v6  ;;  %1877 = vmatprep.subr.bf16.mxu1 %v3172_v21 }
 0x453   :  { %1837 = vmatpush1.bf16.msra.mxu0 %v3169_v61  ;;  %1878 = vmatpush1.bf16.msra.mxu1 %v4312_v22 }
 0x456   :  { %1839 = vmatmul.mubr.bf16.vlgmr.msra.gmra.mrb[28].mxu0 %v3684_v17  ;;  %1880 = vmatmul.mubr.bf16.vlgmr.msra.gmra.mrb[28].mxu1 %v3684_v17 }
 0x4e9   :  { %v1758_v9 = vpop.f32.mrb[24].mxu0  ;;  %v1799_v6 = vpop.f32.mrb[24].mxu1 }
 0x4ea   :  { %v1893_v44 = vadd.f32 %v1758_v9, %v49_v62  ;;  %v1760_v54 = vpop.f32.mrb[25].mxu0  ;;  %v1801_v38 = vpop.f32.mrb[25].mxu1  ;;  %v1895_v29 = vadd.f32 %v1799_v6, %v53_v19 }
 0x4eb   :  { %v1894_v61 = vadd.f32 %v1760_v54, %v51_v8  ;;  %v1762_v21 = vpop.f32.mrb[26].mxu0  ;;  %v1803_v63 = vpop.f32.mrb[26].mxu1  ;;  %v1896_v45 = vadd.f32 %v1801_v38, %v55_v20 }
 0x4ec   :  { %v2193_v52 = vmul.f32 -1.442695, %v1893_v44  ;;  %v1763_v30 = vpop.f32.mrb[27].mxu0  ;;  %v1804_v27 = vpop.f32.mrb[27].mxu1 }
 0x4ed   :  { %v2194_v16 = vmul.f32 -1.442695, %v1894_v61  ;;  %v2195_v55 = vmul.f32 -1.442695, %v1896_v45  ;;  %v1969_v54 = vpop.permute.xlu1 %1968 }
 0x4ee   :  { %2324 = vpow2.f32 %v2193_v52  ;;  %vm1970_vm13 = vcmp.eq.s32.totalorder %v1969_v54, 1 }
 0x4ef   :  { %2326 = vpow2.f32 %v2194_v16 }
 0x4f0   :  { %2328 = vpow2.f32 %v2195_v55 }
 0x4f1   :  { %2330 = vtanh.f32 %v1895_v29 }
 0x4f8   :  { %v2325_v46 = vpop.eup %2324 }
 0x4f9   :  { %v2327_v58 = vpop.eup %2326  ;;  %v1909_v31 = vadd.f32 1.0, %v2325_v46 }
 0x4fa   :  { %v1915_v57 = vadd.f32 1.0, %v2327_v58  ;;  %v2329_v35 = vpop.eup %2328 }
 0x4fb   :  { %2332 = vrcp.f32 %v1909_v31  ;;  %v2331_v56 = vpop.eup %2330  ;;  %v1922_v2 = vadd.f32 1.0, %v2329_v35 }
 0x4fc   :  { %2334 = vrcp.f32 %v1915_v57 }
 0x4fd   :  { %2336 = vrcp.f32 %v1922_v2 }
 0x505   :  { %v2333_v5 = vpop.eup %2332 }
 0x506   :  { %v2335_v50 = vpop.eup %2334  ;;  %v1926_v10 = vmul.f32 %v2333_v5, %v2331_v56 }
 0x507   :  { %v1925_v15 = vmul.f32 %v2335_v50, %v3658_v7  ;;  %v2337_v23 = vpop.eup %2336  ;;  %v2027_v7 = vld [vmem:[%s3785_s1 + $0x28] sm:$0xff] }
 0x509   :  { %v1927_v36 = vadd.f32 %v1926_v10, %v1925_v15 }
 0x50b   :  { %2338 = vtanh.f32 %v1927_v36 }
 0x515   :  { %v2339_v33 = vpop.eup %2338 }
 0x516   :  { %v1929_v34 = vmul.f32 %v2339_v33, %v2337_v23 }
 0x518   :  { %v1979_v40 = vsel %vm1963_vm12, %v1929_v34, 0.0 }
 0x519   :  { %2199 = vst [vmem:[%s3788_s4 + $0x18] sm:$0xff] %v1979_v40 }
 0x529   :  { %v1840_v3 = vpop.f32.mrb[28].mxu0  ;;  %v1881_v13 = vpop.f32.mrb[28].mxu1 }
 0x52a   :  { %v1901_v18 = vadd.f32 %v2026_v28, %v1840_v3  ;;  %v1842_v60 = vpop.f32.mrb[29].mxu0  ;;  %v1883_v17 = vpop.f32.mrb[29].mxu1  ;;  %v1903_v51 = vadd.f32 %v2028_v48, %v1881_v13 }
 0x52b   :  { %v1902_v39 = vadd.f32 %v2027_v7, %v1842_v60  ;;  %v1844_v53 = vpop.f32.mrb[30].mxu0  ;;  %v1885_v59 = vpop.f32.mrb[30].mxu1  ;;  %v1904_v43 = vadd.f32 %v2029_v0, %v1883_v17 }
 0x52c   :  { %v2196_v11 = vmul.f32 -1.442695, %v1901_v18  ;;  %v1845_v1 = vpop.f32.mrb[31].mxu0  ;;  %v1886_v37 = vpop.f32.mrb[31].mxu1 }
 0x52d   :  { %v2197_v49 = vmul.f32 -1.442695, %v1902_v39  ;;  %v2198_v47 = vmul.f32 -1.442695, %v1904_v43 }
 0x52e   :  { %2340 = vpow2.f32 %v2196_v11 }
 0x52f   :  { %2342 = vpow2.f32 %v2197_v49 }
 0x530   :  { %2344 = vpow2.f32 %v2198_v47 }
 0x531   :  { %2346 = vtanh.f32 %v1903_v51 }
 0x538   :  { %v2341_v4 = vpop.eup %2340 }
 0x539   :  { %v2343_v12 = vpop.eup %2342  ;;  %v1934_v24 = vadd.f32 1.0, %v2341_v4 }
 0x53a   :  { %v1940_v42 = vadd.f32 1.0, %v2343_v12  ;;  %v2345_v25 = vpop.eup %2344 }
 0x53b   :  { %2348 = vrcp.f32 %v1934_v24  ;;  %v2347_v26 = vpop.eup %2346  ;;  %v1947_v8 = vadd.f32 1.0, %v2345_v25 }
 0x53c   :  { %2350 = vrcp.f32 %v1940_v42 }
 0x53d   :  { %2352 = vrcp.f32 %v1947_v8 }
 0x545   :  { %v2349_v14 = vpop.eup %2348 }
 0x546   :  { %v2351_v22 = vpop.eup %2350  ;;  %v1951_v62 = vmul.f32 %v2349_v14, %v2347_v26 }
 0x547   :  { %v1950_v9 = vmul.f32 %v2351_v22, %v3678_v41  ;;  %v2353_v44 = vpop.eup %2352 }
 0x549   :  { %v1952_v6 = vadd.f32 %v1951_v62, %v1950_v9 }
 0x54b   :  { %2354 = vtanh.f32 %v1952_v6 }
 0x555   :  { %v2355_v38 = vpop.eup %2354 }
 0x556   :  { %v1954_v61 = vmul.f32 %v2355_v38, %v2353_v44 }
 0x558   :  { %v1982_v21 = vsel %vm1970_vm13, %v1954_v61, 0.0 }
 0x559   :  { %1983 = vst [vmem:[%s3789_s5] sm:$0xff] %v1982_v21 }

// kernel: asr_forward.13
= control target key start
LH: loop header
LB: loop body
LE: loop exit
PB: predicated region body
PF: predicated region fallthrough
CT: control target
= control target key end

     0   :  { %s398_s0 = inlined_call_operand.vmem [shape: bf16[8,256], index: 0, kind: input, shape index: {}]   ;;  %s399_s1 = inlined_call_operand.vmem [shape: bf16[256,128], index: 1, kind: input, shape index: {}]   ;;  %s400_s2 = inlined_call_operand.vmem [shape: f32[1,128], index: 2, kind: input, shape index: {}]   ;;  %s401_s3 = inlined_call_operand.hbm [shape: f32[8,128], index: 3, kind: output, shape index: {}]  }
   0x1   :  { %v269_v0 = vld [vmem:[%s399_s1 + $0x40] sm:$0xff]   ;;  %v271_v2 = vld [vmem:[%s399_s1 + $0x48] sm:$0xff]   ;;  %v273_v4 = vld [vmem:[%s399_s1 + $0x50] sm:$0xff]  }
   0x2   :  { %v270_v1 = vld [vmem:[%s399_s1] sm:$0xff]   ;;  %246 = vmatprep.subr.bf16.mxu0 %v269_v0  ;;  %v272_v3 = vld [vmem:[%s399_s1 + $0x8] sm:$0xff]   ;;  %v274_v5 = vld [vmem:[%s399_s1 + $0x10] sm:$0xff]  }
   0x3   :  { %247 = vmatpush3.bf16.msra.mxu0 %v270_v1  ;;  %v275_v6 = vld [vmem:[%s399_s1 + $0x58] sm:$0xff]   ;;  %v277_v8 = vld [vmem:[%s399_s1 + $0x60] sm:$0xff]   ;;  %v279_v10 = vld [vmem:[%s399_s1 + $0x68] sm:$0xff]  }
   0x4   :  { %248 = vmatprep.subr.bf16.mxu0 %v271_v2  ;;  %v276_v7 = vld [vmem:[%s399_s1 + $0x18] sm:$0xff]   ;;  %v278_v9 = vld [vmem:[%s399_s1 + $0x20] sm:$0xff]  }
   0x5   :  { %v22_v11 = vld [vmem:[%s398_s0] sm:$0xff] }
   0x7   :  { %249 = vmatpush3.bf16.msra.mxu0 %v272_v3 }
   0x8   :  { %250 = vmatprep.subr.bf16.mxu0 %v273_v4 }
   0xb   :  { %251 = vmatpush3.bf16.msra.mxu0 %v274_v5 }
   0xc   :  { %252 = vmatprep.subr.bf16.mxu0 %v275_v6 }
   0xf   :  { %253 = vmatpush3.bf16.msra.mxu0 %v276_v7 }
  0x10   :  { %254 = vmatprep.subr.bf16.mxu0 %v277_v8 }
  0x11   :  { %8 = vsyncpa [#allocation4], 0  ;;  %v228_v12 = vcombine.high %v22_v11, %v22_v11  ;;  %v280_v13 = vld [vmem:[%s399_s1 + $0x28] sm:$0xff]   ;;  %v281_v14 = vld [vmem:[%s399_s1 + $0x70] sm:$0xff]   ;;  %v227_v18 = vcombine.low %v22_v11, %v22_v11  ;;  %s311_s20 = smov [#allocation3]  }
  0x12   :  { %v282_v15 = vld [vmem:[%s399_s1 + $0x30] sm:$0xff]   ;;  %v283_v16 = vld [vmem:[%s399_s1 + $0x78] sm:$0xff]   ;;  %v245_v21 = vld [vmem:[%s400_s2] ss:$0 sm:$0xff]  ;;  %s219_s21 = sshll.u32 %s311_s20, 4  ;;  %s220_s21 = int_to_ptr.vmem [resolvable:$true] %s219_s21 }
  0x13   :  { %255 = vmatpush3.bf16.msra.mxu0 %v278_v9  ;;  %190 = vmatprep.mubr.bf16.mxu0 %v228_v12  ;;  %v284_v17 = vld [vmem:[%s399_s1 + $0x38] sm:$0xff]   ;;  %s287_s22 = scalar_lea.vmem %s220_s21, 128  ;;  %p292_p1 = scmp.lt.s32.totalorder %s220_s21, %s220_s21 }
  0x14   :  { %256 = vmatprep.subr.bf16.mxu0 %v279_v10  ;;  %p288_p0 = scmp.ne.s32.totalorder %s220_s21, %s287_s22  ;;  %p293_p2 = scmp.lt.s32.totalorder %s287_s22, %s287_s22 }
  0x16   :  { %p294_p3 = por %p293_p2, %p292_p1 }
  0x17   :  { %257 = vmatpush3.bf16.msra.mxu0 %v280_v13 }
  0x18   :  { %258 = vmatprep.subr.bf16.mxu0 %v281_v14  ;;  %p295_p4 = pnand %p294_p3, %p288_p0 }
  0x1b   :  { %259 = vmatpush3.bf16.msra.mxu0 %v282_v15 }
  0x1c   :  { %260 = vmatprep.subr.bf16.mxu0 %v283_v16 }
  0x1f   :  { %261 = vmatpush3.bf16.msra.mxu0 %v284_v17 }
  0x22   :  { %191 = vmatmul.mubr.bf16.vlgmr.msra.gmra.mrb[0].mxu0 %v227_v18 }
  0xf5   :  { %v262_v19 = vpop.f32.mrb[0].mxu0 }
  0xf6   :  { %v263_v20 = vpop.f32.mrb[1].mxu0 }
  0xf7   :  { %v264_v22 = vadd.f32 %v263_v20, %v262_v19  ;;  %v265_v23 = vpop.f32.mrb[2].mxu0 }
  0xf8   :  { %v266_v24 = vpop.f32.mrb[3].mxu0 }
  0xf9   :  { %v211_v25 = vadd.f32 %v264_v22, %v245_v21 }
  0xfb   :  { %212 = vst [vmem:[#allocation3] sm:$0xff] %v211_v25 }
  0xfc   :  { %298 = shalt.err (!%p295_p4)
}
  0xfd   :  { %s299_s24 = scalar_lea.hbm %s401_s3, 128 }
  0xfe   :  { %p300_p5 = scmp.ne.s32.totalorder %s401_s3, %s299_s24  ;;  %p303_p6 = scmp.lt.u32.totalorder %s299_s24, %s401_s3 }
 0x100   :  { %p305_p7 = pnand %p303_p6, %p300_p5 }
 0x102   :  { %308 = shalt.err (!%p305_p7)
}
 0x103   :  { %222 = dma.vmem_to_hbm [thread:$0]  %s220_s21, 128, %s401_s3, [#allocation4]  }
 0x104   :  { %309 = dma.done.wait [#allocation4], 128  }
 0x105   :  { %310 = vsyncadd [#allocation4], 4294967168 }
 0x106   :  { %226 = vsyncpa [#allocation4], 1 }

</bundles_post_ra>
